<compile_context>
chip_gen: v5e
topology: v5e:2x2
jax: 0.10.0
libtpu: 0.0.40
codegen_flags: <defaults>
</compile_context>

<pallas_src>
import math
import numpy as np
import jax
import jax.numpy as jnp
from jax.experimental import pallas as pl
from jax.experimental.pallas import tpu as pltpu

LN_EPS = 1e-5  # torch TransformerEncoderLayer default layer_norm_eps


# ---------------------------------------------------------------------------
# Kernel 1: fused 6-layer post-norm TransformerEncoder.
#   grid = (row_tiles, num_layers); weight stack VMEM-resident (constant
#   index_map), output tile is the cross-layer accumulator.
# ---------------------------------------------------------------------------
def _fused_encoder_kernel(y_ref, wvo_ref, w1_ref, w2_ref, b1_ref, vd_ref, o_ref):
    l = pl.program_id(1)

    @pl.when(l == 0)
    def _():                       # load this row tile once; o_ref stays resident
        o_ref[...] = y_ref[...]

    y = o_ref[...]                                             # [tm, D] f32
    vd = vd_ref[l]                                             # [8, D] f32 packed
    bvo, b2 = vd[0:1, :], vd[1:2, :]
    g1, be1 = vd[2:3, :], vd[3:4, :]
    g2, be2 = vd[4:5, :], vd[5:6, :]

    # --- self attention (seq_len == 1 => softmax == 1; Wv.Wo fused at init) ---
    attn = jnp.dot(y.astype(jnp.bfloat16), wvo_ref[l],
                   preferred_element_type=jnp.float32) + bvo

    # --- residual + LayerNorm1 (post-norm), f32 statistics ---
    h = y + attn
    mu = jnp.mean(h, axis=-1, keepdims=True)
    var = jnp.mean((h - mu) ** 2, axis=-1, keepdims=True)
    h = (h - mu) * jax.lax.rsqrt(var + LN_EPS) * g1 + be1

    # --- feed forward (ReLU), bf16 MXU operands, f32 accumulate ---
    f = jnp.dot(h.astype(jnp.bfloat16), w1_ref[l],
                preferred_element_type=jnp.float32) + b1_ref[l]
    f = jnp.maximum(f, 0.0)
    f = jnp.dot(f.astype(jnp.bfloat16), w2_ref[l],
                preferred_element_type=jnp.float32) + b2

    # --- residual + LayerNorm2 ---
    z = h + f
    mu2 = jnp.mean(z, axis=-1, keepdims=True)
    var2 = jnp.mean((z - mu2) ** 2, axis=-1, keepdims=True)
    o_ref[...] = (z - mu2) * jax.lax.rsqrt(var2 + LN_EPS) * g2 + be2


def _row_tiling(S, max_tile=1024):
    """Pick (S_pad, tm). Prefer a divisor of S that is a multiple of 256 (MXU
    rows on v6e/v7x), then 128, then 8; otherwise pad S up to a tile multiple
    (padded rows never reach the pooling windows)."""
    if S <= max_tile:
        return S, S
    for step in (256, 128, 8):
        t = (max_tile // step) * step
        while t >= step:
            if S % t == 0:
                return S, t
            t -= step
    S_pad = -(-S // max_tile) * max_tile
    return S_pad, max_tile


def fused_encoder(y0, params, tm):
    S_pad, D = y0.shape
    L, _, FF = params["w1"].shape

    # Resident-footprint estimate (weights double-buffered conservatively),
    # plus activation tiles and the [tm, FF] feed-forward temporaries.
    vmem_est = (
        2 * (L * (D * D + 2 * D * FF) * 2 + L * (FF + 8 * D) * 4)
        + 4 * tm * D * 4
        + tm * FF * (4 + 2)
        + 6 * tm * D * 4
    )
    vmem_limit = max(32 << 20, min(int(vmem_est * 1.25) + (2 << 20), 64 << 20))

    return pl.pallas_call(
        _fused_encoder_kernel,
        out_shape=jax.ShapeDtypeStruct((S_pad, D), jnp.float32),
        grid_spec=pltpu.PrefetchScalarGridSpec(
            num_scalar_prefetch=0,
            grid=(S_pad // tm, L),
            in_specs=[
                pl.BlockSpec((tm, D), lambda i, l: (i, 0)),        # y tile
                # whole weight stacks, VMEM-resident (constant index map):
                pl.BlockSpec((L, D, D), lambda i, l: (0, 0, 0)),   # wvo
                pl.BlockSpec((L, D, FF), lambda i, l: (0, 0, 0)),  # w1
                pl.BlockSpec((L, FF, D), lambda i, l: (0, 0, 0)),  # w2
                pl.BlockSpec((L, 1, FF), lambda i, l: (0, 0, 0)),  # b1
                pl.BlockSpec((L, 8, D), lambda i, l: (0, 0, 0)),   # packed vecs
            ],
            out_specs=pl.BlockSpec((tm, D), lambda i, l: (i, 0)),
        ),
        compiler_params=pltpu.CompilerParams(
            dimension_semantics=("parallel", "arbitrary"),
            vmem_limit_bytes=vmem_limit),
    )(y0, params["wvo"], params["w1"], params["w2"], params["b1"], params["vecd"])


# ---------------------------------------------------------------------------
# Static adaptive-pooling window helpers (same index arithmetic as PyTorch).
# ---------------------------------------------------------------------------
def _adaptive_windows(in_size, out_size):
    idx = np.arange(out_size)
    starts = (idx * in_size) // out_size                   # floor
    ends = -((-(idx + 1) * in_size) // out_size)           # ceil
    return starts, ends


# ---------------------------------------------------------------------------
# Kernel 2: AdaptiveMaxPool2d + AdaptiveAvgPool2d + latent_linear, lane-dense
# [3*dim_cov, dim_out] output.  Uniform windows collapse to reshape+max;
# otherwise static contiguous slices (never touching padded rows).
# ---------------------------------------------------------------------------
def _make_pool_head_kernel(S, S_pad, hs, he, ws, we, dim_cov, dim_out):
    hs = [int(v) for v in hs]
    he = [int(v) for v in he]
    ws = [int(v) for v in ws]
    we = [int(v) for v in we]

    def kernel(y_ref, ah_ref, awT_ref, lce_ref, wlin_ref, blin_ref, o_ref):
        y = y_ref[...]                                         # [S_pad, D]
        D = y.shape[1]

        # ---- AdaptiveMaxPool2d: row windows then column windows ----
        if S_pad == S and S % dim_cov == 0:
            rowmax = jnp.max(y.reshape(dim_cov, S // dim_cov, D), axis=1)
        else:
            rowmax = jnp.concatenate(
                [jnp.max(y[hs[i]:he[i], :], axis=0, keepdims=True)
                 for i in range(dim_cov)], axis=0)             # [dim_cov, D]
        if D == dim_out:
            xmax = rowmax
        elif D % dim_out == 0:
            xmax = jnp.max(rowmax.reshape(dim_cov, dim_out, D // dim_out), axis=2)
        else:
            xmax = jnp.concatenate(
                [jnp.max(rowmax[:, ws[j]:we[j]], axis=1, keepdims=True)
                 for j in range(dim_out)], axis=1)             # [dim_cov, dim_out]

        # ---- AdaptiveAvgPool2d as two small matmuls (static avg matrices;
        #      padded columns of ah are zero, so pad rows never contribute) ----
        xavg = jnp.dot(
            jnp.dot(ah_ref[...], y, preferred_element_type=jnp.float32,
                    precision=jax.lax.Precision.HIGHEST),
            awT_ref[...], preferred_element_type=jnp.float32,
            precision=jax.lax.Precision.HIGHEST)               # [dim_cov, dim_out]

        # ---- latent_linear(tnm * lce) ----
        xcov = jnp.dot(lce_ref[...], wlin_ref[...],
                       preferred_element_type=jnp.float32,
                       precision=jax.lax.Precision.HIGHEST) + blin_ref[...]

        # lane-dense single store; reshaped to (3, dim_cov, dim_out) in wrapper
        o_ref[...] = jnp.concatenate([xmax, xavg, xcov], axis=0)

    return kernel


# ---------------------------------------------------------------------------
# Full forward (thin JAX glue around the two Pallas kernels).
# ---------------------------------------------------------------------------
def latent_encoding_forward(x, tnm, params):
    dim_cov, dim_in = params["lce"].shape
    dim_out = params["wlin"].shape[1]

    lce_scaled = tnm * params["lce"]                           # [dim_cov, dim_in]
    y0 = jnp.concatenate([x, lce_scaled], axis=0)              # [S, dim_in]
    S = y0.shape[0]
    S_pad, tm = _row_tiling(S)
    if S_pad != S:
        y0 = jnp.pad(y0, ((0, S_pad - S), (0, 0)))             # pad rows are inert

    y = fused_encoder(y0, params, tm)                          # [S_pad, dim_in]

    # TODO(synk): for very large S the pool head could be tiled along rows (or
    # fused into the encoder's last layer step) to avoid the [S_pad, D] VMEM
    # slab and one HBM round-trip; kept as a single tiny launch here.
    hs, he = _adaptive_windows(S, dim_cov)
    ws, we = _adaptive_windows(dim_in, dim_out)
    avg_h = np.zeros((dim_cov, S_pad), np.float32)
    for i in range(dim_cov):
        avg_h[i, hs[i]:he[i]] = 1.0 / float(he[i] - hs[i])
    avg_wT = np.zeros((dim_in, dim_out), np.float32)
    for j in range(dim_out):
        avg_wT[ws[j]:we[j], j] = 1.0 / float(we[j] - ws[j])

    args = (y, jnp.asarray(avg_h), jnp.asarray(avg_wT),
            lce_scaled, params["wlin"], params["blin"])
    out2d = pl.pallas_call(
        _make_pool_head_kernel(S, S_pad, hs, he, ws, we, dim_cov, dim_out),
        out_shape=jax.ShapeDtypeStruct((3 * dim_cov, dim_out), jnp.float32),
        in_specs=[pl.BlockSpec(memory_space=pltpu.MemorySpace.VMEM)] * len(args),
        out_specs=pl.BlockSpec(memory_space=pltpu.MemorySpace.VMEM),
    )(*args)

    return out2d.reshape(3, dim_cov, dim_out)


# ---------------------------------------------------------------------------
# Deterministic parameter init (shapes per the module's __init__), laid out for
# the fused kernel: weights stacked over layers, pre-transposed to [in, out],
# stored bf16; attention V/out projections folded (exact for seq_len == 1);
# all tiny per-layer vectors packed into one [L, 8, D] f32 array with row order
# [bvo, b2, g1, be1, g2, be2, pad, pad].
# ---------------------------------------------------------------------------
def init_params(key, dim_in, dim_cov, dim_out, ff=2048, num_layers=6):
    # lce buffer, exactly as in __init__
    position = jnp.arange(dim_cov, dtype=jnp.float32)[:, None]
    div_term = jnp.exp(jnp.arange(0, dim_in, 2, dtype=jnp.float32)
                       * (-math.log(10000.0) / dim_in))
    ang = position * div_term
    lce = jnp.zeros((dim_cov, dim_in), jnp.float32)
    lce = lce.at[:, 0::2].set(jnp.sin(ang))
    lce = lce.at[:, 1::2].set(jnp.cos(ang))

    wvo_l, w1_l, w2_l, b1_l, vd_l = [], [], [], [], []
    for _ in range(num_layers):
        key, *ks = jax.random.split(key, 7)
        in_proj_w = 0.05 * jax.random.normal(ks[0], (3 * dim_in, dim_in), jnp.float32)
        in_proj_b = 0.05 * jax.random.normal(ks[1], (3 * dim_in,), jnp.float32)
        out_proj_w = 0.05 * jax.random.normal(ks[2], (dim_in, dim_in), jnp.float32)
        out_proj_b = 0.05 * jax.random.normal(ks[3], (dim_in,), jnp.float32)
        lin1_w = 0.05 * jax.random.normal(ks[4], (ff, dim_in), jnp.float32)
        lin1_b = jnp.zeros((ff,), jnp.float32)
        lin2_w = 0.05 * jax.random.normal(ks[5], (dim_in, ff), jnp.float32)
        lin2_b = jnp.zeros((dim_in,), jnp.float32)
        g1 = jnp.ones((dim_in,), jnp.float32)
        be1 = jnp.zeros((dim_in,), jnp.float32)
        g2 = jnp.ones((dim_in,), jnp.float32)
        be2 = jnp.zeros((dim_in,), jnp.float32)

        # seq_len == 1 attention => out_proj(v_proj(x)); fold the two projections
        wv = in_proj_w[2 * dim_in:].T                  # [D, D]
        bv = in_proj_b[2 * dim_in:]                    # [D]
        wo = out_proj_w.T                              # [D, D]
        wvo_l.append(wv @ wo)                          # [D, D] (f32, cast later)
        bvo = bv @ wo + out_proj_b                     # [D]

        w1_l.append(lin1_w.T)                          # [D, FF]
        w2_l.append(lin2_w.T)                          # [FF, D]
        b1_l.append(lin1_b[None, :])                   # [1, FF]
        vd_l.append(jnp.stack([bvo, lin2_b, g1, be1, g2, be2,
                               jnp.zeros_like(bvo), jnp.zeros_like(bvo)], axis=0))

    key, k1, k2 = jax.random.split(key, 3)
    lat_w = 0.05 * jax.random.normal(k1, (dim_out, dim_in), jnp.float32)
    lat_b = 0.05 * jax.random.normal(k2, (dim_out,), jnp.float32)

    return dict(
        lce=lce,
        wvo=jnp.stack(wvo_l).astype(jnp.bfloat16),     # [L, D, D]
        w1=jnp.stack(w1_l).astype(jnp.bfloat16),       # [L, D, FF]
        w2=jnp.stack(w2_l).astype(jnp.bfloat16),       # [L, FF, D]
        b1=jnp.stack(b1_l),                            # [L, 1, FF] f32
        vecd=jnp.stack(vd_l),                          # [L, 8, D]  f32
        wlin=lat_w.T,                                  # [D, dim_out]
        blin=lat_b[None, :],                           # [1, dim_out]
    )


# ---------------------------------------------------------------------------
# Reference: same math at the same MXU precision (bf16 operands, f32 accumulate)
# for the transformer; exact numpy adaptive pooling for the head.
# ---------------------------------------------------------------------------
def reference_forward(x, tnm, params):
    lce_scaled = tnm * params["lce"]
    y = jnp.concatenate([x, lce_scaled], axis=0)
    L = params["wvo"].shape[0]
    for l in range(L):
        wvo, w1, w2 = params["wvo"][l], params["w1"][l], params["w2"][l]
        b1 = params["b1"][l]
        vd = params["vecd"][l]
        bvo, b2, g1, be1, g2, be2 = (vd[k][None, :] for k in range(6))
        attn = jnp.dot(y.astype(jnp.bfloat16), wvo,
                       preferred_element_type=jnp.float32) + bvo
        h = y + attn
        h = ((h - h.mean(-1, keepdims=True))
             * jax.lax.rsqrt(h.var(-1, keepdims=True) + LN_EPS)) * g1 + be1
        f = jnp.dot(h.astype(jnp.bfloat16), w1, preferred_element_type=jnp.float32) + b1
        f = jnp.maximum(f, 0.0)
        f = jnp.dot(f.astype(jnp.bfloat16), w2, preferred_element_type=jnp.float32) + b2
        z = h + f
        y = ((z - z.mean(-1, keepdims=True))
             * jax.lax.rsqrt(z.var(-1, keepdims=True) + LN_EPS)) * g2 + be2

    y_np = np.asarray(y)
    S, D = y_np.shape
    dim_cov = params["lce"].shape[0]
    dim_out = params["wlin"].shape[1]
    hs, he = _adaptive_windows(S, dim_cov)
    ws, we = _adaptive_windows(D, dim_out)
    xmax = np.empty((dim_cov, dim_out), np.float32)
    xavg = np.empty((dim_cov, dim_out), np.float32)
    for i in range(dim_cov):
        for j in range(dim_out):
            win = y_np[hs[i]:he[i], ws[j]:we[j]]
            xmax[i, j] = win.max()
            xavg[i, j] = win.mean()
    xcov = (np.asarray(lce_scaled, np.float32) @ np.asarray(params["wlin"], np.float32)
            + np.asarray(params["blin"], np.float32))
    return np.stack([xmax, xavg, xcov.astype(np.float32)], axis=0)


if __name__ == "__main__":
    # small shapes consistent with the module:
    #   dim_in % nhead(=8) == 0; feature axes kept lane-dense (128).
    dim_in, dim_cov, dim_out = 128, 16, 128
    seq_len, ff, num_layers = 48, 2048, 6
    tnm = 3.0  # TNM stage scalar (1-10 in the original module)

    key = jax.random.PRNGKey(0)
    kx, kp = jax.random.split(key)
    x = jax.random.normal(kx, (seq_len, dim_in), jnp.float32)
    params = init_params(kp, dim_in, dim_cov, dim_out, ff=ff, num_layers=num_layers)

    fwd = jax.jit(latent_encoding_forward)
    out = jax.block_until_ready(fwd(x, tnm, params))
    assert out.shape == (3, dim_cov, dim_out), out.shape

    ref = reference_forward(x, tnm, params)
    np.testing.assert_allclose(np.asarray(out), np.asarray(ref), rtol=2e-2, atol=2e-2)

    print("KERNEL_OK")
</pallas_src>

<mosaic_0001>
module attributes {stable_mosaic.version = 11 : i64} {
  func.func @_fused_encoder_kernel(%arg0: i32, %arg1: i32, %arg2: memref<64x128xf32, #tpu.memory_space<vmem>>, %arg3: memref<6x128x128xbf16, #tpu.memory_space<vmem>>, %arg4: memref<6x128x2048xbf16, #tpu.memory_space<vmem>>, %arg5: memref<6x2048x128xbf16, #tpu.memory_space<vmem>>, %arg6: memref<6x1x2048xf32, #tpu.memory_space<vmem>>, %arg7: memref<6x8x128xf32, #tpu.memory_space<vmem>>, %arg8: memref<64x128xf32, #tpu.memory_space<vmem>>) attributes {dimension_semantics = [#tpu.dimension_semantics<parallel>, #tpu.dimension_semantics<arbitrary>], iteration_bounds = array<i64: 1, 6>, scalar_prefetch = 0 : i64, scratch_operands = 0 : i64, tpu.core_type = #tpu.core_type<tc>, window_params = [{transform_indices = @transform_0, window_bounds = array<i64: 64, 128>}, {pipeline_mode = #tpu.pipeline_mode<synchronous>, transform_indices = @transform_1, window_bounds = array<i64: 6, 128, 128>}, {pipeline_mode = #tpu.pipeline_mode<synchronous>, transform_indices = @transform_2, window_bounds = array<i64: 6, 128, 2048>}, {pipeline_mode = #tpu.pipeline_mode<synchronous>, transform_indices = @transform_3, window_bounds = array<i64: 6, 2048, 128>}, {pipeline_mode = #tpu.pipeline_mode<synchronous>, transform_indices = @transform_4, window_bounds = array<i64: 6, 1, 2048>}, {pipeline_mode = #tpu.pipeline_mode<synchronous>, transform_indices = @transform_5, window_bounds = array<i64: 6, 8, 128>}, {transform_indices = @transform_6, window_bounds = array<i64: 64, 128>}]} {
    %c0_i32 = arith.constant 0 : i32
    %0 = arith.cmpi eq, %arg1, %c0_i32 : i32
    %1 = arith.extui %0 : i1 to i32
    %c0_i32_0 = arith.constant 0 : i32
    %2 = arith.cmpi ne, %1, %c0_i32_0 : i32
    scf.if %2 {
      %c0_27 = arith.constant 0 : index
      %c0_28 = arith.constant 0 : index
      %86 = vector.load %arg2[%c0_27, %c0_28] : memref<64x128xf32, #tpu.memory_space<vmem>>, vector<64x128xf32>
      %c0_29 = arith.constant 0 : index
      %c0_30 = arith.constant 0 : index
      %87 = vector.load %arg8[%c0_29, %c0_30] : memref<64x128xf32, #tpu.memory_space<vmem>>, vector<64x128xf32>
      tpu.vector_store %arg8[%c0_29, %c0_30], %86 {strides = array<i32>} : memref<64x128xf32, #tpu.memory_space<vmem>>, vector<64x128xf32>,
    } else {
    }
    %c0 = arith.constant 0 : index
    %c0_1 = arith.constant 0 : index
    %3 = vector.load %arg8[%c0, %c0_1] : memref<64x128xf32, #tpu.memory_space<vmem>>, vector<64x128xf32>
    %4 = arith.index_cast %arg1 : i32 to index
    %c0_2 = arith.constant 0 : index
    %c0_3 = arith.constant 0 : index
    %5 = vector.load %arg7[%4, %c0_2, %c0_3] : memref<6x8x128xf32, #tpu.memory_space<vmem>>, vector<1x8x128xf32>
    %6 = vector.shape_cast %5 : vector<1x8x128xf32> to vector<8x128xf32>
    %7 = vector.extract_strided_slice %6 {offsets = [0, 0], sizes = [1, 128], strides = [1, 1]} : vector<8x128xf32> to vector<1x128xf32>
    %8 = vector.extract_strided_slice %6 {offsets = [1, 0], sizes = [1, 128], strides = [1, 1]} : vector<8x128xf32> to vector<1x128xf32>
    %9 = vector.extract_strided_slice %6 {offsets = [2, 0], sizes = [1, 128], strides = [1, 1]} : vector<8x128xf32> to vector<1x128xf32>
    %10 = vector.extract_strided_slice %6 {offsets = [3, 0], sizes = [1, 128], strides = [1, 1]} : vector<8x128xf32> to vector<1x128xf32>
    %11 = vector.extract_strided_slice %6 {offsets = [4, 0], sizes = [1, 128], strides = [1, 1]} : vector<8x128xf32> to vector<1x128xf32>
    %12 = vector.extract_strided_slice %6 {offsets = [5, 0], sizes = [1, 128], strides = [1, 1]} : vector<8x128xf32> to vector<1x128xf32>
    %13 = arith.truncf %3 : vector<64x128xf32> to vector<64x128xbf16>
    %14 = arith.index_cast %arg1 : i32 to index
    %c0_4 = arith.constant 0 : index
    %c0_5 = arith.constant 0 : index
    %15 = vector.load %arg3[%14, %c0_4, %c0_5] : memref<6x128x128xbf16, #tpu.memory_space<vmem>>, vector<1x128x128xbf16>
    %16 = vector.shape_cast %15 : vector<1x128x128xbf16> to vector<128x128xbf16>
    %cst = arith.constant dense<0.000000e+00> : vector<64x128xf32>
    %17 = tpu.matmul %13, %16, %cst {dimension_numbers = #tpu.dot_dimension_numbers<[1], [0], [0], [1], [0, 0, 1, 1], [], []>} : vector<64x128xbf16>, vector<128x128xbf16>, vector<64x128xf32> -> vector<64x128xf32>
    %18 = vector.broadcast %7 : vector<1x128xf32> to vector<64x128xf32>
    %19 = arith.addf %17, %18 : vector<64x128xf32>
    %20 = arith.addf %3, %19 : vector<64x128xf32>
    %cst_6 = arith.constant dense<0.000000e+00> : vector<64xf32>
    %21 = vector.multi_reduction <add>, %20, %cst_6 [1] : vector<64x128xf32> to vector<64xf32>
    %22 = vector.shape_cast %21 : vector<64xf32> to vector<64x1xf32>
    %cst_7 = arith.constant 1.280000e+02 : f32
    %23 = vector.broadcast %cst_7 : f32 to vector<64x1xf32>
    %24 = arith.divf %22, %23 : vector<64x1xf32>
    %25 = vector.broadcast %24 : vector<64x1xf32> to vector<64x128xf32>
    %26 = arith.subf %20, %25 : vector<64x128xf32>
    %27 = arith.mulf %26, %26 : vector<64x128xf32>
    %cst_8 = arith.constant dense<0.000000e+00> : vector<64xf32>
    %28 = vector.multi_reduction <add>, %27, %cst_8 [1] : vector<64x128xf32> to vector<64xf32>
    %29 = vector.shape_cast %28 : vector<64xf32> to vector<64x1xf32>
    %cst_9 = arith.constant 1.280000e+02 : f32
    %30 = vector.broadcast %cst_9 : f32 to vector<64x1xf32>
    %31 = arith.divf %29, %30 : vector<64x1xf32>
    %32 = vector.broadcast %24 : vector<64x1xf32> to vector<64x128xf32>
    %33 = arith.subf %20, %32 : vector<64x128xf32>
    %cst_10 = arith.constant 9.99999974E-6 : f32
    %34 = vector.broadcast %cst_10 : f32 to vector<64x1xf32>
    %35 = arith.addf %31, %34 : vector<64x1xf32>
    %36 = math.rsqrt %35 : vector<64x1xf32>
    %37 = vector.broadcast %36 : vector<64x1xf32> to vector<64x128xf32>
    %38 = arith.mulf %33, %37 : vector<64x128xf32>
    %39 = vector.broadcast %9 : vector<1x128xf32> to vector<64x128xf32>
    %40 = arith.mulf %38, %39 : vector<64x128xf32>
    %41 = vector.broadcast %10 : vector<1x128xf32> to vector<64x128xf32>
    %42 = arith.addf %40, %41 : vector<64x128xf32>
    %43 = arith.truncf %42 : vector<64x128xf32> to vector<64x128xbf16>
    %44 = arith.index_cast %arg1 : i32 to index
    %c0_11 = arith.constant 0 : index
    %c0_12 = arith.constant 0 : index
    %45 = vector.load %arg4[%44, %c0_11, %c0_12] : memref<6x128x2048xbf16, #tpu.memory_space<vmem>>, vector<1x128x2048xbf16>
    %46 = vector.shape_cast %45 : vector<1x128x2048xbf16> to vector<128x2048xbf16>
    %cst_13 = arith.constant dense<0.000000e+00> : vector<64x2048xf32>
    %47 = tpu.matmul %43, %46, %cst_13 {dimension_numbers = #tpu.dot_dimension_numbers<[1], [0], [0], [1], [0, 0, 1, 1], [], []>} : vector<64x128xbf16>, vector<128x2048xbf16>, vector<64x2048xf32> -> vector<64x2048xf32>
    %48 = arith.index_cast %arg1 : i32 to index
    %c0_14 = arith.constant 0 : index
    %c0_15 = arith.constant 0 : index
    %49 = vector.load %arg6[%48, %c0_14, %c0_15] : memref<6x1x2048xf32, #tpu.memory_space<vmem>>, vector<1x1x2048xf32>
    %50 = vector.shape_cast %49 : vector<1x1x2048xf32> to vector<1x2048xf32>
    %51 = vector.broadcast %50 : vector<1x2048xf32> to vector<64x2048xf32>
    %52 = arith.addf %47, %51 : vector<64x2048xf32>
    %cst_16 = arith.constant 0.000000e+00 : f32
    %53 = vector.broadcast %cst_16 : f32 to vector<64x2048xf32>
    %54 = arith.maximumf %52, %53 : vector<64x2048xf32>
    %55 = arith.truncf %54 : vector<64x2048xf32> to vector<64x2048xbf16>
    %56 = arith.index_cast %arg1 : i32 to index
    %c0_17 = arith.constant 0 : index
    %c0_18 = arith.constant 0 : index
    %57 = vector.load %arg5[%56, %c0_17, %c0_18] : memref<6x2048x128xbf16, #tpu.memory_space<vmem>>, vector<1x2048x128xbf16>
    %58 = vector.shape_cast %57 : vector<1x2048x128xbf16> to vector<2048x128xbf16>
    %cst_19 = arith.constant dense<0.000000e+00> : vector<64x128xf32>
    %59 = tpu.matmul %55, %58, %cst_19 {dimension_numbers = #tpu.dot_dimension_numbers<[1], [0], [0], [1], [0, 0, 1, 1], [], []>} : vector<64x2048xbf16>, vector<2048x128xbf16>, vector<64x128xf32> -> vector<64x128xf32>
    %60 = vector.broadcast %8 : vector<1x128xf32> to vector<64x128xf32>
    %61 = arith.addf %59, %60 : vector<64x128xf32>
    %62 = arith.addf %42, %61 : vector<64x128xf32>
    %cst_20 = arith.constant dense<0.000000e+00> : vector<64xf32>
    %63 = vector.multi_reduction <add>, %62, %cst_20 [1] : vector<64x128xf32> to vector<64xf32>
    %64 = vector.shape_cast %63 : vector<64xf32> to vector<64x1xf32>
    %cst_21 = arith.constant 1.280000e+02 : f32
    %65 = vector.broadcast %cst_21 : f32 to vector<64x1xf32>
    %66 = arith.divf %64, %65 : vector<64x1xf32>
    %67 = vector.broadcast %66 : vector<64x1xf32> to vector<64x128xf32>
    %68 = arith.subf %62, %67 : vector<64x128xf32>
    %69 = arith.mulf %68, %68 : vector<64x128xf32>
    %cst_22 = arith.constant dense<0.000000e+00> : vector<64xf32>
    %70 = vector.multi_reduction <add>, %69, %cst_22 [1] : vector<64x128xf32> to vector<64xf32>
    %71 = vector.shape_cast %70 : vector<64xf32> to vector<64x1xf32>
    %cst_23 = arith.constant 1.280000e+02 : f32
    %72 = vector.broadcast %cst_23 : f32 to vector<64x1xf32>
    %73 = arith.divf %71, %72 : vector<64x1xf32>
    %74 = vector.broadcast %66 : vector<64x1xf32> to vector<64x128xf32>
    %75 = arith.subf %62, %74 : vector<64x128xf32>
    %cst_24 = arith.constant 9.99999974E-6 : f32
    %76 = vector.broadcast %cst_24 : f32 to vector<64x1xf32>
    %77 = arith.addf %73, %76 : vector<64x1xf32>
    %78 = math.rsqrt %77 : vector<64x1xf32>
    %79 = vector.broadcast %78 : vector<64x1xf32> to vector<64x128xf32>
    %80 = arith.mulf %75, %79 : vector<64x128xf32>
    %81 = vector.broadcast %11 : vector<1x128xf32> to vector<64x128xf32>
    %82 = arith.mulf %80, %81 : vector<64x128xf32>
    %83 = vector.broadcast %12 : vector<1x128xf32> to vector<64x128xf32>
    %84 = arith.addf %82, %83 : vector<64x128xf32>
    %c0_25 = arith.constant 0 : index
    %c0_26 = arith.constant 0 : index
    %85 = vector.load %arg8[%c0_25, %c0_26] : memref<64x128xf32, #tpu.memory_space<vmem>>, vector<64x128xf32>
    tpu.vector_store %arg8[%c0_25, %c0_26], %84 {strides = array<i32>} : memref<64x128xf32, #tpu.memory_space<vmem>>, vector<64x128xf32>,
    return
  }
  func.func @transform_0(%arg0: i32, %arg1: i32) -> (i32, i32) {
    %c0_i32 = arith.constant 0 : i32
    %c0_i32_0 = arith.constant 0 : i32
    return %arg0, %c0_i32 : i32, i32
  }
  func.func @transform_1(%arg0: i32, %arg1: i32) -> (i32, i32, i32) {
    %c0_i32 = arith.constant 0 : i32
    %c0_i32_0 = arith.constant 0 : i32
    %c0_i32_1 = arith.constant 0 : i32
    %c0_i32_2 = arith.constant 0 : i32
    return %c0_i32, %c0_i32_0, %c0_i32_1 : i32, i32, i32
  }
  func.func @transform_2(%arg0: i32, %arg1: i32) -> (i32, i32, i32) {
    %c0_i32 = arith.constant 0 : i32
    %c0_i32_0 = arith.constant 0 : i32
    %c0_i32_1 = arith.constant 0 : i32
    %c0_i32_2 = arith.constant 0 : i32
    return %c0_i32, %c0_i32_0, %c0_i32_1 : i32, i32, i32
  }
  func.func @transform_3(%arg0: i32, %arg1: i32) -> (i32, i32, i32) {
    %c0_i32 = arith.constant 0 : i32
    %c0_i32_0 = arith.constant 0 : i32
    %c0_i32_1 = arith.constant 0 : i32
    %c0_i32_2 = arith.constant 0 : i32
    return %c0_i32, %c0_i32_0, %c0_i32_1 : i32, i32, i32
  }
  func.func @transform_4(%arg0: i32, %arg1: i32) -> (i32, i32, i32) {
    %c0_i32 = arith.constant 0 : i32
    %c0_i32_0 = arith.constant 0 : i32
    %c0_i32_1 = arith.constant 0 : i32
    %c0_i32_2 = arith.constant 0 : i32
    return %c0_i32, %c0_i32_0, %c0_i32_1 : i32, i32, i32
  }
  func.func @transform_5(%arg0: i32, %arg1: i32) -> (i32, i32, i32) {
    %c0_i32 = arith.constant 0 : i32
    %c0_i32_0 = arith.constant 0 : i32
    %c0_i32_1 = arith.constant 0 : i32
    %c0_i32_2 = arith.constant 0 : i32
    return %c0_i32, %c0_i32_0, %c0_i32_1 : i32, i32, i32
  }
  func.func @transform_6(%arg0: i32, %arg1: i32) -> (i32, i32) {
    %c0_i32 = arith.constant 0 : i32
    %c0_i32_0 = arith.constant 0 : i32
    return %arg0, %c0_i32 : i32, i32
  }
}

module attributes {stable_mosaic.version = 11 : i64} {
  func.func @kernel(%arg0: memref<64x128xf32, #tpu.memory_space<vmem>>, %arg1: memref<16x64xf32, #tpu.memory_space<vmem>>, %arg2: memref<128x128xf32, #tpu.memory_space<vmem>>, %arg3: memref<16x128xf32, #tpu.memory_space<vmem>>, %arg4: memref<128x128xf32, #tpu.memory_space<vmem>>, %arg5: memref<1x128xf32, #tpu.memory_space<vmem>>, %arg6: memref<48x128xf32, #tpu.memory_space<vmem>>) attributes {dimension_semantics = [], scalar_prefetch = 0 : i64, scratch_operands = 0 : i64, tpu.core_type = #tpu.core_type<tc>} {
    %c0 = arith.constant 0 : index
    %c0_0 = arith.constant 0 : index
    %0 = vector.load %arg0[%c0, %c0_0] : memref<64x128xf32, #tpu.memory_space<vmem>>, vector<64x128xf32>
    %1 = vector.shape_cast %0 : vector<64x128xf32> to vector<16x4x128xf32>
    %cst = arith.constant dense<0xFF800000> : vector<16x128xf32>
    %2 = vector.multi_reduction <maximumf>, %1, %cst [1] : vector<16x4x128xf32> to vector<16x128xf32>
    %c0_1 = arith.constant 0 : index
    %c0_2 = arith.constant 0 : index
    %3 = vector.load %arg1[%c0_1, %c0_2] : memref<16x64xf32, #tpu.memory_space<vmem>>, vector<16x64xf32>
    %cst_3 = arith.constant dense<0.000000e+00> : vector<16x128xf32>
    %4 = tpu.matmul %3, %0, %cst_3 {dimension_numbers = #tpu.dot_dimension_numbers<[1], [0], [0], [1], [0, 0, 1, 1], [], []>, precision = #tpu.contract_precision<fp32>} : vector<16x64xf32>, vector<64x128xf32>, vector<16x128xf32> -> vector<16x128xf32>
    %c0_4 = arith.constant 0 : index
    %c0_5 = arith.constant 0 : index
    %5 = vector.load %arg2[%c0_4, %c0_5] : memref<128x128xf32, #tpu.memory_space<vmem>>, vector<128x128xf32>
    %cst_6 = arith.constant dense<0.000000e+00> : vector<16x128xf32>
    %6 = tpu.matmul %4, %5, %cst_6 {dimension_numbers = #tpu.dot_dimension_numbers<[1], [0], [0], [1], [0, 0, 1, 1], [], []>, precision = #tpu.contract_precision<fp32>} : vector<16x128xf32>, vector<128x128xf32>, vector<16x128xf32> -> vector<16x128xf32>
    %c0_7 = arith.constant 0 : index
    %c0_8 = arith.constant 0 : index
    %7 = vector.load %arg3[%c0_7, %c0_8] : memref<16x128xf32, #tpu.memory_space<vmem>>, vector<16x128xf32>
    %c0_9 = arith.constant 0 : index
    %c0_10 = arith.constant 0 : index
    %8 = vector.load %arg4[%c0_9, %c0_10] : memref<128x128xf32, #tpu.memory_space<vmem>>, vector<128x128xf32>
    %cst_11 = arith.constant dense<0.000000e+00> : vector<16x128xf32>
    %9 = tpu.matmul %7, %8, %cst_11 {dimension_numbers = #tpu.dot_dimension_numbers<[1], [0], [0], [1], [0, 0, 1, 1], [], []>, precision = #tpu.contract_precision<fp32>} : vector<16x128xf32>, vector<128x128xf32>, vector<16x128xf32> -> vector<16x128xf32>
    %c0_12 = arith.constant 0 : index
    %c0_13 = arith.constant 0 : index
    %10 = vector.load %arg5[%c0_12, %c0_13] : memref<1x128xf32, #tpu.memory_space<vmem>>, vector<1x128xf32>
    %11 = vector.broadcast %10 : vector<1x128xf32> to vector<16x128xf32>
    %12 = arith.addf %9, %11 : vector<16x128xf32>
    %13 = tpu.concatenate %2, %6, %12 in 0 : vector<16x128xf32>, vector<16x128xf32>, vector<16x128xf32> -> vector<48x128xf32>
    %c0_14 = arith.constant 0 : index
    %c0_15 = arith.constant 0 : index
    %14 = vector.load %arg6[%c0_14, %c0_15] : memref<48x128xf32, #tpu.memory_space<vmem>>, vector<48x128xf32>
    tpu.vector_store %arg6[%c0_14, %c0_15], %13 {strides = array<i32>} : memref<48x128xf32, #tpu.memory_space<vmem>>, vector<48x128xf32>,
    return
  }
}

</mosaic_0001>

<bundles_post_ra>
// kernel: latent_encoding_forward.3
= control target key start
LH: loop header
LB: loop body
LE: loop exit
PB: predicated region body
PF: predicated region fallthrough
CT: control target
= control target key end

     0   :  { %11 = vsyncpa [#allocation3], 0  ;;  %s2242_s0 = inlined_call_operand.vmem [shape: f32[64,128], index: 0, kind: input, shape index: {}]   ;;  %s2243_s1 = inlined_call_operand.hbm [shape: f32[16,64], index: 1, kind: input, shape index: {}]   ;;  %s2244_s2 = inlined_call_operand.hbm [shape: f32[128,128], index: 2, kind: input, shape index: {}]   ;;  %s2245_s3 = inlined_call_operand.vmem [shape: f32[16,128], index: 3, kind: input, shape index: {}]   ;;  %s2246_s4 = inlined_call_operand.hbm [shape: f32[128,128], index: 4, kind: input, shape index: {}]   ;;  %s2247_s5 = inlined_call_operand.hbm [shape: f32[1,128], index: 5, kind: input, shape index: {}]   ;;  %s2248_s6 = inlined_call_operand.hbm [shape: f32[48,128], index: 6, kind: output, shape index: {}]  }
   0x1   :  { %12 = vsyncpa [#allocation6], 0 }
   0x2   :  { %13 = vsyncpa [#allocation9], 0 }
   0x3   :  { %14 = vsyncpa [#allocation4], 0  ;;  %s34_s23 = sshll.u32 %s2244_s2, 4  ;;  %s1495_s24 = smov [#allocation5]   ;;  %s35_s23 = int_to_ptr.hbm [resolvable:$true] %s34_s23 }
   0x4   :  { %s36_s25 = sshll.u32 %s1495_s24, 4  ;;  %s21_s28 = sshll.u32 %s2243_s1, 4  ;;  %s37_s25 = int_to_ptr.vmem [resolvable:$true] %s36_s25  ;;  %s22_s28 = int_to_ptr.hbm [resolvable:$true] %s21_s28 }
   0x5   :  { %s1496_s29 = smov 128   ;;  %s1497_s30 = smov 8  }
   0x6   :  { %42 = dma.hbm_to_vmem [thread:$0]  %s35_s23, 2048, %s37_s25, [#allocation6], %s1496_s29, %s1496_s29, %s1497_s30  }
   0x7   :  { %s1498_s7 = smov [#allocation2]   ;;  %s49_s2 = sshll.u32 %s2246_s4, 4  ;;  %s50_s2 = int_to_ptr.hbm [resolvable:$true] %s49_s2 }
   0x8   :  { %s23_s8 = sshll.u32 %s1498_s7, 4  ;;  %s63_s12 = sshll.u32 %s2247_s5, 4  ;;  %s24_s8 = int_to_ptr.vmem [resolvable:$true] %s23_s8  ;;  %s64_s12 = int_to_ptr.hbm [resolvable:$true] %s63_s12 }
   0x9   :  { %29 = dma.hbm_to_vmem [thread:$0]  %s22_s28, 256, %s24_s8, [#allocation3], %s1496_s29, %s1496_s29, %s1497_s30  }
   0xa   :  { %s1499_s13 = smov [#allocation7]   ;;  %s1500_s15 = smov [#allocation8]  }
   0xb   :  { %s51_s14 = sshll.u32 %s1499_s13, 4  ;;  %s65_s4 = sshll.u32 %s1500_s15, 4  ;;  %s52_s14 = int_to_ptr.vmem [resolvable:$true] %s51_s14  ;;  %s66_s4 = int_to_ptr.vmem [resolvable:$true] %s65_s4 }
   0xc   :  { %57 = dma.hbm_to_vmem [thread:$0]  %s50_s2, 2048, %s52_s14, [#allocation6], %s1496_s29, %s1496_s29, %s1497_s30  }
   0xd   :  { %68 = dma.hbm_to_vmem [thread:$0]  %s64_s12, 16, %s66_s4, [#allocation9]  }
   0xe   :  { %1487 = dma.done.wait [#allocation3], 256  }
   0xf   :  { %1488 = vsyncadd [#allocation3], 4294967040 }
  0x10   :  { %1489 = dma.done.wait [#allocation6], 4096  }
  0x11   :  { %1490 = vsyncadd [#allocation6], 4294963200 }
  0x12   :  { %1491 = dma.done.wait [#allocation9], 16  }
  0x13   :  { %1492 = vsyncadd [#allocation9], 4294967280  ;;  %v92_v0 = vld [vmem:[%s2242_s0 + $0x38] sm:$0xff]  ;;  %vm117_vm0 = vcmask 1043456   ;;  %v91_v1 = vld [vmem:[%s2242_s0 + $0x30] sm:$0xff]  ;;  %vm1305_vm1 = vcmask 1041409  }
  0x14   :  { %v1564_v2 = vand.u32 4294901760, %v92_v0  ;;  %v90_v3 = vld [vmem:[%s2242_s0 + $0x28] sm:$0xff]  ;;  %v1569_v4 = vand.u32 4294901760, %v91_v1  ;;  %v89_v12 = vld [vmem:[%s2242_s0 + $0x20] sm:$0xff]  ;;  %v88_v27 = vld [vmem:[%s2242_s0 + $0x18] sm:$0xff]  ;;  %vm1307_vm2 = vcmask 1042434  }
  0x15   :  { %v106_v5 = vrot.slane %v90_v3, 4  ;;  %v188_v6 = vsel %vm117_vm0, %v90_v3, -inf  ;;  %v1576_v9 = vand.u32 4294901760, %v90_v3  ;;  %v105_v14 = vrot.slane %v89_v12, 4  ;;  %v87_v38 = vld [vmem:[%s2242_s0 + $0x10] sm:$0xff]  ;;  %v86_v48 = vld [vmem:[%s2242_s0 + $0x8] sm:$0xff] }
  0x16   :  { %248 = vmatpush.msra.mxu0 %v1564_v2  ;;  %397 = vmatpush.msra.mxu3 %v1564_v2  ;;  %v189_v7 = vrot.slane %v188_v6, 4  ;;  %v1579_v10 = vsub.f32 %v92_v0, %v1564_v2  ;;  %v174_v15 = vsel %vm117_vm0, %v89_v12, -inf  ;;  %v1593_v28 = vand.u32 4294901760, %v89_v12  ;;  %v85_v0 = vld [vmem:[%s2242_s0] sm:$0xff]  ;;  %s1340_s19 = sshll.u32 %s2248_s6, 4  ;;  %s1341_s19 = int_to_ptr.hbm [resolvable:$true] %s1340_s19 }
  0x17   :  { %v195_v8 = vsel %vm117_vm0, %v106_v5, -inf  ;;  %v175_v18 = vrot.slane %v174_v15, 4  ;;  %v181_v19 = vsel %vm117_vm0, %v105_v14, -inf  ;;  %v1596_v31 = vsub.f32 %v91_v1, %v1569_v4 }
  0x18   :  { %250 = vmatpush.msra.mxu0 %v1569_v4  ;;  %399 = vmatpush.msra.mxu3 %v1569_v4  ;;  %v190_v11 = vmax.f32 %v188_v6, %v189_v7  ;;  %v196_v13 = vrot.slane %v195_v8, 4  ;;  %v182_v22 = vrot.slane %v181_v19, 4  ;;  %v1599_v33 = vand.u32 4294901760, %v88_v27 }
  0x19   :  { %355 = vmatpush.msra.mxu2 %v1579_v10  ;;  %v176_v21 = vmax.f32 %v174_v15, %v175_v18  ;;  %v290_v34 = vand.u32 4294901760, %v1579_v10  ;;  %v1612_v40 = vsub.f32 %v90_v3, %v1576_v9  ;;  %v1616_v45 = vand.u32 4294901760, %v87_v38 }
  0x1a   :  { %252 = vmatpush.msra.mxu0 %v1576_v9  ;;  %v191_v16 = vrot.slane %v190_v11, 2  ;;  %401 = vmatpush.msra.mxu3 %v1576_v9  ;;  %v197_v17 = vmax.f32 %v195_v8, %v196_v13  ;;  %v183_v26 = vmax.f32 %v181_v19, %v182_v22  ;;  %vm1309_vm3 = vcmask 1043459   ;;  %v230_v13 = vld [vmem:[#allocation2] sm:$0xff] }
  0x1b   :  { %v177_v25 = vrot.slane %v176_v21, 2  ;;  %358 = vmatpush.msra.mxu2 %v1596_v31  ;;  %v291_v39 = vsub.f32 %v1579_v10, %v290_v34  ;;  %v296_v49 = vand.u32 4294901760, %v1596_v31  ;;  %v1624_v50 = vsub.f32 %v89_v12, %v1593_v28 }
  0x1c   :  { %v198_v20 = vrot.slane %v197_v17, 2  ;;  %v192_v23 = vmax.f32 %v190_v11, %v191_v16  ;;  %v184_v30 = vrot.slane %v183_v26, 2  ;;  %254 = vmatpush.msra.mxu0 %v1593_v28  ;;  %403 = vmatpush.msra.mxu3 %v1593_v28  ;;  %v102_v51 = vrot.slane %v86_v48, 4 }
  0x1d   :  { %v178_v29 = vmax.f32 %v176_v21, %v177_v25  ;;  %v292_v44 = vand.u32 4294901760, %v291_v39  ;;  %361 = vmatpush.msra.mxu2 %v1612_v40  ;;  %v297_v54 = vsub.f32 %v1596_v31, %v296_v49  ;;  %v132_v55 = vsel %vm117_vm0, %v86_v48, -inf }
  0x1e   :  { %v199_v24 = vmax.f32 %v197_v17, %v198_v20  ;;  %v193_v32 = vrot.slane %v192_v23, 1  ;;  %v185_v37 = vmax.f32 %v183_v26, %v184_v30  ;;  %256 = vmatpush.msra.mxu0 %v1599_v33  ;;  %405 = vmatpush.msra.mxu3 %v1599_v33  ;;  %v133_v58 = vrot.slane %v132_v55, 4 }
  0x1f   :  { %v179_v36 = vrot.slane %v178_v29, 1  ;;  %293 = vmatpush.msra.mxu1 %v292_v44  ;;  %364 = vmatpush.msra.mxu2 %v1624_v50  ;;  %v298_v57 = vand.u32 4294901760, %v297_v54  ;;  %v139_v59 = vsel %vm117_vm0, %v102_v51, -inf  ;;  %v1636_v62 = vand.u32 4294901760, %v86_v48 }
  0x20   :  { %v200_v35 = vrot.slane %v199_v24, 1  ;;  %v186_v42 = vrot.slane %v185_v37, 1  ;;  %v194_v43 = vmax.f32 %v192_v23, %v193_v32  ;;  %258 = vmatpush.msra.mxu0 %v1616_v45  ;;  %407 = vmatpush.msra.mxu3 %v1616_v45  ;;  %v140_v60 = vrot.slane %v139_v59, 4 }
  0x21   :  { %v180_v41 = vmax.f32 %v178_v29, %v179_v36  ;;  %299 = vmatpush.msra.mxu1 %v298_v57  ;;  %v134_v61 = vmax.f32 %v132_v55, %v133_v58  ;;  %v302_v63 = vand.u32 4294901760, %v1612_v40  ;;  %v1643_v3 = vsub.f32 %v88_v27, %v1599_v33  ;;  %v522_v55 = vld [vmem:[#allocation5 + $0x78] sm:$0xff]  ;;  %v521_v57 = vld [vmem:[#allocation5 + $0x70] sm:$0xff]  ;;  %v520_v58 = vld [vmem:[#allocation5 + $0x68] sm:$0xff] }
  0x22   :  { %v201_v46 = vmax.f32 %v199_v24, %v200_v35  ;;  %v187_v47 = vmax.f32 %v185_v37, %v186_v42  ;;  %v141_v1 = vmax.f32 %v139_v59, %v140_v60  ;;  %260 = vmatpush.msra.mxu0 %v1636_v62  ;;  %v101_v7 = vrot.slane %v85_v0, 4  ;;  %409 = vmatpush.msra.mxu3 %v1636_v62  ;;  %v231_v35 = vld [vmem:[#allocation2 + $0x8] sm:$0xff] }
  0x23   :  { %v135_v5 = vrot.slane %v134_v61, 2  ;;  %v303_v6 = vsub.f32 %v1612_v40, %v302_v63  ;;  %367 = vmatpush.msra.mxu2 %v1643_v3  ;;  %v118_v11 = vsel %vm117_vm0, %v85_v0, -inf  ;;  %v1650_v12 = vand.u32 4294901760, %v85_v0 }
  0x24   :  { %v1319_v52 = vsel %vm1305_vm1, %v187_v47, %v180_v41  ;;  %v142_v8 = vrot.slane %v141_v1, 2  ;;  %vm232_vm4 = vcmask 523264   ;;  %v119_v16 = vrot.slane %v118_v11, 4 }
  0x25   :  { %v1320_v53 = vsel %vm1307_vm2, %v194_v43, %v1319_v52  ;;  %v136_v14 = vmax.f32 %v134_v61, %v135_v5  ;;  %v304_v15 = vand.u32 4294901760, %v303_v6  ;;  %v125_v18 = vsel %vm117_vm0, %v101_v7, -inf  ;;  %262 = vmatpush.msra.mxu0 %v1650_v12  ;;  %411 = vmatpush.msra.mxu3 %v1650_v12 }
  0x26   :  { %v1633_v56 = vsel %vm1309_vm3, %v201_v46, %v1320_v53  ;;  %v143_v17 = vmax.f32 %v141_v1, %v142_v8  ;;  %v308_v19 = vand.u32 4294901760, %v1624_v50  ;;  %v1656_v20 = vsub.f32 %v87_v38, %v1616_v45  ;;  %v518_v1 = vld [vmem:[#allocation5 + $0x58] sm:$0xff]  ;;  %v517_v8 = vld [vmem:[#allocation5 + $0x50] sm:$0xff] }
  0x27   :  { %v137_v21 = vrot.slane %v136_v14, 1  ;;  %305 = vmatpush.msra.mxu1 %v304_v15  ;;  %v120_v22 = vmax.f32 %v118_v11, %v119_v16  ;;  %v126_v23 = vrot.slane %v125_v18, 4  ;;  %v234_v24 = vsel %vm232_vm4, %v230_v13, 0  ;;  %436 = vmatpush.msrb.mxu0 %v290_v34 }
  0x28   :  { %v309_v25 = vsub.f32 %v1624_v50, %v308_v19  ;;  %370 = vmatpush.msra.mxu2 %v1656_v20  ;;  %v1664_v26 = vand.u32 4294901760, %v234_v24  ;;  %v314_v27 = vand.u32 4294901760, %v1643_v3  ;;  %v144_v29 = vrot.slane %v143_v17, 1 }
  0x29   :  { %v121_v30 = vrot.slane %v120_v22, 2  ;;  %v127_v31 = vmax.f32 %v125_v18, %v126_v23  ;;  %v325_v32 = vsub.f32 %v86_v48, %v1636_v62  ;;  %440 = vmatpush.msrb.mxu0 %v296_v49  ;;  %v1668_v36 = vmax.f32 %v136_v14, %v137_v21 }
  0x2a   :  { %v310_v37 = vand.u32 4294901760, %v309_v25  ;;  %v264_v10 = vsub.f32 %v234_v24, %v1664_v26  ;;  %v315_v34 = vsub.f32 %v1643_v3, %v314_v27  ;;  %v320_v40 = vand.u32 4294901760, %v1656_v20  ;;  %v516_v24 = vld [vmem:[#allocation5 + $0x48] sm:$0xff] }
  0x2b   :  { %v122_v38 = vmax.f32 %v120_v22, %v121_v30  ;;  %v128_v39 = vrot.slane %v127_v31, 2  ;;  %373 = vmatpush.msra.mxu2 %v325_v32  ;;  %v331_v41 = vsub.f32 %v85_v0, %v1650_v12  ;;  %444 = vmatpush.msrb.mxu0 %v302_v63  ;;  %v326_v44 = vand.u32 4294901760, %v325_v32  ;;  %v519_v0 = vld [vmem:[#allocation5 + $0x60] sm:$0xff] }
  0x2c   :  { %311 = vmatpush.msra.mxu1 %v310_v37  ;;  %v265_v42 = vand.u32 4294901760, %v264_v10  ;;  %v316_v43 = vand.u32 4294901760, %v315_v34  ;;  %v237_v46 = vsel %vm232_vm4, %v231_v35, 0  ;;  %v321_v49 = vsub.f32 %v1656_v20, %v320_v40 }
  0x2d   :  { %v123_v47 = vrot.slane %v122_v38, 1  ;;  %v129_v48 = vmax.f32 %v127_v31, %v128_v39  ;;  %376 = vmatpush.msra.mxu2 %v331_v41  ;;  %v332_v50 = vand.u32 4294901760, %v331_v41  ;;  %448 = vmatpush.msrb.mxu0 %v308_v19  ;;  %v145_v51 = vmax.f32 %v143_v17, %v144_v29 }
  0x2e   :  { %v266_v52 = vsub.f32 %v264_v10, %v265_v42  ;;  %317 = vmatpush.msra.mxu1 %v316_v43  ;;  %379 = vmatmul.f32.vlgmr.msra.gmra.mxu2 %v264_v10  ;;  %v327_v53 = vsub.f32 %v325_v32, %v326_v44  ;;  %v1676_v54 = vand.u32 4294901760, %v237_v46  ;;  %v322_v61 = vand.u32 4294901760, %v321_v49  ;;  %v513_v49 = vld [vmem:[#allocation5 + $0x30] sm:$0xff] }
  0x2f   :  { %v124_v59 = vmax.f32 %v122_v38, %v123_v47  ;;  %v130_v60 = vrot.slane %v129_v48, 1  ;;  %415 = vmatmul.f32.vlgmr.msra.gmra.mxu3 %v265_v42  ;;  %v333_v63 = vsub.f32 %v331_v41, %v332_v50  ;;  %452 = vmatpush.msrb.mxu0 %v314_v27  ;;  %v1679_v7 = vand.u32 4294901760, %v522_v55 }
  0x30   :  { %v267_v3 = vand.u32 4294901760, %v266_v52  ;;  %v328_v5 = vand.u32 4294901760, %v327_v53  ;;  %v272_v6 = vsub.f32 %v237_v46, %v1676_v54  ;;  %323 = vmatpush.msra.mxu1 %v322_v61  ;;  %v1681_v14 = vand.u32 4294901760, %v521_v57 }
  0x31   :  { %v131_v11 = vmax.f32 %v129_v48, %v130_v60  ;;  %v334_v13 = vand.u32 4294901760, %v333_v63  ;;  %456 = vmatpush.msrb.mxu0 %v320_v40  ;;  %v1683_v15 = vand.u32 4294901760, %v520_v58  ;;  %524 = vmatpush.msrb.mxu2 %v1679_v7  ;;  %v1687_v17 = vsub.f32 %v522_v55, %v1679_v7 }
  0x32   :  { %268 = vmatmul.f32.vlgmr.msra.gmra.mxu0 %v267_v3  ;;  %v273_v16 = vand.u32 4294901760, %v272_v6  ;;  %v1689_v18 = vand.u32 4294901760, %v519_v0  ;;  %v1691_v19 = vand.u32 4294901760, %v518_v1  ;;  %329 = vmatpush.msra.mxu1 %v328_v5  ;;  %v1695_v21 = vsub.f32 %v521_v57, %v1681_v14 }
  0x33   :  { %v1306_v20 = vsel %vm1305_vm1, %v131_v11, %v124_v59  ;;  %460 = vmatpush.msrb.mxu0 %v326_v44  ;;  %v1698_v22 = vsub.f32 %v520_v58, %v1683_v15  ;;  %v1700_v23 = vand.u32 4294901760, %v517_v8  ;;  %526 = vmatpush.msrb.mxu2 %v1681_v14  ;;  %v574_v29 = vand.u32 4294901760, %v1687_v17  ;;  %v514_v44 = vld [vmem:[#allocation5 + $0x38] sm:$0xff] }
  0x34   :  { %v1308_v25 = vsel %vm1307_vm2, %v1668_v36, %v1306_v20  ;;  %v274_v27 = vsub.f32 %v272_v6, %v273_v16  ;;  %v1707_v30 = vsub.f32 %v519_v0, %v1689_v18  ;;  %335 = vmatpush.msra.mxu1 %v334_v13  ;;  %v580_v32 = vand.u32 4294901760, %v1695_v21  ;;  %v515_v36 = vld [vmem:[#allocation5 + $0x40] sm:$0xff] }
  0x35   :  { %v1710_v31 = vsel %vm1309_vm3, %v145_v51, %v1308_v25  ;;  %464 = vmatpush.msrb.mxu0 %v332_v50  ;;  %v586_v35 = vand.u32 4294901760, %v1698_v22  ;;  %v1715_v37 = vsub.f32 %v518_v1, %v1691_v19  ;;  %337 = vmatmul.f32.vlgmr.msra.gmra.mxu1 %v1664_v26  ;;  %v575_v34 = vsub.f32 %v1687_v17, %v574_v29  ;;  %v512_v50 = vld [vmem:[#allocation5 + $0x28] sm:$0xff] }
  0x36   :  { %v275_v10 = vand.u32 4294901760, %v274_v27  ;;  %384 = vmatmul.f32.gmra.mxu2 %v272_v6  ;;  %v592_v38 = vand.u32 4294901760, %v1707_v30  ;;  %v1722_v39 = vand.u32 4294901760, %v516_v24  ;;  %483 = vmatpush.msrb.mxu1 %v1564_v2  ;;  %v581_v40 = vsub.f32 %v1695_v21, %v580_v32  ;;  %v511_v27 = vld [vmem:[#allocation5 + $0x20] sm:$0xff] }
  0x37   :  { %421 = vmatmul.f32.gmra.mxu3 %v273_v16  ;;  %v587_v41 = vsub.f32 %v1698_v22, %v586_v35  ;;  %v598_v42 = vand.u32 4294901760, %v1715_v37  ;;  %v1733_v43 = vsub.f32 %v517_v8, %v1700_v23  ;;  %v576_v46 = vand.u32 4294901760, %v575_v34  ;;  %528 = vmatpush.msrb.mxu2 %v1683_v15 }
  0x38   :  { %v593_v2 = vsub.f32 %v1707_v30, %v592_v38  ;;  %679 = vmatpush.msra.mxu0 %v1687_v17  ;;  %v1740_v47 = vand.u32 4294901760, %v515_v36  ;;  %v1743_v48 = vsub.f32 %v516_v24, %v1722_v39  ;;  %485 = vmatpush.msrb.mxu1 %v1569_v4  ;;  %v582_v51 = vand.u32 4294901760, %v581_v40  ;;  %v509_v40 = vld [vmem:[#allocation5 + $0x10] sm:$0xff] }
  0x39   :  { %v588_v52 = vand.u32 4294901760, %v587_v41  ;;  %v604_v53 = vand.u32 4294901760, %v1733_v43  ;;  %577 = vmatpush.msrb.mxu3 %v576_v46  ;;  %v599_v55 = vsub.f32 %v1715_v37, %v598_v42  ;;  %v1751_v58 = vand.u32 4294901760, %v514_v44  ;;  %530 = vmatpush.msrb.mxu2 %v1689_v18 }
  0x3a   :  { %276 = vmatmul.f32.gmra.mxu0 %v275_v10  ;;  %v610_v57 = vand.u32 4294901760, %v1743_v48  ;;  %v1754_v59 = vsub.f32 %v515_v36, %v1740_v47  ;;  %487 = vmatpush.msrb.mxu1 %v1576_v9  ;;  %v1758_v4 = vand.u32 4294901760, %v513_v49  ;;  %v1760_v60 = vand.u32 4294901760, %v512_v50 }
  0x3b   :  { %583 = vmatpush.msrb.mxu3 %v582_v51  ;;  %v594_v61 = vand.u32 4294901760, %v593_v2  ;;  %v605_v63 = vsub.f32 %v1733_v43, %v604_v53  ;;  %682 = vmatpush.msra.mxu0 %v1695_v21  ;;  %v1768_v1 = vsub.f32 %v514_v44, %v1751_v58  ;;  %v600_v3 = vand.u32 4294901760, %v599_v55  ;;  %v508_v2 = vld [vmem:[#allocation5 + $0x8] sm:$0xff]  ;;  %v507_v55 = vld [vmem:[#allocation5] sm:$0xff] }
  0x3c   :  { %v616_v0 = vand.u32 4294901760, %v1754_v59  ;;  %489 = vmatpush.msrb.mxu1 %v1593_v28  ;;  %532 = vmatpush.msrb.mxu2 %v1691_v19  ;;  %v1773_v9 = vsub.f32 %v513_v49, %v1758_v4  ;;  %v611_v5 = vsub.f32 %v1743_v48, %v610_v57  ;;  %v1781_v8 = vsub.f32 %v512_v50, %v1760_v60 }
  0x3d   :  { %341 = vmatmul.f32.gmra.mxu1 %v1676_v54  ;;  %589 = vmatpush.msrb.mxu3 %v588_v52  ;;  %v622_v6 = vand.u32 4294901760, %v1768_v1  ;;  %v606_v28 = vand.u32 4294901760, %v605_v63  ;;  %v1842_v44 = vand.u32 4294901760, %v509_v40  ;;  %v1854_v51 = vand.u32 4294901760, %v508_v2 }
  0x3e   :  { %491 = vmatpush.msrb.mxu1 %v1599_v33  ;;  %534 = vmatpush.msrb.mxu2 %v1700_v23  ;;  %v617_v11 = vsub.f32 %v1754_v59, %v616_v0  ;;  %v628_v13 = vand.u32 4294901760, %v1773_v9  ;;  %v612_v33 = vand.u32 4294901760, %v611_v5  ;;  %v634_v20 = vand.u32 4294901760, %v1781_v8 }
  0x3f   :  { %595 = vmatpush.msrb.mxu3 %v594_v61  ;;  %685 = vmatpush.msra.mxu0 %v1698_v22  ;;  %v623_v16 = vsub.f32 %v1768_v1, %v622_v6  ;;  %v1857_v52 = vsub.f32 %v509_v40, %v1842_v44  ;;  %v1866_v5 = vand.u32 4294901760, %v507_v55  ;;  %vm1311_vm5 = vcmask 1044484  }
  0x40   :  { %493 = vmatpush.msrb.mxu1 %v1616_v45  ;;  %536 = vmatpush.msrb.mxu2 %v1722_v39  ;;  %v618_v24 = vand.u32 4294901760, %v617_v11  ;;  %v629_v45 = vsub.f32 %v1773_v9, %v628_v13  ;;  %vm1313_vm6 = vcmask 1045509   ;;  %vm1315_vm7 = vcmask 1046534  }
  0x41   :  { %601 = vmatpush.msrb.mxu3 %v600_v3  ;;  %688 = vmatpush.msra.mxu0 %v1707_v30  ;;  %v624_v25 = vand.u32 4294901760, %v623_v16  ;;  %v652_v3 = vand.u32 4294901760, %v1857_v52  ;;  %v1878_v16 = vsub.f32 %v507_v55, %v1866_v5  ;;  %vm1317_vm8 = vcmask 1047559  }
  0x42   :  { %466 = vmatmul.f32.vlgmr.msrb.gmra.mxu0 %v1664_v26  ;;  %495 = vmatpush.msrb.mxu1 %v1636_v62  ;;  %v635_v62 = vsub.f32 %v1781_v8, %v634_v20  ;;  %v630_v36 = vand.u32 4294901760, %v629_v45 }
  0x43   :  { %538 = vmatpush.msrb.mxu2 %v1740_v47  ;;  %607 = vmatpush.msrb.mxu3 %v606_v28  ;;  %v1870_v28 = vsub.f32 %v508_v2, %v1854_v51 }
  0x44   :  { %497 = vmatpush.msrb.mxu1 %v1650_v12  ;;  %691 = vmatpush.msra.mxu0 %v1715_v37  ;;  %v1815_v12 = vand.u32 4294901760, %v511_v27 }
  0x45   :  { %540 = vmatpush.msrb.mxu2 %v1751_v58  ;;  %499 = vmatmul.f32.vlgmr.msrb.gmra.mxu1 %v1664_v26  ;;  %v636_v26 = vand.u32 4294901760, %v635_v62 }
  0x46   :  { %613 = vmatpush.msrb.mxu3 %v612_v33  ;;  %737 = vmatpush.msra.mxu1 %v1679_v7  ;;  %v1838_v34 = vsub.f32 %v511_v27, %v1815_v12  ;;  %v653_v33 = vsub.f32 %v1857_v52, %v652_v3 }
  0x47   :  { %542 = vmatpush.msrb.mxu2 %v1758_v4  ;;  %694 = vmatpush.msra.mxu0 %v1733_v43 }
  0x48   :  { %619 = vmatpush.msrb.mxu3 %v618_v24  ;;  %739 = vmatpush.msra.mxu1 %v1681_v14  ;;  %v640_v41 = vand.u32 4294901760, %v1838_v34  ;;  %v658_v24 = vand.u32 4294901760, %v1870_v28  ;;  %v654_v45 = vand.u32 4294901760, %v653_v33 }
  0x49   :  { %544 = vmatpush.msrb.mxu2 %v1760_v60  ;;  %697 = vmatpush.msra.mxu0 %v1743_v48 }
  0x4a   :  { %470 = vmatmul.f32.gmra.mxu0 %v1676_v54  ;;  %625 = vmatpush.msrb.mxu3 %v624_v25  ;;  %v641_v49 = vsub.f32 %v1838_v34, %v640_v41  ;;  %v664_v25 = vand.u32 4294901760, %v1878_v16  ;;  %v659_v62 = vsub.f32 %v1870_v28, %v658_v24 }
  0x4b   :  { %741 = vmatpush.msra.mxu1 %v1683_v15  ;;  %546 = vmatpush.msrb.mxu2 %v1815_v12 }
  0x4c   :  { %631 = vmatpush.msrb.mxu3 %v630_v36  ;;  %700 = vmatpush.msra.mxu0 %v1754_v59  ;;  %v642_v61 = vand.u32 4294901760, %v641_v49  ;;  %v665_v17 = vsub.f32 %v1878_v16, %v664_v25  ;;  %v912_v36 = vld [vmem:[#allocation7 + $0x78] sm:$0xff]  ;;  %v906_v49 = vld [vmem:[#allocation7 + $0x48] sm:$0xff] }
  0x4d   :  { %743 = vmatpush.msra.mxu1 %v1689_v18  ;;  %v1901_v21 = vand.u32 4294901760, %v912_v36 }
  0x4e   :  { %503 = vmatmul.f32.gmra.mxu1 %v1676_v54  ;;  %637 = vmatpush.msrb.mxu3 %v636_v26  ;;  %v510_v54 = vld [vmem:[#allocation5 + $0x18] sm:$0xff]  ;;  %v666_v27 = vand.u32 4294901760, %v665_v17 }
  0x4f   :  { %745 = vmatpush.msra.mxu1 %v1691_v19  ;;  %703 = vmatpush.msra.mxu0 %v1768_v1  ;;  %v1835_v10 = vand.u32 4294901760, %v510_v54  ;;  %v1908_v22 = vsub.f32 %v912_v36, %v1901_v21 }
  0x50   :  { %643 = vmatpush.msrb.mxu3 %v642_v61 }
  0x51   :  { %747 = vmatpush.msra.mxu1 %v1700_v23  ;;  %706 = vmatpush.msra.mxu0 %v1773_v9  ;;  %v1845_v46 = vsub.f32 %v510_v54, %v1835_v10 }
  0x52   :  { %548 = vmatpush.msrb.mxu2 %v1835_v10 }
  0x53   :  { %749 = vmatpush.msra.mxu1 %v1722_v39  ;;  %709 = vmatpush.msra.mxu0 %v1781_v8  ;;  %v646_v50 = vand.u32 4294901760, %v1845_v46 }
  0x54   :  { %550 = vmatpush.msrb.mxu2 %v1842_v44 }
  0x55   :  { %751 = vmatpush.msra.mxu1 %v1740_v47  ;;  %712 = vmatpush.msra.mxu0 %v1838_v34  ;;  %v647_v63 = vsub.f32 %v1845_v46, %v646_v50 }
  0x56   :  { %552 = vmatpush.msrb.mxu2 %v1854_v51 }
  0x57   :  { %753 = vmatpush.msra.mxu1 %v1751_v58  ;;  %715 = vmatpush.msra.mxu0 %v1845_v46  ;;  %v648_v11 = vand.u32 4294901760, %v647_v63  ;;  %v905_v63 = vld [vmem:[#allocation7 + $0x40] sm:$0xff] }
  0x58   :  { %554 = vmatpush.msrb.mxu2 %v1866_v5 }
  0x59   :  { %755 = vmatpush.msra.mxu1 %v1758_v4  ;;  %718 = vmatpush.msra.mxu0 %v1857_v52 }
  0x5a   :  { %784 = vmatpush.msra.mxu2 %v574_v29  ;;  %649 = vmatpush.msrb.mxu3 %v648_v11  ;;  %v660_v29 = vand.u32 4294901760, %v659_v62  ;;  %v1981_v11 = vand.u32 4294901760, %v905_v63 }
  0x5b   :  { %757 = vmatpush.msra.mxu1 %v1760_v60  ;;  %721 = vmatpush.msra.mxu0 %v1870_v28 }
  0x5c   :  { %788 = vmatpush.msra.mxu2 %v580_v32  ;;  %655 = vmatpush.msrb.mxu3 %v654_v45  ;;  %v911_v32 = vld [vmem:[#allocation7 + $0x70] sm:$0xff]  ;;  %v904_v45 = vld [vmem:[#allocation7 + $0x38] sm:$0xff] }
  0x5d   :  { %759 = vmatpush.msra.mxu1 %v1815_v12  ;;  %724 = vmatpush.msra.mxu0 %v1878_v16  ;;  %v1910_v30 = vand.u32 4294901760, %v911_v32 }
  0x5e   :  { %792 = vmatpush.msra.mxu2 %v586_v35  ;;  %661 = vmatpush.msrb.mxu3 %v660_v29  ;;  %v910_v35 = vld [vmem:[#allocation7 + $0x68] sm:$0xff]  ;;  %v903_v29 = vld [vmem:[#allocation7 + $0x30] sm:$0xff] }
  0x5f   :  { %761 = vmatpush.msra.mxu1 %v1835_v10  ;;  %918 = vmatpush.msrb.mxu0 %v1901_v21  ;;  %v1917_v37 = vand.u32 4294901760, %v910_v35  ;;  %v2006_v46 = vand.u32 4294901760, %v903_v29 }
  0x60   :  { %796 = vmatpush.msra.mxu2 %v592_v38  ;;  %667 = vmatpush.msrb.mxu3 %v666_v27  ;;  %v1920_v38 = vsub.f32 %v911_v32, %v1910_v30  ;;  %v902_v32 = vld [vmem:[#allocation7 + $0x28] sm:$0xff] }
  0x61   :  { %763 = vmatpush.msra.mxu1 %v1842_v44  ;;  %920 = vmatpush.msrb.mxu0 %v1910_v30 }
  0x62   :  { %800 = vmatpush.msra.mxu2 %v598_v42  ;;  %855 = vmatpush.msra.mxu3 %v1679_v7  ;;  %v968_v7 = vand.u32 4294901760, %v1908_v22  ;;  %v909_v42 = vld [vmem:[#allocation7 + $0x60] sm:$0xff]  ;;  %v974_v43 = vand.u32 4294901760, %v1920_v38 }
  0x63   :  { %765 = vmatpush.msra.mxu1 %v1854_v51  ;;  %922 = vmatpush.msrb.mxu0 %v1917_v37  ;;  %v1930_v48 = vand.u32 4294901760, %v909_v42 }
  0x64   :  { %804 = vmatpush.msra.mxu2 %v604_v53  ;;  %857 = vmatpush.msra.mxu3 %v1681_v14  ;;  %v969_v14 = vsub.f32 %v1908_v22, %v968_v7  ;;  %v1933_v53 = vsub.f32 %v910_v35, %v1917_v37  ;;  %v975_v26 = vsub.f32 %v1920_v38, %v974_v43 }
  0x65   :  { %767 = vmatpush.msra.mxu1 %v1866_v5  ;;  %924 = vmatpush.msrb.mxu0 %v1930_v48  ;;  %v1947_v54 = vsub.f32 %v909_v42, %v1930_v48  ;;  %v2020_v42 = vsub.f32 %v903_v29, %v2006_v46 }
  0x66   :  { %808 = vmatpush.msra.mxu2 %v610_v57  ;;  %859 = vmatpush.msra.mxu3 %v1683_v15  ;;  %v908_v15 = vld [vmem:[#allocation7 + $0x58] sm:$0xff]  ;;  %v970_v57 = vand.u32 4294901760, %v969_v14  ;;  %v980_v59 = vand.u32 4294901760, %v1933_v53  ;;  %v976_v40 = vand.u32 4294901760, %v975_v26  ;;  %v901_v14 = vld [vmem:[#allocation7 + $0x20] sm:$0xff] }
  0x68   :  { %812 = vmatpush.msra.mxu2 %v616_v0  ;;  %861 = vmatpush.msra.mxu3 %v1689_v18  ;;  %v1943_v0 = vand.u32 4294901760, %v908_v15  ;;  %v907_v18 = vld [vmem:[#allocation7 + $0x50] sm:$0xff]  ;;  %v981_v2 = vsub.f32 %v1933_v53, %v980_v59 }
  0x69   :  { %971 = vmatpush.msrb.mxu1 %v970_v57  ;;  %v1954_v1 = vand.u32 4294901760, %v907_v18 }
  0x6a   :  { %816 = vmatpush.msra.mxu2 %v622_v6  ;;  %863 = vmatpush.msra.mxu3 %v1691_v19  ;;  %v1957_v6 = vsub.f32 %v908_v15, %v1943_v0  ;;  %v986_v19 = vand.u32 4294901760, %v1947_v54  ;;  %v982_v55 = vand.u32 4294901760, %v981_v2  ;;  %v2033_v15 = vand.u32 4294901760, %v901_v14 }
  0x6b   :  { %926 = vmatpush.msrb.mxu0 %v1943_v0  ;;  %977 = vmatpush.msrb.mxu1 %v976_v40  ;;  %v1968_v61 = vsub.f32 %v907_v18, %v1954_v1  ;;  %v900_v18 = vld [vmem:[#allocation7 + $0x18] sm:$0xff] }
  0x6c   :  { %820 = vmatpush.msra.mxu2 %v628_v13  ;;  %865 = vmatpush.msra.mxu3 %v1700_v23  ;;  %v992_v9 = vand.u32 4294901760, %v1957_v6  ;;  %v1965_v13 = vand.u32 4294901760, %v906_v49  ;;  %v987_v23 = vsub.f32 %v1947_v54, %v986_v19  ;;  %v2044_v2 = vand.u32 4294901760, %v900_v18 }
  0x6d   :  { %928 = vmatpush.msrb.mxu0 %v1954_v1  ;;  %983 = vmatpush.msrb.mxu1 %v982_v55 }
  0x6e   :  { %824 = vmatpush.msra.mxu2 %v634_v20  ;;  %867 = vmatpush.msra.mxu3 %v1722_v39  ;;  %v993_v8 = vsub.f32 %v1957_v6, %v992_v9  ;;  %v998_v20 = vand.u32 4294901760, %v1968_v61  ;;  %v1984_v39 = vsub.f32 %v906_v49, %v1965_v13  ;;  %v988_v33 = vand.u32 4294901760, %v987_v23 }
  0x6f   :  { %930 = vmatpush.msrb.mxu0 %v1965_v13  ;;  %v2048_v49 = vsub.f32 %v901_v14, %v2033_v15 }
  0x70   :  { %828 = vmatpush.msra.mxu2 %v640_v41  ;;  %869 = vmatpush.msra.mxu3 %v1740_v47  ;;  %v994_v62 = vand.u32 4294901760, %v993_v8  ;;  %v999_v17 = vsub.f32 %v1968_v61, %v998_v20  ;;  %v1004_v34 = vand.u32 4294901760, %v1984_v39  ;;  %v1994_v41 = vand.u32 4294901760, %v904_v45 }
  0x71   :  { %989 = vmatpush.msrb.mxu1 %v988_v33  ;;  %v1998_v47 = vsub.f32 %v905_v63, %v1981_v11  ;;  %932 = vmatpush.msrb.mxu0 %v1981_v11  ;;  %v2057_v8 = vsub.f32 %v900_v18, %v2044_v2 }
  0x72   :  { %832 = vmatpush.msra.mxu2 %v646_v50  ;;  %871 = vmatpush.msra.mxu3 %v1751_v58  ;;  %v1000_v27 = vand.u32 4294901760, %v999_v17  ;;  %v1005_v36 = vsub.f32 %v1984_v39, %v1004_v34  ;;  %v2009_v50 = vsub.f32 %v904_v45, %v1994_v41  ;;  %v898_v45 = vld [vmem:[#allocation7 + $0x8] sm:$0xff] }
  0x73   :  { %995 = vmatpush.msrb.mxu1 %v994_v62  ;;  %v1010_v58 = vand.u32 4294901760, %v1998_v47  ;;  %934 = vmatpush.msrb.mxu0 %v1994_v41  ;;  %v2250_v17 = vand.u32 4294901760, %v2057_v8  ;;  %v2063_v29 = vand.u32 4294901760, %v898_v45 }
  0x74   :  { %836 = vmatpush.msra.mxu2 %v652_v3  ;;  %873 = vmatpush.msra.mxu3 %v1758_v4  ;;  %v1006_v35 = vand.u32 4294901760, %v1005_v36  ;;  %v2255_v52 = vand.u32 4294901760, %v2009_v50  ;;  %v2017_v3 = vand.u32 4294901760, %v902_v32  ;;  %v897_v36 = vld [vmem:[#allocation7] sm:$0xff] }
  0x75   :  { %1001 = vmatpush.msrb.mxu1 %v1000_v27  ;;  %v1011_v4 = vsub.f32 %v1998_v47, %v1010_v58  ;;  %936 = vmatpush.msrb.mxu0 %v2006_v46 }
  0x76   :  { %840 = vmatpush.msra.mxu2 %v658_v24  ;;  %875 = vmatpush.msra.mxu3 %v1760_v60  ;;  %v1017_v28 = vsub.f32 %v2009_v50, %v2255_v52  ;;  %v2254_v24 = vand.u32 4294901760, %v2020_v42  ;;  %v2036_v60 = vsub.f32 %v902_v32, %v2017_v3  ;;  %v1041_v32 = vsub.f32 %v2057_v8, %v2250_v17 }
  0x77   :  { %1007 = vmatpush.msrb.mxu1 %v1006_v35  ;;  %v1012_v26 = vand.u32 4294901760, %v1011_v4  ;;  %938 = vmatpush.msrb.mxu0 %v2017_v3  ;;  %v2076_v35 = vand.u32 4294901760, %v897_v36  ;;  %v2079_v4 = vsub.f32 %v898_v45, %v2063_v29 }
  0x78   :  { %844 = vmatpush.msra.mxu2 %v664_v25  ;;  %877 = vmatpush.msra.mxu3 %v1815_v12  ;;  %v1018_v40 = vand.u32 4294901760, %v1017_v28  ;;  %v1023_v16 = vsub.f32 %v2020_v42, %v2254_v24  ;;  %v2253_v25 = vand.u32 4294901760, %v2036_v60  ;;  %v899_v12 = vld [vmem:[#allocation7 + $0x10] sm:$0xff] }
  0x79   :  { %1013 = vmatpush.msrb.mxu1 %v1012_v26  ;;  %940 = vmatpush.msrb.mxu0 %v2033_v15  ;;  %v2054_v63 = vand.u32 4294901760, %v899_v12 }
  0x7a   :  { %879 = vmatpush.msra.mxu3 %v1835_v10  ;;  %v1024_v55 = vand.u32 4294901760, %v1023_v16  ;;  %v1029_v23 = vsub.f32 %v2036_v60, %v2253_v25  ;;  %v2251_v10 = vand.u32 4294901760, %v2048_v49  ;;  %v2252_v16 = vand.u32 4294901760, %v2079_v4 }
  0x7b   :  { %1019 = vmatpush.msrb.mxu1 %v1018_v40  ;;  %942 = vmatpush.msrb.mxu0 %v2044_v2  ;;  %v1042_v40 = vand.u32 4294901760, %v1041_v32 }
  0x7c   :  { %881 = vmatpush.msra.mxu3 %v1842_v44  ;;  %v1030_v62 = vand.u32 4294901760, %v1029_v23  ;;  %v1035_v27 = vsub.f32 %v2048_v49, %v2251_v10  ;;  %v2070_v44 = vsub.f32 %v899_v12, %v2054_v63  ;;  %v2086_v12 = vsub.f32 %v897_v36, %v2076_v35 }
  0x7d   :  { %1025 = vmatpush.msrb.mxu1 %v1024_v55  ;;  %944 = vmatpush.msrb.mxu0 %v2054_v63 }
  0x7e   :  { %883 = vmatpush.msra.mxu3 %v1854_v51  ;;  %v1036_v28 = vand.u32 4294901760, %v1035_v27  ;;  %v2249_v26 = vand.u32 4294901760, %v2070_v44 }
  0x7f   :  { %1031 = vmatpush.msrb.mxu1 %v1030_v62  ;;  %946 = vmatpush.msrb.mxu0 %v2063_v29 }
  0x80   :  { %885 = vmatpush.msra.mxu3 %v1866_v5  ;;  %v1047_v55 = vsub.f32 %v2070_v44, %v2249_v26  ;;  %v1053_v5 = vsub.f32 %v2079_v4, %v2252_v16 }
  0x81   :  { %1037 = vmatpush.msrb.mxu1 %v1036_v28  ;;  %948 = vmatpush.msrb.mxu0 %v2076_v35 }
  0x82   :  { %v1048_v45 = vand.u32 4294901760, %v1047_v55  ;;  %v1054_v27 = vand.u32 4294901760, %v1053_v5 }
  0x83   :  { %1043 = vmatpush.msrb.mxu1 %v1042_v40 }
  0x85   :  { %1049 = vmatpush.msrb.mxu1 %v1048_v45 }
  0x87   :  { %1055 = vmatpush.msrb.mxu1 %v1054_v27 }
  0xaf   :  { %v269_v57 = vpop.f32.mrf.mxu0 }
  0xb1   :  { %v380_v14 = vpop.f32.mrf.mxu2 }
  0xb2   :  { %v338_v33 = vpop.f32.mrf.mxu1  ;;  %v416_v23 = vpop.f32.mrf.mxu3 }
  0xb3   :  { %v339_v18 = vadd.f32 %v338_v33, %v269_v57  ;;  %v1058_v57 = vand.u32 4294901760, %v2086_v12 }
  0xb5   :  { %v381_v62 = vadd.f32 %v380_v14, %v339_v18  ;;  %v1059_v36 = vsub.f32 %v2086_v12, %v1058_v57 }
  0xb7   :  { %v277_v51 = vpop.f32.mrf.mxu0  ;;  %v1060_v32 = vand.u32 4294901760, %v1059_v36  ;;  %v417_v26 = vadd.f32 %v416_v23, %v381_v62 }
  0xb9   :  { %v385_v10 = vpop.f32.mrf.mxu2  ;;  %1061 = vmatpush.msrb.mxu1 %v1060_v32 }
  0xba   :  { %v342_v33 = vpop.f32.mrf.mxu1  ;;  %v422_v40 = vpop.f32.mrf.mxu3 }
  0xbb   :  { %v343_v17 = vadd.f32 %v342_v33, %v277_v51 }
  0xbd   :  { %v386_v24 = vadd.f32 %v385_v10, %v343_v17 }
  0xbf   :  { %v467_v28 = vpop.f32.mrf.mxu0  ;;  %v423_v18 = vadd.f32 %v422_v40, %v386_v24 }
  0xc0   :  { %v468_v16 = vadd.f32 %v467_v28, %v417_v26 }
  0xc2   :  { %v500_v25 = vpop.f32.mrf.mxu1 }
  0xc3   :  { %v501_v52 = vadd.f32 %v500_v25, %v468_v16  ;;  %v895_v25 = vld [vmem:[%s2245_s3] sm:$0xff] }
  0xc4   :  { %v2116_v26 = vand.u32 4294901760, %v895_v25 }
  0xc5   :  { %v2099_v55 = vand.u32 4294901760, %v501_v52 }
  0xc7   :  { %v471_v14 = vpop.f32.mrf.mxu0  ;;  %v556_v5 = vsub.f32 %v501_v52, %v2099_v55  ;;  %669 = vmatmul.f32.vlgmr.msrb.gmra.mxu3 %v2099_v55 }
  0xc8   :  { %1131 = vmatpush.msrb.mxu3 %v1901_v21  ;;  %v472_v45 = vadd.f32 %v471_v14, %v423_v18 }
  0xc9   :  { %v557_v23 = vand.u32 4294901760, %v556_v5  ;;  %727 = vmatmul.f32.vlgmr.msra.gmra.mxu0 %v556_v5 }
  0xca   :  { %1133 = vmatpush.msrb.mxu3 %v1910_v30  ;;  %1178 = vmatpush.msra.mxu0 %v968_v7 }
  0xcb   :  { %v504_v51 = vpop.f32.mrf.mxu1  ;;  %771 = vmatmul.f32.vlgmr.msra.gmra.mxu1 %v557_v23  ;;  %v558_v52 = vsub.f32 %v556_v5, %v557_v23 }
  0xcc   :  { %v505_v24 = vadd.f32 %v504_v51, %v472_v45  ;;  %1135 = vmatpush.msrb.mxu3 %v1917_v37  ;;  %1182 = vmatpush.msra.mxu0 %v974_v43 }
  0xcd   :  { %v559_v17 = vand.u32 4294901760, %v558_v52  ;;  %1249 = vmatpush.msra.mxu1 %v1901_v21  ;;  %v2127_v21 = vsub.f32 %v895_v25, %v2116_v26 }
  0xce   :  { %v2113_v10 = vand.u32 4294901760, %v505_v24  ;;  %1137 = vmatpush.msrb.mxu3 %v1930_v48  ;;  %1186 = vmatpush.msra.mxu0 %v980_v59 }
  0xcf   :  { %560 = vmatmul.f32.vlgmr.msrb.gmra.mxu2 %v559_v17  ;;  %1251 = vmatpush.msra.mxu1 %v1910_v30 }
  0xd0   :  { %v564_v7 = vsub.f32 %v505_v24, %v2113_v10  ;;  %673 = vmatmul.f32.gmra.mxu3 %v2113_v10  ;;  %1073 = vmatpush.msrb.mxu2 %v1908_v22  ;;  %v896_v22 = vld [vmem:[%s2245_s3 + $0x8] sm:$0xff] }
  0xd1   :  { %1139 = vmatpush.msrb.mxu3 %v1943_v0  ;;  %1190 = vmatpush.msra.mxu0 %v986_v19  ;;  %v2257_v19 = vand.u32 4294901760, %v2020_v42 }
  0xd2   :  { %732 = vmatmul.f32.gmra.mxu0 %v564_v7  ;;  %v565_v43 = vand.u32 4294901760, %v564_v7  ;;  %1076 = vmatpush.msrb.mxu2 %v1920_v38  ;;  %v951_v38 = vand.u32 4294901760, %v2127_v21 }
  0xd3   :  { %1141 = vmatpush.msrb.mxu3 %v1954_v1  ;;  %1253 = vmatpush.msra.mxu1 %v1917_v37 }
  0xd4   :  { %777 = vmatmul.f32.gmra.mxu1 %v565_v43  ;;  %v566_v59 = vsub.f32 %v564_v7, %v565_v43  ;;  %1079 = vmatpush.msrb.mxu2 %v1933_v53  ;;  %v2145_v53 = vand.u32 4294901760, %v896_v22  ;;  %v952_v37 = vsub.f32 %v2127_v21, %v951_v38 }
  0xd5   :  { %1143 = vmatpush.msrb.mxu3 %v1965_v13  ;;  %1194 = vmatpush.msra.mxu0 %v992_v9  ;;  %v2258_v9 = vand.u32 4294901760, %v2036_v60 }
  0xd6   :  { %v567_v30 = vand.u32 4294901760, %v566_v59  ;;  %1082 = vmatpush.msrb.mxu2 %v1947_v54  ;;  %1255 = vmatpush.msra.mxu1 %v1930_v48  ;;  %v958_v54 = vsub.f32 %v896_v22, %v2145_v53  ;;  %v953_v48 = vand.u32 4294901760, %v952_v37 }
  0xd7   :  { %1145 = vmatpush.msrb.mxu3 %v1981_v11  ;;  %1198 = vmatpush.msra.mxu0 %v998_v20  ;;  %v2260_v20 = vand.u32 4294901760, %v2057_v8 }
  0xd8   :  { %568 = vmatmul.f32.gmra.mxu2 %v567_v30  ;;  %887 = vmatmul.f32.vlgmr.msra.gmra.mxu3 %v2099_v55 }
  0xd9   :  { %1085 = vmatpush.msrb.mxu2 %v1957_v6  ;;  %1147 = vmatpush.msrb.mxu3 %v1994_v41 }
  0xda   :  { %1257 = vmatpush.msra.mxu1 %v1943_v0  ;;  %1202 = vmatpush.msra.mxu0 %v1004_v34  ;;  %v959_v0 = vand.u32 4294901760, %v958_v54  ;;  %v1363_v34 = vld [vmem:[%s2242_s0 + $0x10] sm:$0xff] }
  0xdb   :  { %1088 = vmatpush.msrb.mxu2 %v1968_v61  ;;  %1149 = vmatpush.msrb.mxu3 %v2006_v46  ;;  %v2259_v61 = vand.u32 4294901760, %v2048_v49 }
  0xdc   :  { %1259 = vmatpush.msra.mxu1 %v1954_v1  ;;  %1206 = vmatpush.msra.mxu0 %v1010_v58  ;;  %v2256_v1 = vand.u32 4294901760, %v2009_v50  ;;  %v960_v6 = vsub.f32 %v958_v54, %v959_v0 }
  0xdd   :  { %1091 = vmatpush.msrb.mxu2 %v1984_v39  ;;  %1151 = vmatpush.msrb.mxu3 %v2017_v3  ;;  %v2262_v39 = vand.u32 4294901760, %v2079_v4 }
  0xde   :  { %1261 = vmatpush.msra.mxu1 %v1965_v13  ;;  %954 = vmatmul.f32.vlgmr.msrb.gmra.mxu0 %v953_v48  ;;  %v961_v13 = vand.u32 4294901760, %v960_v6 }
  0xdf   :  { %1094 = vmatpush.msrb.mxu2 %v1998_v47  ;;  %1153 = vmatpush.msrb.mxu3 %v2033_v15  ;;  %v1364_v47 = vld [vmem:[%s2242_s0 + $0x30] sm:$0xff] }
  0xe0   :  { %846 = vmatmul.f32.vlgmr.msra.gmra.mxu2 %v2099_v55  ;;  %891 = vmatmul.f32.gmra.mxu3 %v2113_v10 }
  0xe1   :  { %1097 = vmatpush.msrb.mxu2 %v2009_v50  ;;  %1155 = vmatpush.msrb.mxu3 %v2044_v2  ;;  %v1365_v50 = vld [vmem:[%s2242_s0 + $0x38] sm:$0xff] }
  0xe2   :  { %1210 = vmatpush.msra.mxu0 %v2256_v1  ;;  %1263 = vmatpush.msra.mxu1 %v1981_v11  ;;  %v2261_v11 = vand.u32 4294901760, %v2070_v44  ;;  %v108_v58 = vrot.slane %v1365_v50, 4 }
  0xe3   :  { %1100 = vmatpush.msrb.mxu2 %v2020_v42  ;;  %1157 = vmatpush.msrb.mxu3 %v2054_v63 }
  0xe4   :  { %1063 = vmatmul.f32.vlgmr.msrb.gmra.mxu1 %v2116_v26  ;;  %1214 = vmatpush.msra.mxu0 %v2257_v19 }
  0xe5   :  { %1103 = vmatpush.msrb.mxu2 %v2036_v60  ;;  %1265 = vmatpush.msra.mxu1 %v1994_v41  ;;  %v103_v41 = vrot.slane %v1363_v34, 4  ;;  %v202_v60 = vsel %vm117_vm0, %v1364_v47, -inf }
  0xe6   :  { %1159 = vmatpush.msrb.mxu3 %v2063_v29  ;;  %1218 = vmatpush.msra.mxu0 %v2258_v9  ;;  %v203_v16 = vrot.slane %v202_v60, 4 }
  0xe7   :  { %1106 = vmatpush.msrb.mxu2 %v2048_v49  ;;  %1267 = vmatpush.msra.mxu1 %v2006_v46  ;;  %v107_v46 = vrot.slane %v1364_v47, 4 }
  0xe8   :  { %850 = vmatmul.f32.gmra.mxu2 %v2113_v10  ;;  %1161 = vmatpush.msrb.mxu3 %v2076_v35  ;;  %v204_v55 = vmax.f32 %v202_v60, %v203_v16 }
  0xe9   :  { %1109 = vmatpush.msrb.mxu2 %v2057_v8  ;;  %1222 = vmatpush.msra.mxu0 %v2259_v61  ;;  %v209_v49 = vsel %vm117_vm0, %v107_v46, -inf }
  0xea   :  { %1269 = vmatpush.msra.mxu1 %v2017_v3  ;;  %962 = vmatmul.f32.gmra.mxu0 %v961_v13  ;;  %v1366_v3 = vld [vmem:[%s2242_s0 + $0x18] sm:$0xff]  ;;  %v210_v33 = vrot.slane %v209_v49, 4  ;;  %v205_v52 = vrot.slane %v204_v55, 2  ;;  %s1501_s0 = smov [#allocation10]  }
  0xeb   :  { %1112 = vmatpush.msrb.mxu2 %v2070_v44  ;;  %1165 = vmatmul.f32.vlgmr.msrb.gmra.mxu3 %v951_v38  ;;  %v104_v42 = vrot.slane %v1366_v3, 4  ;;  %v223_v44 = vsel %vm117_vm0, %v108_v58, -inf  ;;  %s1338_s5 = sshll.u32 %s1501_s0, 4  ;;  %s1339_s5 = int_to_ptr.vmem [resolvable:$true] %s1338_s5 }
  0xec   :  { %1226 = vmatpush.msra.mxu0 %v2260_v20  ;;  %1271 = vmatpush.msra.mxu1 %v2033_v15  ;;  %v146_v15 = vsel %vm117_vm0, %v1363_v34, -inf  ;;  %v224_v36 = vrot.slane %v223_v44, 4  ;;  %v211_v18 = vmax.f32 %v209_v49, %v210_v33  ;;  %v206_v38 = vmax.f32 %v204_v55, %v205_v52 }
  0xed   :  { %1115 = vmatpush.msrb.mxu2 %v2079_v4  ;;  %1067 = vmatmul.f32.gmra.mxu1 %v2145_v53  ;;  %v147_v4 = vrot.slane %v146_v15, 4 }
  0xee   :  { %1230 = vmatpush.msra.mxu0 %v2261_v11  ;;  %1273 = vmatpush.msra.mxu1 %v2044_v2  ;;  %v153_v2 = vsel %vm117_vm0, %v103_v41, -inf  ;;  %v225_v23 = vmax.f32 %v223_v44, %v224_v36  ;;  %v207_v61 = vrot.slane %v206_v38, 1 }
  0xef   :  { %1118 = vmatpush.msrb.mxu2 %v2086_v12  ;;  %v154_v12 = vrot.slane %v153_v2, 4  ;;  %v148_v28 = vmax.f32 %v146_v15, %v147_v4 }
  0xf0   :  { %1121 = vmatmul.f32.vlgmr.msrb.gmra.mxu2 %v2127_v21  ;;  %1234 = vmatpush.msra.mxu0 %v2262_v39  ;;  %v226_v21 = vrot.slane %v225_v23, 2 }
  0xf1   :  { %1275 = vmatpush.msra.mxu1 %v2054_v63  ;;  %v160_v63 = vsel %vm117_vm0, %v1366_v3, -inf  ;;  %v155_v14 = vmax.f32 %v153_v2, %v154_v12  ;;  %v149_v24 = vrot.slane %v148_v28, 2 }
  0xf2   :  { %1238 = vmatpush.msra.mxu0 %v1058_v57  ;;  %v161_v62 = vrot.slane %v160_v63, 4  ;;  %v227_v6 = vmax.f32 %v225_v23, %v226_v21 }
  0xf3   :  { %1171 = vmatmul.f32.gmra.mxu3 %v959_v0  ;;  %1277 = vmatpush.msra.mxu1 %v2063_v29  ;;  %v216_v29 = vsel %vm117_vm0, %v1365_v50, -inf  ;;  %v156_v10 = vrot.slane %v155_v14, 2  ;;  %v150_v30 = vmax.f32 %v148_v28, %v149_v24 }
  0xf4   :  { %1240 = vmatmul.f32.vlgmr.msra.gmra.mxu0 %v2116_v26  ;;  %v217_v27 = vrot.slane %v216_v29, 4  ;;  %v162_v5 = vmax.f32 %v160_v63, %v161_v62  ;;  %v228_v47 = vrot.slane %v227_v6, 1 }
  0xf5   :  { %1279 = vmatpush.msra.mxu1 %v2076_v35  ;;  %v167_v35 = vsel %vm117_vm0, %v104_v42, -inf  ;;  %v151_v13 = vrot.slane %v150_v30, 1  ;;  %v208_v42 = vmax.f32 %v206_v38, %v207_v61 }
  0xf6   :  { %1281 = vmatmul.f32.vlgmr.msra.gmra.mxu1 %v2116_v26  ;;  %v168_v32 = vrot.slane %v167_v35, 4  ;;  %v218_v45 = vmax.f32 %v216_v29, %v217_v27  ;;  %v212_v26 = vrot.slane %v211_v18, 2  ;;  %v163_v7 = vrot.slane %v162_v5, 2 }
  0xf7   :  { %v152_v3 = vmax.f32 %v150_v30, %v151_v13  ;;  %v229_v44 = vmax.f32 %v227_v6, %v228_v47  ;;  %v1322_v33 = vsel %vm1311_vm5, %v208_v42, %v1633_v56 }
  0xf8   :  { %1126 = vmatmul.f32.gmra.mxu2 %v958_v54  ;;  %v169_v51 = vmax.f32 %v167_v35, %v168_v32  ;;  %v219_v43 = vrot.slane %v218_v45, 2  ;;  %v213_v37 = vmax.f32 %v211_v18, %v212_v26  ;;  %v164_v54 = vmax.f32 %v162_v5, %v163_v7  ;;  %v1362_v5 = vld [vmem:[#allocation8] ss:$0 sm:$0xff] }
  0xf9   :  { %v1312_v12 = vsel %vm1311_vm5, %v152_v3, %v1710_v31 }
  0xfa   :  { %v170_v59 = vrot.slane %v169_v51, 2  ;;  %v220_v1 = vmax.f32 %v218_v45, %v219_v43  ;;  %v214_v11 = vrot.slane %v213_v37, 1  ;;  %v165_v39 = vrot.slane %v164_v54, 1 }
  0xfc   :  { %1244 = vmatmul.f32.gmra.mxu0 %v2145_v53  ;;  %v171_v19 = vmax.f32 %v169_v51, %v170_v59  ;;  %v221_v41 = vrot.slane %v220_v1, 1  ;;  %v215_v60 = vmax.f32 %v213_v37, %v214_v11  ;;  %v166_v2 = vmax.f32 %v164_v54, %v165_v39 }
  0xfe   :  { %1285 = vmatmul.f32.gmra.mxu1 %v2145_v53  ;;  %v157_v53 = vmax.f32 %v155_v14, %v156_v10  ;;  %v172_v46 = vrot.slane %v171_v19, 1  ;;  %v222_v29 = vmax.f32 %v220_v1, %v221_v41  ;;  %v1323_v32 = vsel %vm1313_vm6, %v215_v60, %v1322_v33 }
 0x100   :  { %v158_v20 = vrot.slane %v157_v53, 1  ;;  %v173_v35 = vmax.f32 %v171_v19, %v172_v46 }
 0x102   :  { %v159_v15 = vmax.f32 %v157_v53, %v158_v20 }
 0x146   :  { %v728_v57 = vpop.f32.mrf.mxu0 }
 0x148   :  { %v772_v40 = vpop.f32.mrf.mxu1 }
 0x14a   :  { %v670_v8 = vpop.f32.mrf.mxu3 }
 0x14f   :  { %v733_v22 = vpop.f32.mrf.mxu0 }
 0x151   :  { %v778_v48 = vpop.f32.mrf.mxu1 }
 0x152   :  { %v561_v25 = vpop.f32.mrf.mxu2 }
 0x153   :  { %v674_v17 = vpop.f32.mrf.mxu3  ;;  %v671_v0 = vadd.f32 %v670_v8, %v561_v25 }
 0x155   :  { %v729_v34 = vadd.f32 %v728_v57, %v671_v0  ;;  %v1314_v57 = vsel %vm1313_vm6, %v159_v15, %v1312_v12 }
 0x156   :  { %v1316_v36 = vsel %vm1315_vm7, %v166_v2, %v1314_v57 }
 0x157   :  { %v773_v63 = vadd.f32 %v772_v40, %v729_v34  ;;  %v1318_v28 = vsel %vm1317_vm8, %v173_v35, %v1316_v36  ;;  %v1324_v40 = vsel %vm1315_vm7, %v222_v29, %v1323_v32 }
 0x158   :  { %v1325_v55 = vsel %vm1317_vm8, %v229_v44, %v1324_v40  ;;  %1328 = vst [vmem:[#allocation10] sm:$0xff] %v1318_v28 }
 0x159   :  { %1329 = vst [vmem:[#allocation10 + $0x8] sm:$0xff] %v1325_v55 }
 0x15b   :  { %v569_v9 = vpop.f32.mrf.mxu2  ;;  %v888_v50 = vpop.f32.mrf.mxu3 }
 0x15c   :  { %v955_v58 = vpop.f32.mrf.mxu0  ;;  %v675_v49 = vadd.f32 %v674_v17, %v569_v9 }
 0x15d   :  { %v956_v25 = vadd.f32 %v1362_v5, %v955_v58 }
 0x15e   :  { %v734_v62 = vadd.f32 %v733_v22, %v675_v49 }
 0x160   :  { %v779_v45 = vadd.f32 %v778_v48, %v734_v62 }
 0x161   :  { %v1064_v8 = vpop.f32.mrf.mxu1 }
 0x162   :  { %v1065_v52 = vadd.f32 %v1064_v8, %v956_v25 }
 0x163   :  { %v847_v4 = vpop.f32.mrf.mxu2  ;;  %v892_v14 = vpop.f32.mrf.mxu3 }
 0x164   :  { %v848_v16 = vadd.f32 %v847_v4, %v773_v63 }
 0x166   :  { %v889_v27 = vadd.f32 %v888_v50, %v848_v16 }
 0x167   :  { %v963_v18 = vpop.f32.mrf.mxu0 }
 0x168   :  { %1330 = vst [vmem:[#allocation10 + $0x10] sm:$0xff] %v889_v27  ;;  %v964_v43 = vadd.f32 %v1362_v5, %v963_v18 }
 0x16a   :  { %v1068_v51 = vpop.f32.mrf.mxu1 }
 0x16b   :  { %v851_v31 = vpop.f32.mrf.mxu2  ;;  %v1069_v22 = vadd.f32 %v1068_v51, %v964_v43 }
 0x16c   :  { %v852_v23 = vadd.f32 %v851_v31, %v779_v45 }
 0x16e   :  { %v893_v24 = vadd.f32 %v892_v14, %v852_v23  ;;  %v1166_v56 = vpop.f32.mrf.mxu3 }
 0x170   :  { %1331 = vst [vmem:[#allocation10 + $0x18] sm:$0xff] %v893_v24 }
 0x171   :  { %v1241_v17 = vpop.f32.mrf.mxu0 }
 0x173   :  { %v1122_v10 = vpop.f32.mrf.mxu2  ;;  %v1282_v7 = vpop.f32.mrf.mxu1 }
 0x174   :  { %v1123_v26 = vadd.f32 %v1122_v10, %v1065_v52 }
 0x176   :  { %v1167_v21 = vadd.f32 %v1166_v56, %v1123_v26  ;;  %v1172_v53 = vpop.f32.mrf.mxu3 }
 0x178   :  { %v1242_v59 = vadd.f32 %v1241_v17, %v1167_v21 }
 0x179   :  { %v1245_v54 = vpop.f32.mrf.mxu0 }
 0x17a   :  { %v1283_v30 = vadd.f32 %v1282_v7, %v1242_v59 }
 0x17b   :  { %v1127_v38 = vpop.f32.mrf.mxu2  ;;  %v1286_v0 = vpop.f32.mrf.mxu1 }
 0x17c   :  { %1332 = vst [vmem:[#allocation10 + $0x20] sm:$0xff] %v1283_v30  ;;  %v1128_v37 = vadd.f32 %v1127_v38, %v1069_v22 }
 0x17e   :  { %v1173_v48 = vadd.f32 %v1172_v53, %v1128_v37 }
 0x180   :  { %v1246_v1 = vadd.f32 %v1245_v54, %v1173_v48 }
 0x182   :  { %v1287_v6 = vadd.f32 %v1286_v0, %v1246_v1 }
 0x184   :  { %1333 = vst [vmem:[#allocation10 + $0x28] sm:$0xff] %v1287_v6 }
 0x185   :  { %1346 = dma.vmem_to_hbm [thread:$0]  %s1339_s5, 768, %s1341_s19, [#allocation4], %s1496_s29, %s1496_s29, %s1497_s30  }
 0x186   :  { %1493 = dma.done.wait [#allocation4], 768  }
 0x187   :  { %1494 = vsyncadd [#allocation4], 4294966528 }
 0x188   :  { %1351 = vsyncpa [#allocation3], 1 }
 0x189   :  { %1352 = vsyncpa [#allocation6], 1 }
 0x18a   :  { %1353 = vsyncpa [#allocation9], 1 }
 0x18b   :  { %1354 = vsyncpa [#allocation4], 1 }

// kernel: latent_encoding_forward.2
= control target key start
LH: loop header
LB: loop body
LE: loop exit
PB: predicated region body
PF: predicated region fallthrough
CT: control target
= control target key end

     0   :  { %11 = vsyncpa [#allocation3], 0  ;;  %s7101_s0 = inlined_call_operand.vmem [shape: f32[64,128], index: 0, kind: input, shape index: {}]   ;;  %s7102_s1 = inlined_call_operand.hbm [shape: bf16[6,128,128], index: 1, kind: input, shape index: {}]   ;;  %s7103_s2 = inlined_call_operand.hbm [shape: bf16[6,128,2048], index: 2, kind: input, shape index: {}]   ;;  %s7104_s3 = inlined_call_operand.hbm [shape: bf16[6,2048,128], index: 3, kind: input, shape index: {}]   ;;  %s7105_s4 = inlined_call_operand.hbm [shape: f32[6,1,2048], index: 4, kind: input, shape index: {}]   ;;  %s7106_s5 = inlined_call_operand.hbm [shape: f32[6,8,128], index: 5, kind: input, shape index: {}]   ;;  %s7107_s6 = inlined_call_operand.vmem [shape: f32[64,128], index: 6, kind: output, shape index: {}]  }
   0x1   :  { %12 = vsyncpa [#allocation5], 0 }
   0x2   :  { %13 = vsyncpa [#allocation8], 0  ;;  %s5669_s21 = smov 0   ;;  %s5671_s22 = smov 0  }
   0x3   :  { %s5673_s23 = smov 0  }
   0x4 LB: > { %s227_s26 = sshll.u32 %s7103_s2, 4  ;;  %s3953_s27 = sadd.s32 4294967295, %s5619_s23   ;;  %s5619_s23 = sphi %s5673_s23, %s19_s23   ;;  %s5615_s22 = sphi %s5671_s22, %s7148_s22   ;;  %s5611_s21 = sphi %s5669_s21, %s7147_s21   ;;  %s228_s26 = int_to_ptr.hbm [resolvable:$true] %s227_s26 }
   0x5   : > { %p3954_p0 = scmp.ge.s32.totalorder %s5619_s23, 1  ;;  %p193_p1 = scmp.lt.s32.totalorder %s5619_s23, 7 }
   0x6   : > { %p5690_p2 = scmp.eq.s32.totalorder %s3953_s27, 0  ;;  %s5621_s30 = smov [#allocation4]  }
   0x7   : > { %p5694_p3 = pnand %p3954_p0, %p193_p1  ;;  %s229_s7 = sshll.u32 %s5621_s30, 4  ;;  %s230_s7 = int_to_ptr.vmem [resolvable:$true] %s229_s7 }
   0x8   : > { %s255_s10 = sshll.u32 %s7105_s4, 4  ;;  %s5622_s12 = smov [#allocation7]   ;;  %s256_s10 = int_to_ptr.hbm [resolvable:$true] %s255_s10 }
   0x9   : > { %p5337_p4 = pneg %p5694_p3  ;;  %s257_s13 = sshll.u32 %s5622_s12, 4  ;;  %s258_s13 = int_to_ptr.vmem [resolvable:$true] %s257_s13 }
   0xa   : > { %s5623_s14 = smov 1024   ;;  %s5624_s15 = smov 64  }
   0xb   : > { %p5705_p5 = pnand %p5690_p2, %p5337_p4  ;;  %s5625_s16 = smov 256  }
   0xc   : > { %s5626_s17 = smov 16   ;;  %s213_s20 = sshll.u32 %s7102_s1, 4  ;;  %s214_s20 = int_to_ptr.hbm [resolvable:$true] %s213_s20 }
   0xd   : > { %5343 = dma.hbm_to_vmem [thread:$0]  (!%p5705_p5), %s228_s26, 98304, %s230_s7, [#allocation5], %s5623_s14, %s5623_s14, %s5624_s15  }
   0xe   : > { %5349 = dma.hbm_to_vmem [thread:$0]  (!%p5705_p5), %s256_s10, 1536, %s258_s13, [#allocation8], %s5625_s16, %s5625_s16, %s5626_s17  }
   0xf   : > { %s28_s24 = sadd.s32 1, %s5615_s22  ;;  %s5627_s25 = smov [#allocation2]  }
  0x10   : > { %p29_p6 = scmp.ge.s32.totalorder %s28_s24, 6  ;;  %s215_s27 = sshll.u32 %s5627_s25, 4  ;;  %s216_s27 = int_to_ptr.vmem [resolvable:$true] %s215_s27 }
  0x11   : > { %s241_s26 = sshll.u32 %s7104_s3, 4  ;;  %s5628_s7 = smov 4   ;;  %s242_s26 = int_to_ptr.hbm [resolvable:$true] %s241_s26 }
  0x12   : > { %s7150_s24 = smov (%p29_p6, %s28_s24), 0  ;;  %s5629_s9 = smov [#allocation6]  }
  0x13   : > { %5340 = dma.hbm_to_vmem [thread:$0]  (!%p5705_p5), %s214_s20, 6144, %s216_s27, [#allocation3], %s5624_s15, %s5624_s15, %s5628_s7  }
  0x14   : > { %s243_s10 = sshll.u32 %s5629_s9, 4  ;;  %s269_s14 = sshll.u32 %s7106_s5, 4  ;;  %s244_s10 = int_to_ptr.vmem [resolvable:$true] %s243_s10  ;;  %s270_s14 = int_to_ptr.hbm [resolvable:$true] %s269_s14 }
  0x15   : > { %5346 = dma.hbm_to_vmem [thread:$0]  (!%p5705_p5), %s242_s26, 98304, %s244_s10, [#allocation5], %s5624_s15, %s5624_s15, %s5628_s7  }
  0x16   : > { %s5630_s16 = smov [#allocation9]   ;;  %s5631_s18 = smov 128  }
  0x17   : > { %s271_s17 = sshll.u32 %s5630_s16, 4  ;;  %s5632_s19 = smov 8   ;;  %s272_s17 = int_to_ptr.vmem [resolvable:$true] %s271_s17 }
  0x18   : > { %5352 = dma.hbm_to_vmem [thread:$0]  (!%p5705_p5), %s270_s14, 768, %s272_s17, [#allocation8], %s5631_s18, %s5631_s18, %s5632_s19  }
  0x19   : > { %287 = sbr.rel (%p5694_p3) target bundleno = 1488 (0x5d0), region = 44 }
  0x1e   : > { %5598 = dma.done.wait (%p5690_p2), [#allocation3], 6144  }
  0x1f   : > { %5600 = vsyncadd (%p5690_p2), [#allocation3], 4294961152 }
  0x20   : > { %5602 = dma.done.wait (%p5690_p2), [#allocation5], 196608  }
  0x21   : > { %5604 = vsyncadd (%p5690_p2), [#allocation5], 4294770688 }
  0x22   : > { %5606 = dma.done.wait (%p5690_p2), [#allocation8], 2304  }
  0x23   : > { %5608 = vsyncadd (%p5690_p2), [#allocation8], 4294964992  ;;  %p3967_p7 = scmp.ne.s32.totalorder %s5611_s21, 0 }
  0x25   : > { %353 = sbr.rel (%p3967_p7) target bundleno = 51 (0x33), region = 68 }
  0x2a   : > { %v354_v0 = vld [vmem:[%s7101_s0] sm:$0xff]  ;;  %v355_v1 = vld [vmem:[%s7101_s0 + $0x8] sm:$0xff]  ;;  %v356_v2 = vld [vmem:[%s7101_s0 + $0x10] sm:$0xff] }
  0x2b   : > { %362 = vst [vmem:[%s7107_s6] sm:$0xff] %v354_v0  ;;  %v357_v3 = vld [vmem:[%s7101_s0 + $0x18] sm:$0xff]  ;;  %v358_v4 = vld [vmem:[%s7101_s0 + $0x20] sm:$0xff]  ;;  %v359_v5 = vld [vmem:[%s7101_s0 + $0x28] sm:$0xff] }
  0x2c   : > { %363 = vst [vmem:[%s7107_s6 + $0x8] sm:$0xff] %v355_v1  ;;  %v360_v6 = vld [vmem:[%s7101_s0 + $0x30] sm:$0xff]  ;;  %v361_v7 = vld [vmem:[%s7101_s0 + $0x38] sm:$0xff] }
  0x2d   : > { %364 = vst [vmem:[%s7107_s6 + $0x10] sm:$0xff] %v356_v2 }
  0x2e   : > { %365 = vst [vmem:[%s7107_s6 + $0x18] sm:$0xff] %v357_v3 }
  0x2f   : > { %366 = vst [vmem:[%s7107_s6 + $0x20] sm:$0xff] %v358_v4 }
  0x30   : > { %367 = vst [vmem:[%s7107_s6 + $0x28] sm:$0xff] %v359_v5 }
  0x31   : > { %368 = vst [vmem:[%s7107_s6 + $0x30] sm:$0xff] %v360_v6 }
  0x32   : > { %369 = vst [vmem:[%s7107_s6 + $0x38] sm:$0xff] %v361_v7 }
  0x33 PF: > { %s5034_s10 = sshll.u32 %s5611_s21, 6  ;;  %v370_v15 = vld [vmem:[%s7107_s6] sm:$0xff]  ;;  %v371_v16 = vld [vmem:[%s7107_s6 + $0x8] sm:$0xff]  ;;  %s3968_s7 = sshll.u32 %s5611_s21, 3  ;;  %v5633_v51 = vmov 128.0  }
  0x34   : > { %s387_s12 = scalar_lea.vmem [#allocation2], %s5034_s10  ;;  %v381_v20 = vpack.c.bf16 %v371_v16, %v370_v15  ;;  %v372_v22 = vld [vmem:[%s7107_s6 + $0x10] sm:$0xff]  ;;  %s5820_s9 = scalar_lea.vmem [#allocation9], %s3968_s7  ;;  %5400 = vrcp.f32 %v5633_v51 }
  0x35   : > { %v5042_v8 = vld [vmem:[%s387_s12 + $0x38] sm:$0xff]  ;;  %v5041_v9 = vld [vmem:[%s387_s12 + $0x30] sm:$0xff]  ;;  %v5040_v10 = vld [vmem:[%s387_s12 + $0x28] sm:$0xff]  ;;  %s5043_s10 = sshll.u32 %s5611_s21, 10  ;;  %s3969_s14 = sshll.u32 %s5611_s21, 4 }
  0x36   : > { %453 = vmatpush.bf16.msra.mxu0 %v5042_v8  ;;  %5301 = vmatpush.bf16.msra.mxu1 %v5042_v8  ;;  %v5039_v11 = vld [vmem:[%s387_s12 + $0x20] sm:$0xff]  ;;  %v5038_v12 = vld [vmem:[%s387_s12 + $0x18] sm:$0xff]  ;;  %v5037_v13 = vld [vmem:[%s387_s12 + $0x10] sm:$0xff]  ;;  %s6337_s13 = scalar_lea.vmem [#allocation6], %s5043_s10  ;;  %s6352_s16 = scalar_lea.vmem [#allocation7], %s3969_s14 }
  0x37   : > { %v5036_v14 = vld [vmem:[%s387_s12 + $0x8] sm:$0xff]  ;;  %v5035_v17 = vld [vmem:[%s387_s12] sm:$0xff]  ;;  %v373_v23 = vld [vmem:[%s7107_s6 + $0x18] sm:$0xff]  ;;  %s5869_s12 = scalar_lea.vmem [#allocation4], %s5043_s10 }
  0x38   : > { %v374_v18 = vld [vmem:[%s7107_s6 + $0x20] sm:$0xff]  ;;  %v375_v19 = vld [vmem:[%s7107_s6 + $0x28] sm:$0xff]  ;;  %v376_v24 = vld [vmem:[%s7107_s6 + $0x30] sm:$0xff]  ;;  %v382_v26 = vpack.c.bf16 %v373_v23, %v372_v22 }
  0x39   : > { %v383_v21 = vpack.c.bf16 %v375_v19, %v374_v18  ;;  %v377_v25 = vld [vmem:[%s7107_s6 + $0x38] sm:$0xff]  ;;  %v5823_v28 = vld [vmem:[%s5820_s9] sm:$0xff] }
  0x3a   : > { %454 = vmatpush.bf16.msra.mxu0 %v5041_v9  ;;  %5302 = vmatpush.bf16.msra.mxu1 %v5041_v9  ;;  %v384_v27 = vpack.c.bf16 %v377_v25, %v376_v24  ;;  %v404_v29 = vperm.slane %v5823_v28, 0  ;;  %v5401_v52 = vpop.eup %5400  ;;  %v5132_v51 = vld [vmem:[%s5869_s12 + $0x2bc] sm:$0xf0] }
  0x3b   : > { %v507_v53 = vmul.f32 128.0, %v5401_v52  ;;  %vm511_vm0 = vweird.f32 %v5401_v52 }
  0x3d   : > { %v508_v54 = vsub.f32 1.0, %v507_v53 }
  0x3e   : > { %455 = vmatpush.bf16.msra.mxu0 %v5040_v10  ;;  %5303 = vmatpush.bf16.msra.mxu1 %v5040_v10 }
  0x3f   : > { %v509_v55 = vmul.f32 %v5401_v52, %v508_v54  ;;  %v4329_v54 = vld [vmem:[%s5869_s12 + $0x2c0] sm:$0xf0] }
  0x41   : > { %v510_v56 = vadd.f32 %v5401_v52, %v509_v55  ;;  %v4335_v55 = vld [vmem:[%s5869_s12 + $0x288] sm:$0xf] }
  0x42   : > { %456 = vmatpush.bf16.msra.mxu0 %v5039_v11  ;;  %5304 = vmatpush.bf16.msra.mxu1 %v5039_v11 }
  0x43   : > { %v5826_v57 = vsel %vm511_vm0, %v5401_v52, %v510_v56  ;;  %v5124_v52 = vld [vmem:[%s5869_s12 + $0x284] sm:$0xf]  ;;  %v5133_v56 = vld [vmem:[%s5869_s12 + $0x2c4] sm:$0xf0] }
  0x44   : > { %7121 = vst [vmem:[#allocation13_spill] sm:$0xff] %v5826_v57 }
  0x46   : > { %457 = vmatpush.bf16.msra.mxu0 %v5038_v12  ;;  %5305 = vmatpush.bf16.msra.mxu1 %v5038_v12 }
  0x4a   : > { %458 = vmatpush.bf16.msra.mxu0 %v5037_v13  ;;  %5306 = vmatpush.bf16.msra.mxu1 %v5037_v13 }
  0x4e   : > { %459 = vmatpush.bf16.msra.mxu0 %v5036_v14  ;;  %5307 = vmatpush.bf16.msra.mxu1 %v5036_v14 }
  0x52   : > { %460 = vmatpush.bf16.msra.mxu0 %v5035_v17  ;;  %5308 = vmatpush.bf16.msra.mxu1 %v5035_v17 }
  0x55   : > { %461 = vmatmul.bf16.vlgmr.msra.gmra.mxu0 %v381_v20  ;;  %471 = vmatmul.bf16.vlgmr.msra.gmra.mxu1 %v383_v21 }
  0x65   : > { %466 = vmatmul.bf16.gmra.mxu0 %v382_v26  ;;  %476 = vmatmul.bf16.gmra.mxu1 %v384_v27  ;;  %v5164_v26 = vld [vmem:[%s5869_s12 + $0x3bc] sm:$0xf0]  ;;  %v5156_v27 = vld [vmem:[%s5869_s12 + $0x384] sm:$0xf] }
  0xd2   : > { %v462_v30 = vpop.f32.mrf.mxu0  ;;  %v472_v31 = vpop.f32.mrf.mxu1 }
  0xd3   : > { %v463_v32 = vadd.f32 %v462_v30, %v404_v29  ;;  %v473_v33 = vadd.f32 %v472_v31, %v404_v29  ;;  %v4457_v30 = vld [vmem:[%s5869_s12 + $0x3c0] sm:$0xf0]  ;;  %v4463_v31 = vld [vmem:[%s5869_s12 + $0x388] sm:$0xf] }
  0xd5   : > { %v486_v34 = vadd.f32 %v473_v33, %v374_v18  ;;  %v482_v35 = vadd.f32 %v463_v32, %v370_v15  ;;  %v5165_v32 = vld [vmem:[%s5869_s12 + $0x3c4] sm:$0xf0]  ;;  %v4460_v33 = vor.u32 %v5156_v27, %v4457_v30  ;;  %v4209_v30 = vld [vmem:[%s5869_s12 + $0x1c8] sm:$0xf0] }
  0xd7   : > { %498 = vadd.xlane.f32.xlu2 %v486_v34  ;;  %490 = vadd.xlane.f32.xlu0 %v482_v35 }
  0xd8   : > { %1516 = vmatpush.bf16.msra.mxu2 %v4460_v33  ;;  %v5084_v33 = vld [vmem:[%s5869_s12 + $0x13c] sm:$0xf0] }
  0xda   : > { %v464_v36 = vpop.f32.mrf.mxu0  ;;  %v474_v37 = vpop.f32.mrf.mxu1 }
  0xdb   : > { %v465_v38 = vadd.f32 %v464_v36, %v404_v29  ;;  %v475_v39 = vadd.f32 %v474_v37, %v404_v29  ;;  %v4465_v36 = vld [vmem:[%s5869_s12 + $0x3c8] sm:$0xf0] }
  0xdd   : > { %v487_v40 = vadd.f32 %v475_v39, %v375_v19  ;;  %v483_v41 = vadd.f32 %v465_v38, %v371_v16  ;;  %v4391_v38 = vld [vmem:[%s5869_s12 + $0x300] sm:$0xf] }
  0xde   : > { %v5148_v39 = vld [vmem:[%s5869_s12 + $0x33c] sm:$0xf0] }
  0xdf   : > { %500 = vadd.xlane.f32.xlu2 %v487_v40  ;;  %492 = vadd.xlane.f32.xlu0 %v483_v41 }
  0xe2   : > { %v467_v42 = vpop.f32.mrf.mxu0  ;;  %v477_v43 = vpop.f32.mrf.mxu1 }
  0xe3   : > { %v468_v44 = vadd.f32 %v467_v42, %v404_v29  ;;  %v478_v45 = vadd.f32 %v477_v43, %v404_v29  ;;  %v4393_v42 = vld [vmem:[%s5869_s12 + $0x340] sm:$0xf0]  ;;  %v4399_v43 = vld [vmem:[%s5869_s12 + $0x308] sm:$0xf] }
  0xe5   : > { %v488_v46 = vadd.f32 %v478_v45, %v376_v24  ;;  %v484_v47 = vadd.f32 %v468_v44, %v372_v22  ;;  %v5149_v44 = vld [vmem:[%s5869_s12 + $0x344] sm:$0xf0] }
  0xe7   : > { %502 = vadd.xlane.f32.xlu2 %v488_v46  ;;  %494 = vadd.xlane.f32.xlu1 %v484_v47 }
  0xea   : > { %v469_v48 = vpop.f32.mrf.mxu0  ;;  %v479_v63 = vpop.f32.mrf.mxu1 }
  0xeb   : > { %v470_v49 = vadd.f32 %v469_v48, %v404_v29  ;;  %v480_v1 = vadd.f32 %v479_v63, %v404_v29  ;;  %v4401_v48 = vld [vmem:[%s5869_s12 + $0x348] sm:$0xf0] }
  0xed   : > { %v485_v50 = vadd.f32 %v470_v49, %v373_v23  ;;  %v5837_v5 = vadd.f32 %v480_v1, %v377_v25  ;;  %v4455_v25 = vld [vmem:[%s5869_s12 + $0x380] sm:$0xf] }
  0xee   : > { %v4456_v29 = vor.u32 %v5164_v26, %v4455_v25  ;;  %v5116_v1 = vld [vmem:[%s5869_s12 + $0x23c] sm:$0xf0]  ;;  %v5101_v25 = vld [vmem:[%s5869_s12 + $0x1c4] sm:$0xf0] }
  0xef   : > { %496 = vadd.xlane.f32.xlu1 %v485_v50 }
  0xf0   : > { %1487 = vmatpush.bf16.msrb.mxu1 %v4456_v29  ;;  %v5093_v29 = vld [vmem:[%s5869_s12 + $0x18c] sm:$0xf] }
 0x14a   : > { %v491_v58 = vpop.xlane.xlu0 %490  ;;  %v499_v62 = vpop.xlane.xlu2 %498 }
 0x14b   : > { %v513_v59 = vmul.f32 %v5826_v57, %v491_v58  ;;  %v517_v4 = vmul.f32 %v5826_v57, %v499_v62  ;;  %v4332_v58 = vor.u32 %v5124_v52, %v4329_v54  ;;  %v4337_v62 = vld [vmem:[%s5869_s12 + $0x2c8] sm:$0xf0] }
 0x14c   : > { %v5061_v54 = vld [vmem:[%s5869_s12 + $0x8c] sm:$0xf] }
 0x14d   : > { %v5829_v60 = vsub.f32 %v482_v35, %v513_v59  ;;  %v5842_v9 = vsub.f32 %v486_v34, %v517_v4  ;;  %v4464_v34 = vor.u32 %v5165_v32, %v4463_v31  ;;  %v5157_v35 = vld [vmem:[%s5869_s12 + $0x38c] sm:$0xf]  ;;  %v4336_v59 = vor.u32 %v5133_v56, %v4335_v55  ;;  %v4135_v32 = vld [vmem:[%s5869_s12 + $0x100] sm:$0xf] }
 0x14e   : > { %v4468_v37 = vor.u32 %v5157_v35, %v4465_v36  ;;  %v4212_v31 = vor.u32 %v5093_v29, %v4209_v30  ;;  %v4136_v35 = vor.u32 %v5084_v33, %v4135_v32  ;;  %v4137_v36 = vld [vmem:[%s5869_s12 + $0x140] sm:$0xf0]  ;;  %v4081_v55 = vld [vmem:[%s5869_s12 + $0xc8] sm:$0xf0] }
 0x14f   : > { %v529_v61 = vmul.f32 %v5829_v60, %v5829_v60  ;;  %v533_v13 = vmul.f32 %v5842_v9, %v5842_v9  ;;  %1545 = vmatpush.bf16.msra.mxu3 %v4464_v34  ;;  %v5076_v34 = vld [vmem:[%s5869_s12 + $0x104] sm:$0xf] }
 0x150   : > { %1574 = vmatpush.bf16.msrb.mxu0 %v4468_v37  ;;  %v4143_v37 = vld [vmem:[%s5869_s12 + $0x108] sm:$0xf] }
 0x151   : > { %537 = vadd.xlane.f32.xlu0 %v529_v61  ;;  %v5125_v61 = vld [vmem:[%s5869_s12 + $0x28c] sm:$0xf] }
 0x152   : > { %v493_v0 = vpop.xlane.xlu0 %492  ;;  %v501_v7 = vpop.xlane.xlu2 %500  ;;  %v4340_v63 = vor.u32 %v5125_v61, %v4337_v62  ;;  %v5052_v61 = vld [vmem:[%s5869_s12 + $0x3c] sm:$0xf0]  ;;  %v5044_v62 = vld [vmem:[%s5869_s12 + $0x4] sm:$0xf] }
 0x153   : > { %v514_v2 = vmul.f32 %v5826_v57, %v493_v0  ;;  %v518_v12 = vmul.f32 %v5826_v57, %v501_v7  ;;  %v4263_v0 = vld [vmem:[%s5869_s12 + $0x200] sm:$0xf]  ;;  %v4271_v7 = vld [vmem:[%s5869_s12 + $0x208] sm:$0xf] }
 0x154   : > { %v4264_v4 = vor.u32 %v5116_v1, %v4263_v0  ;;  %v4009_v1 = vld [vmem:[%s5869_s12 + $0x40] sm:$0xf0] }
 0x155   : > { %v5834_v3 = vsub.f32 %v483_v41, %v514_v2  ;;  %v5852_v16 = vsub.f32 %v487_v40, %v518_v12  ;;  %v5140_v40 = vld [vmem:[%s5869_s12 + $0x304] sm:$0xf]  ;;  %v4392_v41 = vor.u32 %v5148_v39, %v4391_v38  ;;  %v5085_v38 = vld [vmem:[%s5869_s12 + $0x144] sm:$0xf0]  ;;  %v4140_v39 = vor.u32 %v5076_v34, %v4137_v36 }
 0x156   : > { %v4396_v45 = vor.u32 %v5140_v40, %v4393_v42  ;;  %v5108_v2 = vld [vmem:[%s5869_s12 + $0x204] sm:$0xf]  ;;  %v4144_v40 = vor.u32 %v5085_v38, %v4143_v37  ;;  %v4145_v42 = vld [vmem:[%s5869_s12 + $0x148] sm:$0xf0] }
 0x157   : > { %v530_v6 = vmul.f32 %v5834_v3, %v5834_v3  ;;  %v534_v22 = vmul.f32 %v5852_v16, %v5852_v16  ;;  %1488 = vmatpush.bf16.msrb.mxu1 %v4392_v41  ;;  %v5077_v41 = vld [vmem:[%s5869_s12 + $0x10c] sm:$0xf] }
 0x158   : > { %1517 = vmatpush.bf16.msra.mxu2 %v4396_v45  ;;  %v5068_v45 = vld [vmem:[%s5869_s12 + $0xbc] sm:$0xf0] }
 0x159   : > { %504 = vadd.xlane.f32.xlu0 %v5837_v5  ;;  %539 = vadd.xlane.f32.xlu1 %v530_v6  ;;  %v4265_v6 = vld [vmem:[%s5869_s12 + $0x240] sm:$0xf0] }
 0x15a   : > { %v495_v8 = vpop.xlane.xlu1 %494  ;;  %v503_v18 = vpop.xlane.xlu2 %502 }
 0x15b   : > { %v515_v10 = vmul.f32 %v5826_v57, %v495_v8  ;;  %v519_v20 = vmul.f32 %v5826_v57, %v503_v18  ;;  %v5117_v8 = vld [vmem:[%s5869_s12 + $0x244] sm:$0xf0]  ;;  %v5100_v18 = vld [vmem:[%s5869_s12 + $0x1bc] sm:$0xf0] }
 0x15c   : > { %1518 = vmatpush.bf16.msra.mxu2 %v4332_v58  ;;  %v4272_v12 = vor.u32 %v5117_v8, %v4271_v7  ;;  %v4084_v58 = vor.u32 %v5061_v54, %v4081_v55  ;;  %v5045_v7 = vld [vmem:[%s5869_s12 + $0xc] sm:$0xf]  ;;  %v5958_v54 = vperm.slane %v5823_v28, 3 }
 0x15d   : > { %v5845_v11 = vsub.f32 %v484_v47, %v515_v10  ;;  %v5862_v23 = vsub.f32 %v488_v46, %v519_v20  ;;  %v4400_v46 = vor.u32 %v5149_v44, %v4399_v43  ;;  %v5141_v47 = vld [vmem:[%s5869_s12 + $0x30c] sm:$0xf]  ;;  %v4268_v10 = vor.u32 %v5108_v2, %v4265_v6  ;;  %v5092_v20 = vld [vmem:[%s5869_s12 + $0x184] sm:$0xf]  ;;  %v4071_v44 = vld [vmem:[%s5869_s12 + $0x80] sm:$0xf] }
 0x15e   : > { %v4404_v49 = vor.u32 %v5141_v47, %v4401_v48  ;;  %v4148_v43 = vor.u32 %v5077_v41, %v4145_v42  ;;  %v4072_v47 = vor.u32 %v5068_v45, %v4071_v44  ;;  %v4073_v48 = vld [vmem:[%s5869_s12 + $0xc0] sm:$0xf0]  ;;  %v4015_v2 = vld [vmem:[%s5869_s12 + $0x8] sm:$0xf]  ;;  %v4017_v8 = vld [vmem:[%s5869_s12 + $0x48] sm:$0xf0] }
 0x15f   : > { %v531_v14 = vmul.f32 %v5845_v11, %v5845_v11  ;;  %v535_v24 = vmul.f32 %v5862_v23, %v5862_v23  ;;  %1546 = vmatpush.bf16.msra.mxu3 %v4400_v46  ;;  %v5060_v46 = vld [vmem:[%s5869_s12 + $0x84] sm:$0xf]  ;;  %v5053_v6 = vld [vmem:[%s5869_s12 + $0x44] sm:$0xf0]  ;;  %v5950_v44 = vperm.slane %v5823_v28, 2 }
 0x160   : > { %1575 = vmatpush.bf16.msrb.mxu0 %v4404_v49  ;;  %1519 = vmatpush.bf16.msra.mxu2 %v4268_v10  ;;  %v4079_v49 = vld [vmem:[%s5869_s12 + $0x88] sm:$0xf]  ;;  %v4076_v52 = vor.u32 %v5060_v46, %v4073_v48  ;;  %v4016_v10 = vor.u32 %v5053_v6, %v4015_v2 }
 0x161   : > { %545 = vadd.xlane.f32.xlu0 %v533_v13  ;;  %541 = vadd.xlane.f32.xlu1 %v531_v14  ;;  %v5109_v13 = vld [vmem:[%s5869_s12 + $0x20c] sm:$0xf] }
 0x162   : > { %v497_v15 = vpop.xlane.xlu1 %496  ;;  %v4273_v14 = vld [vmem:[%s5869_s12 + $0x248] sm:$0xf0] }
 0x163   : > { %v516_v17 = vmul.f32 %v5826_v57, %v497_v15  ;;  %1547 = vmatpush.bf16.msra.mxu3 %v4336_v59  ;;  %v4276_v15 = vor.u32 %v5109_v13, %v4273_v14  ;;  %v4007_v59 = vld [vmem:[%s5869_s12] sm:$0xf] }
 0x164   : > { %1576 = vmatpush.bf16.msrb.mxu0 %v4340_v63  ;;  %v4008_v0 = vor.u32 %v5052_v61, %v4007_v59 }
 0x165   : > { %v5855_v19 = vsub.f32 %v485_v50, %v516_v17  ;;  %v4327_v50 = vld [vmem:[%s5869_s12 + $0x280] sm:$0xf] }
 0x166   : > { %v4328_v53 = vor.u32 %v5132_v51, %v4327_v50  ;;  %v4199_v17 = vld [vmem:[%s5869_s12 + $0x180] sm:$0xf]  ;;  %v5069_v50 = vld [vmem:[%s5869_s12 + $0xc4] sm:$0xf0] }
 0x167   : > { %v532_v21 = vmul.f32 %v5855_v19, %v5855_v19  ;;  %1548 = vmatpush.bf16.msra.mxu3 %v4272_v12  ;;  %v4020_v12 = vor.u32 %v5045_v7, %v4017_v8  ;;  %v5143_v8 = vld [vmem:[%s5869_s12 + $0x31c] sm:$0xf] }
 0x168   : > { %1489 = vmatpush.bf16.msrb.mxu1 %v4328_v53  ;;  %1577 = vmatpush.bf16.msrb.mxu0 %v4276_v15  ;;  %v4080_v53 = vor.u32 %v5069_v50, %v4079_v49 }
 0x169   : > { %543 = vadd.xlane.f32.xlu2 %v532_v21  ;;  %547 = vadd.xlane.f32.xlu1 %v534_v22  ;;  %v4200_v21 = vor.u32 %v5100_v18, %v4199_v17  ;;  %v4201_v22 = vld [vmem:[%s5869_s12 + $0x1c0] sm:$0xf0] }
 0x16a   : > { %v4204_v26 = vor.u32 %v5092_v20, %v4201_v22 }
 0x16c   : > { %1490 = vmatpush.bf16.msrb.mxu1 %v4264_v4  ;;  %1520 = vmatpush.bf16.msra.mxu2 %v4204_v26  ;;  %v4012_v4 = vor.u32 %v5044_v62, %v4009_v1 }
 0x16d   : > { %1578 = vmatpush.bf16.msrb.mxu0 %v4212_v31 }
 0x170   : > { %1491 = vmatpush.bf16.msrb.mxu1 %v4200_v21  ;;  %1521 = vmatpush.bf16.msra.mxu2 %v4140_v39 }
 0x171   : > { %549 = vadd.xlane.f32.xlu2 %v535_v24  ;;  %v4207_v24 = vld [vmem:[%s5869_s12 + $0x188] sm:$0xf]  ;;  %1579 = vmatpush.bf16.msrb.mxu0 %v4148_v43 }
 0x172   : > { %v4208_v27 = vor.u32 %v5101_v25, %v4207_v24 }
 0x174   : > { %1549 = vmatpush.bf16.msra.mxu3 %v4208_v27  ;;  %1492 = vmatpush.bf16.msrb.mxu1 %v4136_v35 }
 0x175   : > { %1522 = vmatpush.bf16.msra.mxu2 %v4076_v52  ;;  %1580 = vmatpush.bf16.msrb.mxu0 %v4084_v58 }
 0x178   : > { %1550 = vmatpush.bf16.msra.mxu3 %v4144_v40  ;;  %1493 = vmatpush.bf16.msrb.mxu1 %v4072_v47 }
 0x179   : > { %1523 = vmatpush.bf16.msra.mxu2 %v4012_v4  ;;  %1581 = vmatpush.bf16.msrb.mxu0 %v4020_v12 }
 0x17c   : > { %1551 = vmatpush.bf16.msra.mxu3 %v4080_v53  ;;  %1494 = vmatpush.bf16.msrb.mxu1 %v4008_v0 }
 0x180   : > { %1552 = vmatpush.bf16.msra.mxu3 %v4016_v10 }
 0x1c4   : > { %v538_v51 = vpop.xlane.xlu0 %537 }
 0x1c5   : > { %v553_v56 = vmul.f32 %v538_v51, %v5826_v57 }
 0x1c7   : > { %v561_v63 = vadd.f32 1e-05, %v553_v56 }
 0x1c9   : > { %5402 = vrsqrt.f32 %v561_v63  ;;  %vm575_vm2 = vweird.f32 %v561_v63 }
 0x1cc   : > { %v540_v13 = vpop.xlane.xlu1 %539  ;;  %v505_v14 = vpop.xlane.xlu0 %504 }
 0x1cd   : > { %v554_v15 = vmul.f32 %v540_v13, %v5826_v57  ;;  %v520_v17 = vmul.f32 %v5826_v57, %v505_v14 }
 0x1cf   : > { %v5403_v18 = vpop.eup %5402  ;;  %v562_v20 = vadd.f32 1e-05, %v554_v15  ;;  %v5939_v21 = vsub.f32 %v5837_v5, %v520_v17  ;;  %v5158_v15 = vld [vmem:[%s5869_s12 + $0x394] sm:$0xf] }
 0x1d0   : > { %v570_v22 = vmul.f32 %v5403_v18, %v561_v63  ;;  %vm576_vm1 = vweird.f32 %v5403_v18  ;;  %v4473_v17 = vld [vmem:[%s5869_s12 + $0x3d0] sm:$0xf0] }
 0x1d1   : > { %5404 = vrsqrt.f32 %v562_v20  ;;  %v536_v24 = vmul.f32 %v5939_v21, %v5939_v21  ;;  %vm577_vm3 = vmor %vm575_vm2, %vm576_vm1  ;;  %vm585_vm5 = vweird.f32 %v562_v20 }
 0x1d2   : > { %v571_v25 = vmul.f32 %v5403_v18, %v570_v22  ;;  %v4409_v22 = vld [vmem:[%s5869_s12 + $0x350] sm:$0xf0] }
 0x1d3   : > { %551 = vadd.xlane.f32.xlu0 %v536_v24 }
 0x1d4   : > { %v572_v26 = vmul.f32 0.5, %v571_v25  ;;  %v542_v27 = vpop.xlane.xlu1 %541  ;;  %v546_v29 = vpop.xlane.xlu0 %545 }
 0x1d5   : > { %v555_v30 = vmul.f32 %v542_v27, %v5826_v57  ;;  %v557_v34 = vmul.f32 %v546_v29, %v5826_v57  ;;  %v5167_v27 = vld [vmem:[%s5869_s12 + $0x3d4] sm:$0xf0] }
 0x1d6   : > { %v573_v31 = vsub.f32 1.5, %v572_v26  ;;  %v4479_v26 = vld [vmem:[%s5869_s12 + $0x398] sm:$0xf] }
 0x1d7   : > { %v5405_v32 = vpop.eup %5404  ;;  %v563_v33 = vadd.f32 1e-05, %v555_v30  ;;  %v5945_v37 = vadd.f32 1e-05, %v557_v34 }
 0x1d8   : > { %v574_v35 = vmul.f32 %v5403_v18, %v573_v31  ;;  %v580_v5 = vmul.f32 %v5405_v32, %v562_v20  ;;  %vm586_vm4 = vweird.f32 %v5405_v32  ;;  %v5142_v20 = vld [vmem:[%s5869_s12 + $0x314] sm:$0xf]  ;;  %v4480_v31 = vor.u32 %v5167_v27, %v4479_v26 }
 0x1d9   : > { %5406 = vrsqrt.f32 %v563_v33  ;;  %vm587_vm6 = vmor %vm585_vm5, %vm586_vm4  ;;  %vm595_vm8 = vweird.f32 %v563_v33  ;;  %v4412_v30 = vor.u32 %v5142_v20, %v4409_v22  ;;  %vm615_vm1 = vweird.f32 %v5945_v37  ;;  %v5134_v20 = vld [vmem:[%s5869_s12 + $0x2cc] sm:$0xf0]  ;;  %v5127_v22 = vld [vmem:[%s5869_s12 + $0x29c] sm:$0xf] }
 0x1da   : > { %v581_v36 = vmul.f32 %v5405_v32, %v580_v5  ;;  %v578_v38 = vsel %vm577_vm3, %v5403_v18, %v574_v35  ;;  %5408 = vrsqrt.f32 %v5945_v37  ;;  %v4476_v18 = vor.u32 %v5158_v15, %v4473_v17  ;;  %1661 = vmatpush.bf16.msrb.mxu3 %v4480_v31  ;;  %v5135_v15 = vld [vmem:[%s5869_s12 + $0x2d4] sm:$0xf0]  ;;  %v4343_v17 = vld [vmem:[%s5869_s12 + $0x290] sm:$0xf] }
 0x1db   : > { %v649_v47 = vmul.f32 %v578_v38, %v5829_v60  ;;  %v4345_v38 = vld [vmem:[%s5869_s12 + $0x2d0] sm:$0xf0]  ;;  %v4287_v31 = vld [vmem:[%s5869_s12 + $0x218] sm:$0xf] }
 0x1dc   : > { %v582_v39 = vmul.f32 0.5, %v581_v36  ;;  %v544_v40 = vpop.xlane.xlu2 %543  ;;  %v548_v41 = vpop.xlane.xlu1 %547  ;;  %1632 = vmatpush.bf16.msrb.mxu2 %v4476_v18  ;;  %v5126_v36 = vld [vmem:[%s5869_s12 + $0x294] sm:$0xf] }
 0x1dd   : > { %v556_v42 = vmul.f32 %v544_v40, %v5826_v57  ;;  %v558_v43 = vmul.f32 %v548_v41, %v5826_v57  ;;  %v658_v55 = vmul.f32 %v5950_v44, %v649_v47 }
 0x1de   : > { %v583_v45 = vsub.f32 1.5, %v582_v39 }
 0x1df   : > { %v5407_v46 = vpop.eup %5406  ;;  %v564_v48 = vadd.f32 1e-05, %v556_v42  ;;  %v5954_v49 = vadd.f32 1e-05, %v558_v43  ;;  %v5966_v63 = vadd.f32 %v5958_v54, %v658_v55  ;;  %v4348_v42 = vor.u32 %v5126_v36, %v4345_v38 }
 0x1e0   : > { %v584_v50 = vmul.f32 %v5405_v32, %v583_v45  ;;  %v590_v51 = vmul.f32 %v5407_v46, %v563_v33  ;;  %v5962_v58 = vpop.eup %5408  ;;  %vm596_vm7 = vweird.f32 %v5407_v46  ;;  %v5166_v33 = vld [vmem:[%s5869_s12 + $0x3cc] sm:$0xf0]  ;;  %1633 = vmatpush.bf16.msrb.mxu2 %v4412_v30  ;;  %v4281_v30 = vld [vmem:[%s5869_s12 + $0x250] sm:$0xf0] }
 0x1e1   : > { %5410 = vrsqrt.f32 %v564_v48  ;;  %7122 = vst [vmem:[#allocation14_spill] sm:$0xff] %v5966_v63  ;;  %vm5981_vm9 = vmor %vm595_vm8, %vm596_vm7  ;;  %vm605_vm11 = vweird.f32 %v564_v48  ;;  %vm616_vm14 = vweird.f32 %v5962_v58  ;;  %vm625_vm15 = vweird.f32 %v5954_v49 }
 0x1e2   : > { %v588_v52 = vsel %vm587_vm6, %v5405_v32, %v584_v50  ;;  %v591_v53 = vmul.f32 %v5407_v46, %v590_v51  ;;  %5412 = vrsqrt.f32 %v5954_v49  ;;  %v4471_v32 = vld [vmem:[%s5869_s12 + $0x390] sm:$0xf]  ;;  %vm617_vm2 = vmor %vm615_vm1, %vm616_vm14 }
 0x1e3   : > { %v650_v60 = vmul.f32 %v588_v52, %v5834_v3  ;;  %v610_v3 = vmul.f32 %v5962_v58, %v5945_v37  ;;  %v4472_v5 = vor.u32 %v5166_v33, %v4471_v32  ;;  %v5119_v33 = vld [vmem:[%s5869_s12 + $0x254] sm:$0xf0] }
 0x1e4   : > { %v592_v56 = vmul.f32 0.5, %v591_v53  ;;  %1634 = vmatpush.bf16.msrb.mxu2 %v4348_v42  ;;  %v4288_v36 = vor.u32 %v5119_v33, %v4287_v31  ;;  %v5078_v42 = vld [vmem:[%s5869_s12 + $0x114] sm:$0xf]  ;;  %v5071_v33 = vld [vmem:[%s5869_s12 + $0xd4] sm:$0xf0] }
 0x1e5   : > { %v659_v59 = vmul.f32 %v5950_v44, %v650_v60  ;;  %v611_v13 = vmul.f32 %v5962_v58, %v610_v3  ;;  %1603 = vmatpush.bf16.msra.mxu1 %v4472_v5  ;;  %v5151_v3 = vld [vmem:[%s5869_s12 + $0x354] sm:$0xf0] }
 0x1e6   : > { %v593_v61 = vsub.f32 1.5, %v592_v56 }
 0x1e7   : > { %v5411_v62 = vpop.eup %5410  ;;  %v5969_v0 = vadd.f32 %v5958_v54, %v659_v59  ;;  %v612_v34 = vmul.f32 0.5, %v611_v13  ;;  %v5159_v59 = vld [vmem:[%s5869_s12 + $0x39c] sm:$0xf] }
 0x1e8   : > { %v5971_v1 = vpop.eup %5412  ;;  %v594_v28 = vmul.f32 %v5407_v46, %v593_v61  ;;  %v600_v2 = vmul.f32 %v5411_v62, %v564_v48  ;;  %vm606_vm10 = vweird.f32 %v5411_v62  ;;  %v4481_v61 = vld [vmem:[%s5869_s12 + $0x3d8] sm:$0xf0] }
 0x1e9   : > { %7123 = vst [vmem:[#allocation15_spill] sm:$0xff] %v5969_v0  ;;  %v5977_v4 = vpack.c.bf16 %v5969_v0, %v5966_v63  ;;  %v620_v6 = vmul.f32 %v5971_v1, %v5954_v49  ;;  %vm607_vm12 = vmor %vm605_vm11, %vm606_vm10  ;;  %v613_v43 = vsub.f32 1.5, %v612_v34  ;;  %vm626_vm13 = vweird.f32 %v5971_v1  ;;  %v4279_v34 = vld [vmem:[%s5869_s12 + $0x210] sm:$0xf] }
 0x1ea   : > { %v601_v7 = vmul.f32 %v5411_v62, %v600_v2  ;;  %v598_v12 = vsel %vm5981_vm9, %v5407_v46, %v594_v28  ;;  %vm627_vm0 = vmor %vm625_vm15, %vm626_vm13  ;;  %v4415_v28 = vld [vmem:[%s5869_s12 + $0x318] sm:$0xf]  ;;  %v4407_v2 = vld [vmem:[%s5869_s12 + $0x310] sm:$0xf] }
 0x1eb   : > { %v621_v10 = vmul.f32 %v5971_v1, %v620_v6  ;;  %1495 = vmatmul.bf16.vlgmr.msrb.gmra.mxu1 %v5977_v4  ;;  %1524 = vmatmul.bf16.vlgmr.msra.gmra.mxu2 %v5977_v4  ;;  %v651_v29 = vmul.f32 %v598_v12, %v5845_v11  ;;  %v614_v50 = vmul.f32 %v5962_v58, %v613_v43  ;;  %v5219_v0 = vld [vmem:[%s6337_s13 + $0x170] sm:$0xff] }
 0x1ec   : > { %v602_v14 = vmul.f32 0.5, %v601_v7  ;;  %1553 = vmatmul.bf16.vlgmr.msra.gmra.mxu3 %v5977_v4  ;;  %1582 = vmatmul.bf16.vlgmr.msrb.gmra.mxu0 %v5977_v4  ;;  %v4416_v6 = vor.u32 %v5151_v3, %v4415_v28  ;;  %v5150_v7 = vld [vmem:[%s5869_s12 + $0x34c] sm:$0xf0]  ;;  %v5062_v28 = vld [vmem:[%s5869_s12 + $0x94] sm:$0xf] }
 0x1ed   : > { %v622_v25 = vmul.f32 0.5, %v621_v10  ;;  %v660_v41 = vmul.f32 %v5950_v44, %v651_v29  ;;  %v618_v52 = vsel %vm617_vm2, %v5962_v58, %v614_v50  ;;  %v4417_v10 = vld [vmem:[%s5869_s12 + $0x358] sm:$0xf0]  ;;  %v4408_v12 = vor.u32 %v5150_v7, %v4407_v2  ;;  %v5110_v29 = vld [vmem:[%s5869_s12 + $0x214] sm:$0xf] }
 0x1ee   : > { %v603_v24 = vsub.f32 1.5, %v602_v14  ;;  %v653_v53 = vmul.f32 %v618_v52, %v5842_v9  ;;  %v550_v9 = vpop.xlane.xlu2 %549  ;;  %v4420_v13 = vor.u32 %v5143_v8, %v4417_v10  ;;  %1662 = vmatpush.bf16.msrb.mxu3 %v4416_v6  ;;  %v4351_v14 = vld [vmem:[%s5869_s12 + $0x298] sm:$0xf]  ;;  %v4284_v32 = vor.u32 %v5110_v29, %v4281_v30  ;;  %v4089_v2 = vld [vmem:[%s5869_s12 + $0xd0] sm:$0xf0] }
 0x1ef   : > { %v623_v40 = vsub.f32 1.5, %v622_v25  ;;  %v6011_v47 = vadd.f32 %v5958_v54, %v660_v41  ;;  %1604 = vmatpush.bf16.msra.mxu1 %v4408_v12  ;;  %v4352_v18 = vor.u32 %v5135_v15, %v4351_v14  ;;  %v4344_v25 = vor.u32 %v5134_v20, %v4343_v17  ;;  %v5094_v41 = vld [vmem:[%s5869_s12 + $0x194] sm:$0xf]  ;;  %v4223_v50 = vld [vmem:[%s5869_s12 + $0x198] sm:$0xf] }
 0x1f0   : > { %v604_v35 = vmul.f32 %v5411_v62, %v603_v24  ;;  %v662_v55 = vmul.f32 %v5950_v44, %v653_v53  ;;  %v4353_v24 = vld [vmem:[%s5869_s12 + $0x2d8] sm:$0xf0]  ;;  %1635 = vmatpush.bf16.msrb.mxu2 %v4284_v32  ;;  %v5102_v53 = vld [vmem:[%s5869_s12 + $0x1cc] sm:$0xf0]  ;;  %v4159_v12 = vld [vmem:[%s5869_s12 + $0x118] sm:$0xf]  ;;  %v4092_v20 = vor.u32 %v5062_v28, %v4089_v2 }
 0x1f1   : > { %v624_v46 = vmul.f32 %v5971_v1, %v623_v40  ;;  %7126 = vst [vmem:[#allocation16_spill] sm:$0xff] %v6011_v47  ;;  %v4356_v26 = vor.u32 %v5127_v22, %v4353_v24  ;;  %v4289_v40 = vld [vmem:[%s5869_s12 + $0x258] sm:$0xf0]  ;;  %v4151_v6 = vld [vmem:[%s5869_s12 + $0x110] sm:$0xf] }
 0x1f2   : > { %v608_v39 = vsel %vm607_vm12, %v5411_v62, %v604_v35  ;;  %v6038_v56 = vadd.f32 %v5958_v54, %v662_v55  ;;  %1663 = vmatpush.bf16.msrb.mxu3 %v4352_v18  ;;  %v5118_v35 = vld [vmem:[%s5869_s12 + $0x24c] sm:$0xf0]  ;;  %v5079_v17 = vld [vmem:[%s5869_s12 + $0x11c] sm:$0xf]  ;;  %v5046_v24 = vld [vmem:[%s5869_s12 + $0x14] sm:$0xf] }
 0x1f3   : > { %v652_v11 = vmul.f32 %v608_v39, %v5855_v19  ;;  %v628_v51 = vsel %vm627_vm0, %v5971_v1, %v624_v46  ;;  %v4484_v1 = vor.u32 %v5159_v59, %v4481_v61  ;;  %1605 = vmatpush.bf16.msra.mxu1 %v4344_v25  ;;  %v4280_v38 = vor.u32 %v5118_v35, %v4279_v34  ;;  %v5111_v39 = vld [vmem:[%s5869_s12 + $0x21c] sm:$0xf]  ;;  %v4153_v46 = vld [vmem:[%s5869_s12 + $0x150] sm:$0xf0]  ;;  %v5086_v7 = vld [vmem:[%s5869_s12 + $0x14c] sm:$0xf0] }
 0x1f4   : > { %v654_v49 = vmul.f32 %v628_v51, %v5852_v16  ;;  %7129 = vst [vmem:[#allocation19_spill] sm:$0xff] %v6038_v56  ;;  %v559_v16 = vmul.f32 %v550_v9, %v5826_v57  ;;  %v4292_v43 = vor.u32 %v5111_v39, %v4289_v40  ;;  %v5103_v51 = vld [vmem:[%s5869_s12 + $0x1d4] sm:$0xf0]  ;;  %v4225_v59 = vld [vmem:[%s5869_s12 + $0x1d8] sm:$0xf0]  ;;  %v4152_v10 = vor.u32 %v5086_v7, %v4151_v6 }
 0x1f5   : > { %v661_v45 = vmul.f32 %v5950_v44, %v652_v11  ;;  %1690 = vmatpush.bf16.msra.mxu0 %v4484_v1  ;;  %v4217_v11 = vld [vmem:[%s5869_s12 + $0x1d0] sm:$0xf0]  ;;  %v4224_v52 = vor.u32 %v5103_v51, %v4223_v50  ;;  %v4156_v1 = vor.u32 %v5078_v42, %v4153_v46  ;;  %v4161_v18 = vld [vmem:[%s5869_s12 + $0x158] sm:$0xf0]  ;;  %v5070_v29 = vld [vmem:[%s5869_s12 + $0xcc] sm:$0xf0] }
 0x1f6   : > { %v663_v37 = vmul.f32 %v5950_v44, %v654_v49  ;;  %v6051_v62 = vadd.f32 1e-05, %v559_v16  ;;  %1664 = vmatpush.bf16.msrb.mxu3 %v4288_v36  ;;  %v4215_v49 = vld [vmem:[%s5869_s12 + $0x190] sm:$0xf]  ;;  %v4164_v22 = vor.u32 %v5079_v17, %v4161_v18  ;;  %v4025_v25 = vld [vmem:[%s5869_s12 + $0x50] sm:$0xf0] }
 0x1f7   : > { %v6014_v48 = vadd.f32 %v5958_v54, %v661_v45  ;;  %v4220_v45 = vor.u32 %v5094_v41, %v4217_v11  ;;  %1606 = vmatpush.bf16.msra.mxu1 %v4280_v38  ;;  %v4216_v16 = vor.u32 %v5102_v53, %v4215_v49  ;;  %v4095_v30 = vld [vmem:[%s5869_s12 + $0x98] sm:$0xf]  ;;  %v5063_v34 = vld [vmem:[%s5869_s12 + $0x9c] sm:$0xf]  ;;  %v4028_v35 = vor.u32 %v5046_v24, %v4025_v25  ;;  %v4023_v39 = vld [vmem:[%s5869_s12 + $0x10] sm:$0xf] }
 0x1f8   : > { %v6035_v60 = vadd.f32 %v5958_v54, %v663_v37  ;;  %5414 = vrsqrt.f32 %v6051_v62  ;;  %v5095_v37 = vld [vmem:[%s5869_s12 + $0x19c] sm:$0xf]  ;;  %v5054_v40 = vld [vmem:[%s5869_s12 + $0x4c] sm:$0xf0]  ;;  %v4031_v41 = vld [vmem:[%s5869_s12 + $0x18] sm:$0xf]  ;;  %vm635_vm4 = vweird.f32 %v6051_v62 }
 0x1f9   : > { %7127 = vst [vmem:[#allocation17_spill] sm:$0xff] %v6014_v48  ;;  %v6021_v19 = vpack.c.bf16 %v6014_v48, %v6011_v47  ;;  %1691 = vmatpush.bf16.msra.mxu0 %v4420_v13  ;;  %1636 = vmatpush.bf16.msrb.mxu2 %v4220_v45  ;;  %v4228_v3 = vor.u32 %v5095_v37, %v4225_v59  ;;  %v5087_v13 = vld [vmem:[%s5869_s12 + $0x154] sm:$0xf0]  ;;  %v4097_v36 = vld [vmem:[%s5869_s12 + $0xd8] sm:$0xf0]  ;;  %v5181_v47 = vld [vmem:[%s6337_s13 + $0x40] sm:$0xff] }
 0x1fa   : > { %7128 = vst [vmem:[#allocation18_spill] sm:$0xff] %v6035_v60  ;;  %v6042_v58 = vpack.c.bf16 %v6035_v60, %v6038_v56  ;;  %1665 = vmatpush.bf16.msrb.mxu3 %v4224_v52  ;;  %v4160_v15 = vor.u32 %v5087_v13, %v4159_v12  ;;  %v4100_v38 = vor.u32 %v5063_v34, %v4097_v36  ;;  %v5047_v45 = vld [vmem:[%s5869_s12 + $0x1c] sm:$0xf]  ;;  %v4425_v2 = vld [vmem:[%s5869_s12 + $0x360] sm:$0xf0] }
 0x1fb   : > { %1500 = vmatmul.bf16.gmra.mxu1 %v6021_v19  ;;  %1529 = vmatmul.bf16.gmra.mxu2 %v6021_v19  ;;  %v4024_v42 = vor.u32 %v5054_v40, %v4023_v39  ;;  %v4033_v46 = vld [vmem:[%s5869_s12 + $0x58] sm:$0xf0]  ;;  %v4495_v13 = vld [vmem:[%s5869_s12 + $0x3a8] sm:$0xf]  ;;  %v4361_v18 = vld [vmem:[%s5869_s12 + $0x2e0] sm:$0xf0] }
 0x1fc   : > { %1558 = vmatmul.bf16.gmra.mxu3 %v6021_v19  ;;  %1587 = vmatmul.bf16.gmra.mxu0 %v6021_v19  ;;  %v4036_v49 = vor.u32 %v5047_v45, %v4033_v46  ;;  %v5153_v24 = vld [vmem:[%s5869_s12 + $0x364] sm:$0xf0]  ;;  %v5161_v36 = vld [vmem:[%s5869_s12 + $0x3ac] sm:$0xf]  ;;  %v4359_v39 = vld [vmem:[%s5869_s12 + $0x2a0] sm:$0xf] }
 0x1fd   : > { %1692 = vmatpush.bf16.msra.mxu0 %v4356_v26  ;;  %1607 = vmatpush.bf16.msra.mxu1 %v4216_v16  ;;  %v4087_v26 = vld [vmem:[%s5869_s12 + $0x90] sm:$0xf]  ;;  %v4489_v16 = vld [vmem:[%s5869_s12 + $0x3e0] sm:$0xf0]  ;;  %v4367_v34 = vld [vmem:[%s5869_s12 + $0x2a8] sm:$0xf] }
 0x1fe   : > { %v6066_v27 = vpop.eup %5414  ;;  %1637 = vmatpush.bf16.msrb.mxu2 %v4156_v1  ;;  %1666 = vmatpush.bf16.msrb.mxu3 %v4160_v15  ;;  %v4088_v32 = vor.u32 %v5070_v29, %v4087_v26  ;;  %v5128_v15 = vld [vmem:[%s5869_s12 + $0x2a4] sm:$0xf]  ;;  %v4423_v26 = vld [vmem:[%s5869_s12 + $0x320] sm:$0xf]  ;;  %v5145_v46 = vld [vmem:[%s5869_s12 + $0x32c] sm:$0xf] }
 0x1ff   : > { %v630_v5 = vmul.f32 %v6066_v27, %v6051_v62  ;;  %vm636_vm3 = vweird.f32 %v6066_v27  ;;  %v5152_v29 = vld [vmem:[%s5869_s12 + $0x35c] sm:$0xf0] }
 0x200   : > { %vm637_vm5 = vmor %vm635_vm4, %vm636_vm3  ;;  %v5136_v40 = vld [vmem:[%s5869_s12 + $0x2dc] sm:$0xf0] }
 0x201   : > { %1693 = vmatpush.bf16.msra.mxu0 %v4292_v43  ;;  %v631_v55 = vmul.f32 %v6066_v27, %v630_v5  ;;  %1608 = vmatpush.bf16.msra.mxu1 %v4152_v10  ;;  %v4096_v5 = vor.u32 %v5071_v33, %v4095_v30  ;;  %v5055_v43 = vld [vmem:[%s5869_s12 + $0x54] sm:$0xf0]  ;;  %v5112_v30 = vld [vmem:[%s5869_s12 + $0x224] sm:$0xf] }
 0x202   : > { %1638 = vmatpush.bf16.msrb.mxu2 %v4092_v20  ;;  %v4032_v52 = vor.u32 %v5055_v43, %v4031_v41  ;;  %v4364_v20 = vor.u32 %v5128_v15, %v4361_v18  ;;  %v5096_v41 = vld [vmem:[%s5869_s12 + $0x1a4] sm:$0xf] }
 0x203   : > { %v632_v14 = vmul.f32 0.5, %v631_v55  ;;  %1667 = vmatpush.bf16.msrb.mxu3 %v4096_v5  ;;  %v4233_v43 = vld [vmem:[%s5869_s12 + $0x1e0] sm:$0xf0] }
 0x204   : > { %v4236_v45 = vor.u32 %v5096_v41, %v4233_v43  ;;  %v5064_v15 = vld [vmem:[%s5869_s12 + $0xa4] sm:$0xf]  ;;  %v5073_v41 = vld [vmem:[%s5869_s12 + $0xe4] sm:$0xf0]  ;;  %v4113_v43 = vld [vmem:[%s5869_s12 + $0xe8] sm:$0xf0] }
 0x205   : > { %1694 = vmatpush.bf16.msra.mxu0 %v4228_v3  ;;  %v633_v31 = vsub.f32 1.5, %v632_v14  ;;  %1609 = vmatpush.bf16.msra.mxu1 %v4088_v32  ;;  %v5144_v3 = vld [vmem:[%s5869_s12 + $0x324] sm:$0xf]  ;;  %v5169_v14 = vld [vmem:[%s5869_s12 + $0x3e4] sm:$0xf0] }
 0x206   : > { %1639 = vmatpush.bf16.msrb.mxu2 %v4028_v35  ;;  %v4428_v7 = vor.u32 %v5144_v3, %v4425_v2  ;;  %v4297_v32 = vld [vmem:[%s5869_s12 + $0x260] sm:$0xf0]  ;;  %v5137_v35 = vld [vmem:[%s5869_s12 + $0x2e4] sm:$0xf0]  ;;  %v4305_v2 = vld [vmem:[%s5869_s12 + $0x268] sm:$0xf0] }
 0x207   : > { %v634_v50 = vmul.f32 %v6066_v27, %v633_v31  ;;  %1668 = vmatpush.bf16.msrb.mxu3 %v4032_v52  ;;  %v4424_v31 = vor.u32 %v5152_v29, %v4423_v26  ;;  %v4300_v33 = vor.u32 %v5112_v30, %v4297_v32  ;;  %v4368_v5 = vor.u32 %v5137_v35, %v4367_v34  ;;  %v4303_v52 = vld [vmem:[%s5869_s12 + $0x228] sm:$0xf]  ;;  %v4177_v32 = vld [vmem:[%s5869_s12 + $0x168] sm:$0xf0]  ;;  %v4041_v35 = vld [vmem:[%s5869_s12 + $0x60] sm:$0xf0] }
 0x208   : > { %v5089_v26 = vld [vmem:[%s5869_s12 + $0x164] sm:$0xf0] }
 0x209   : > { %1695 = vmatpush.bf16.msra.mxu0 %v4164_v22  ;;  %1610 = vmatpush.bf16.msra.mxu1 %v4024_v42  ;;  %v638_v37 = vsel %vm637_vm5, %v6066_v27, %v634_v50  ;;  %v4431_v22 = vld [vmem:[%s5869_s12 + $0x328] sm:$0xf]  ;;  %v4360_v42 = vor.u32 %v5136_v40, %v4359_v39  ;;  %v4433_v50 = vld [vmem:[%s5869_s12 + $0x368] sm:$0xf0] }
 0x20a   : > { %v655_v1 = vmul.f32 %v638_v37, %v5862_v23  ;;  %v4432_v25 = vor.u32 %v5153_v24, %v4431_v22  ;;  %v4295_v37 = vld [vmem:[%s5869_s12 + $0x220] sm:$0xf]  ;;  %v4111_v39 = vld [vmem:[%s5869_s12 + $0xa8] sm:$0xf] }
 0x20b   : > { %1505 = vmatmul.bf16.gmra.mxu1 %v6042_v58  ;;  %1534 = vmatmul.bf16.gmra.mxu2 %v6042_v58  ;;  %v5088_v24 = vld [vmem:[%s5869_s12 + $0x15c] sm:$0xf0] }
 0x20c   : > { %1563 = vmatmul.bf16.gmra.mxu3 %v6042_v58  ;;  %1592 = vmatmul.bf16.gmra.mxu0 %v6042_v58  ;;  %v664_v27 = vmul.f32 %v5950_v44, %v655_v1  ;;  %v5129_v1 = vld [vmem:[%s5869_s12 + $0x2ac] sm:$0xf] }
 0x20d   : > { %1696 = vmatpush.bf16.msra.mxu0 %v4100_v38  ;;  %v4497_v38 = vld [vmem:[%s5869_s12 + $0x3e8] sm:$0xf0] }
 0x20e   : > { %v6132_v10 = vadd.f32 %v5958_v54, %v664_v27  ;;  %v4239_v27 = vld [vmem:[%s5869_s12 + $0x1a8] sm:$0xf] }
 0x210   : > { %7130 = vst [vmem:[#allocation20_spill] sm:$0xff] %v6132_v10 }
 0x211   : > { %1697 = vmatpush.bf16.msra.mxu0 %v4036_v49  ;;  %v5121_v49 = vld [vmem:[%s5869_s12 + $0x264] sm:$0xf0] }
 0x246   : > { %v552_v9 = vpop.xlane.xlu0 %551 }
 0x247   : > { %v560_v61 = vmul.f32 %v552_v9, %v5826_v57  ;;  %v5160_v9 = vld [vmem:[%s5869_s12 + $0x3a4] sm:$0xf] }
 0x248   : > { %v4492_v59 = vor.u32 %v5160_v9, %v4489_v16  ;;  %v5080_v16 = vld [vmem:[%s5869_s12 + $0x124] sm:$0xf] }
 0x249   : > { %v6094_v8 = vadd.f32 1e-05, %v560_v61  ;;  %v5177_v57 = vld [vmem:[%s6337_s13 + $0x20] sm:$0xff] }
 0x24a   : > { %1748 = vmatpush.bf16.msra.mxu2 %v4492_v59  ;;  %v4169_v59 = vld [vmem:[%s5869_s12 + $0x160] sm:$0xf0] }
 0x24b   : > { %5416 = vrsqrt.f32 %v6094_v8  ;;  %vm645_vm7 = vweird.f32 %v6094_v8 }
 0x24e   : > { %1749 = vmatpush.bf16.msra.mxu2 %v4428_v7 }
 0x251   : > { %v5417_v11 = vpop.eup %5416 }
 0x252   : > { %v640_v51 = vmul.f32 %v5417_v11, %v6094_v8  ;;  %vm646_vm6 = vweird.f32 %v5417_v11  ;;  %1750 = vmatpush.bf16.msra.mxu2 %v4364_v20  ;;  %v4167_v20 = vld [vmem:[%s5869_s12 + $0x120] sm:$0xf] }
 0x253   : > { %vm647_vm8 = vmor %vm645_vm7, %vm646_vm6  ;;  %v4168_v29 = vor.u32 %v5088_v24, %v4167_v20  ;;  %v5154_v20 = vld [vmem:[%s5869_s12 + $0x36c] sm:$0xf0] }
 0x254   : > { %v641_v53 = vmul.f32 %v5417_v11, %v640_v51  ;;  %v4436_v51 = vor.u32 %v5145_v46, %v4433_v50  ;;  %v5056_v50 = vld [vmem:[%s5869_s12 + $0x5c] sm:$0xf0] }
 0x256   : > { %v642_v55 = vmul.f32 0.5, %v641_v53  ;;  %1751 = vmatpush.bf16.msra.mxu2 %v4300_v33  ;;  %v4304_v53 = vor.u32 %v5121_v49, %v4303_v52  ;;  %v5048_v33 = vld [vmem:[%s5869_s12 + $0x24] sm:$0xf]  ;;  %v5057_v52 = vld [vmem:[%s5869_s12 + $0x64] sm:$0xf0] }
 0x258   : > { %v643_v61 = vsub.f32 1.5, %v642_v55  ;;  %v5120_v55 = vld [vmem:[%s5869_s12 + $0x25c] sm:$0xf0] }
 0x259   : > { %v4296_v9 = vor.u32 %v5120_v55, %v4295_v37  ;;  %v4049_v37 = vld [vmem:[%s5869_s12 + $0x68] sm:$0xf0] }
 0x25a   : > { %v644_v62 = vmul.f32 %v5417_v11, %v643_v61  ;;  %1752 = vmatpush.bf16.msra.mxu2 %v4236_v45  ;;  %v4172_v61 = vor.u32 %v5080_v16, %v4169_v59  ;;  %v4039_v45 = vld [vmem:[%s5869_s12 + $0x20] sm:$0xf]  ;;  %v5162_v16 = vld [vmem:[%s5869_s12 + $0x3b4] sm:$0xf] }
 0x25b   : > { %v4040_v55 = vor.u32 %v5056_v50, %v4039_v45  ;;  %v4505_v59 = vld [vmem:[%s5869_s12 + $0x3f0] sm:$0xf0]  ;;  %v5147_v45 = vld [vmem:[%s5869_s12 + $0x33c] sm:$0xf] }
 0x25c   : > { %v648_v28 = vsel %vm647_vm8, %v5417_v11, %v644_v62  ;;  %v4500_v11 = vor.u32 %v5161_v36, %v4497_v38  ;;  %v4369_v62 = vld [vmem:[%s5869_s12 + $0x2e8] sm:$0xf0]  ;;  %v4044_v36 = vor.u32 %v5048_v33, %v4041_v35  ;;  %v5072_v38 = vld [vmem:[%s5869_s12 + $0xdc] sm:$0xf0] }
 0x25d   : > { %v656_v6 = vmul.f32 %v648_v28, %v5939_v21  ;;  %v4496_v21 = vor.u32 %v5169_v14, %v4495_v13  ;;  %v5113_v28 = vld [vmem:[%s5869_s12 + $0x22c] sm:$0xf]  ;;  %v4372_v3 = vor.u32 %v5129_v1, %v4369_v62  ;;  %v4231_v13 = vld [vmem:[%s5869_s12 + $0x1a0] sm:$0xf]  ;;  %v4508_v1 = vor.u32 %v5162_v16, %v4505_v59  ;;  %v4441_v62 = vld [vmem:[%s5869_s12 + $0x370] sm:$0xf0] }
 0x25e   : > { %1806 = vmatpush.bf16.msrb.mxu0 %v4500_v11  ;;  %1753 = vmatpush.bf16.msra.mxu2 %v4172_v61  ;;  %v5104_v14 = vld [vmem:[%s5869_s12 + $0x1dc] sm:$0xf0]  ;;  %v5065_v11 = vld [vmem:[%s5869_s12 + $0xac] sm:$0xf]  ;;  %v5146_v61 = vld [vmem:[%s5869_s12 + $0x334] sm:$0xf] }
 0x25f   : > { %v665_v23 = vmul.f32 %v5950_v44, %v656_v6  ;;  %v4487_v44 = vld [vmem:[%s5869_s12 + $0x3a0] sm:$0xf]  ;;  %1777 = vmatpush.bf16.msra.mxu3 %v4496_v21  ;;  %v5105_v6 = vld [vmem:[%s5869_s12 + $0x1e4] sm:$0xf0]  ;;  %v4232_v21 = vor.u32 %v5104_v14, %v4231_v13  ;;  %v4116_v46 = vor.u32 %v5065_v11, %v4113_v43  ;;  %v4377_v14 = vld [vmem:[%s5869_s12 + $0x2f0] sm:$0xf0] }
 0x260   : > { %v4240_v7 = vor.u32 %v5105_v6, %v4239_v27  ;;  %v4444_v27 = vor.u32 %v5146_v61, %v4441_v62  ;;  %v4503_v6 = vld [vmem:[%s5869_s12 + $0x3b0] sm:$0xf]  ;;  %v5098_v11 = vld [vmem:[%s5869_s12 + $0x1b4] sm:$0xf] }
 0x261   : > { %v6135_v8 = vadd.f32 %v5958_v54, %v665_v23  ;;  %v5168_v54 = vld [vmem:[%s5869_s12 + $0x3dc] sm:$0xf0]  ;;  %v4308_v23 = vor.u32 %v5113_v28, %v4305_v2  ;;  %v4511_v28 = vld [vmem:[%s5869_s12 + $0x3b8] sm:$0xf]  ;;  %v4249_v43 = vld [vmem:[%s5869_s12 + $0x1f0] sm:$0xf0] }
 0x262   : > { %v4488_v17 = vor.u32 %v5168_v54, %v4487_v44  ;;  %1807 = vmatpush.bf16.msrb.mxu0 %v4436_v51  ;;  %v5097_v44 = vld [vmem:[%s5869_s12 + $0x1ac] sm:$0xf]  ;;  %v4047_v51 = vld [vmem:[%s5869_s12 + $0x28] sm:$0xf]  ;;  %v5122_v16 = vld [vmem:[%s5869_s12 + $0x26c] sm:$0xf0] }
 0x263   : > { %7131 = vst [vmem:[#allocation21_spill] sm:$0xff] %v6135_v8  ;;  %v6139_v12 = vpack.c.bf16 %v6135_v8, %v6132_v10  ;;  %1778 = vmatpush.bf16.msra.mxu3 %v4432_v25  ;;  %v4241_v54 = vld [vmem:[%s5869_s12 + $0x1e8] sm:$0xf0]  ;;  %v4175_v25 = vld [vmem:[%s5869_s12 + $0x128] sm:$0xf]  ;;  %v4048_v49 = vor.u32 %v5057_v52, %v4047_v51  ;;  %v4252_v51 = vor.u32 %v5098_v11, %v4249_v43  ;;  %v5183_v8 = vld [vmem:[%s6337_s13 + $0x50] sm:$0xff] }
 0x264   : > { %1719 = vmatpush.bf16.msrb.mxu1 %v4488_v17  ;;  %v4105_v17 = vld [vmem:[%s5869_s12 + $0xe0] sm:$0xf0]  ;;  %v4244_v18 = vor.u32 %v5097_v44, %v4241_v54  ;;  %v4176_v30 = vor.u32 %v5089_v26, %v4175_v25  ;;  %v5155_v44 = vld [vmem:[%s5869_s12 + $0x374] sm:$0xf0]  ;;  %v4313_v26 = vld [vmem:[%s5869_s12 + $0x270] sm:$0xf0] }
 0x265   : > { %1510 = vmatmul.bf16.gmra.mxu1 %v6139_v12  ;;  %1539 = vmatmul.bf16.gmra.mxu2 %v6139_v12  ;;  %v4108_v22 = vor.u32 %v5064_v15, %v4105_v17  ;;  %v5082_v59 = vld [vmem:[%s5869_s12 + $0x134] sm:$0xf]  ;;  %v5083_v43 = vld [vmem:[%s5869_s12 + $0x13c] sm:$0xf] }
 0x266   : > { %1568 = vmatmul.bf16.gmra.mxu3 %v6139_v12  ;;  %1597 = vmatmul.bf16.gmra.mxu0 %v6139_v12  ;;  %v4185_v61 = vld [vmem:[%s5869_s12 + $0x170] sm:$0xf0] }
 0x267   : > { %1779 = vmatpush.bf16.msra.mxu3 %v4368_v5  ;;  %1808 = vmatpush.bf16.msrb.mxu0 %v4372_v3  ;;  %v4103_v5 = vld [vmem:[%s5869_s12 + $0xa0] sm:$0xf]  ;;  %v5171_v3 = vld [vmem:[%s5869_s12 + $0x3f4] sm:$0xf0]  ;;  %v4188_v62 = vor.u32 %v5082_v59, %v4185_v61  ;;  %v5067_v61 = vld [vmem:[%s5869_s12 + $0xbc] sm:$0xf] }
 0x268   : > { %1720 = vmatpush.bf16.msrb.mxu1 %v4424_v31  ;;  %v5081_v31 = vld [vmem:[%s5869_s12 + $0x12c] sm:$0xf]  ;;  %1754 = vmatpush.bf16.msra.mxu2 %v4108_v22  ;;  %v4104_v40 = vor.u32 %v5072_v38, %v4103_v5  ;;  %v4512_v2 = vor.u32 %v5171_v3, %v4511_v28  ;;  %v6233_v54 = vpop.f32.mrf.mxu1  ;;  %v5114_v22 = vld [vmem:[%s5869_s12 + $0x234] sm:$0xf]  ;;  %v4513_v38 = vld [vmem:[%s5869_s12 + $0x3f8] sm:$0xf0] }
 0x269   : > { %v4180_v34 = vor.u32 %v5081_v31, %v4177_v32  ;;  %v6238_v24 = vpop.f32.mrf.mxu0  ;;  %v4316_v31 = vor.u32 %v5114_v22, %v4313_v26  ;;  %v5131_v28 = vld [vmem:[%s5869_s12 + $0x2bc] sm:$0xf]  ;;  %v5075_v59 = vld [vmem:[%s5869_s12 + $0xf4] sm:$0xf0] }
 0x26a   : > { %v4385_v3 = vld [vmem:[%s5869_s12 + $0x2f8] sm:$0xf0] }
 0x26b   : > { %1780 = vmatpush.bf16.msra.mxu3 %v4304_v53  ;;  %1809 = vmatpush.bf16.msrb.mxu0 %v4308_v23  ;;  %v5049_v53 = vld [vmem:[%s5869_s12 + $0x2c] sm:$0xf]  ;;  %v5130_v23 = vld [vmem:[%s5869_s12 + $0x2b4] sm:$0xf]  ;;  %v5099_v22 = vld [vmem:[%s5869_s12 + $0x1bc] sm:$0xf] }
 0x26c   : > { %1721 = vmatpush.bf16.msrb.mxu1 %v4360_v42  ;;  %v4112_v42 = vor.u32 %v5073_v41, %v4111_v39  ;;  %1755 = vmatpush.bf16.msra.mxu2 %v4044_v36  ;;  %v4380_v15 = vor.u32 %v5130_v23, %v4377_v14  ;;  %v5163_v36 = vld [vmem:[%s5869_s12 + $0x3bc] sm:$0xf]  ;;  %v5138_v41 = vld [vmem:[%s5869_s12 + $0x2ec] sm:$0xf0] }
 0x26d   : > { %v4516_v39 = vor.u32 %v5163_v36, %v4513_v38  ;;  %v4321_v23 = vld [vmem:[%s5869_s12 + $0x278] sm:$0xf0] }
 0x26e   : > { %v6243_v33 = vpop.f32.mrf.mxu2 }
 0x26f   : > { %1781 = vmatpush.bf16.msra.mxu3 %v4240_v7  ;;  %1810 = vmatpush.bf16.msrb.mxu0 %v4244_v18  ;;  %v5170_v7 = vld [vmem:[%s5869_s12 + $0x3ec] sm:$0xf0] }
 0x270   : > { %1722 = vmatpush.bf16.msrb.mxu1 %v4296_v9  ;;  %v4052_v9 = vor.u32 %v5049_v53, %v4049_v37  ;;  %v4504_v13 = vor.u32 %v5170_v7, %v4503_v6  ;;  %v4439_v18 = vld [vmem:[%s5869_s12 + $0x330] sm:$0xf]  ;;  %v6247_v35 = vpop.f32.mrf.mxu1  ;;  %v5123_v53 = vld [vmem:[%s5869_s12 + $0x274] sm:$0xf0]  ;;  %v5115_v7 = vld [vmem:[%s5869_s12 + $0x23c] sm:$0xf] }
 0x271   : > { %v4440_v25 = vor.u32 %v5154_v20, %v4439_v18  ;;  %v6249_v5 = vpop.f32.mrf.mxu0  ;;  %v4311_v37 = vld [vmem:[%s5869_s12 + $0x230] sm:$0xf] }
 0x272   : > { %v5106_v20 = vld [vmem:[%s5869_s12 + $0x1ec] sm:$0xf0] }
 0x273   : > { %1782 = vmatpush.bf16.msra.mxu3 %v4176_v30  ;;  %1811 = vmatpush.bf16.msrb.mxu0 %v4180_v34  ;;  %v5139_v30 = vld [vmem:[%s5869_s12 + $0x2f4] sm:$0xf0]  ;;  %v6245_v34 = vpop.f32.mrf.mxu3 }
 0x274   : > { %1723 = vmatpush.bf16.msrb.mxu1 %v4232_v21  ;;  %v4447_v21 = vld [vmem:[%s5869_s12 + $0x338] sm:$0xf] }
 0x275   : > { %1611 = vmatmul.bf16.vlgmr.msra.gmra.mxu1 %v5977_v4  ;;  %1640 = vmatmul.bf16.vlgmr.msrb.gmra.mxu2 %v5977_v4  ;;  %v4448_v17 = vor.u32 %v5155_v44, %v4447_v21  ;;  %v4255_v44 = vld [vmem:[%s5869_s12 + $0x1b8] sm:$0xf] }
 0x276   : > { %1669 = vmatmul.bf16.vlgmr.msrb.gmra.mxu3 %v5977_v4  ;;  %1698 = vmatmul.bf16.vlgmr.msra.gmra.mxu0 %v5977_v4  ;;  %v6263_v50 = vpop.f32.mrf.mxu2 }
 0x277   : > { %1783 = vmatpush.bf16.msra.mxu3 %v4112_v42  ;;  %1812 = vmatpush.bf16.msrb.mxu0 %v4116_v46  ;;  %v4449_v46 = vld [vmem:[%s5869_s12 + $0x378] sm:$0xf0] }
 0x278   : > { %1724 = vmatpush.bf16.msrb.mxu1 %v4168_v29  ;;  %1864 = vmatpush.bf16.msrb.mxu2 %v4508_v1  ;;  %v4383_v29 = vld [vmem:[%s5869_s12 + $0x2b8] sm:$0xf]  ;;  %v4452_v52 = vor.u32 %v5147_v45, %v4449_v46  ;;  %v4312_v1 = vor.u32 %v5122_v16, %v4311_v37  ;;  %v4193_v45 = vld [vmem:[%s5869_s12 + $0x178] sm:$0xf0] }
 0x279   : > { %v4384_v32 = vor.u32 %v5139_v30, %v4383_v29  ;;  %v6277_v6 = vpop.f32.mrf.mxu0  ;;  %v5066_v30 = vld [vmem:[%s5869_s12 + $0xb4] sm:$0xf]  ;;  %v4127_v37 = vld [vmem:[%s5869_s12 + $0xb8] sm:$0xf] }
 0x27b   : > { %1784 = vmatpush.bf16.msra.mxu3 %v4048_v49  ;;  %1813 = vmatpush.bf16.msrb.mxu0 %v4052_v9  ;;  %v4319_v49 = vld [vmem:[%s5869_s12 + $0x238] sm:$0xf] }
 0x27c   : > { %1725 = vmatpush.bf16.msrb.mxu1 %v4104_v40  ;;  %1865 = vmatpush.bf16.msrb.mxu2 %v4444_v27  ;;  %v4375_v40 = vld [vmem:[%s5869_s12 + $0x2b0] sm:$0xf]  ;;  %v4320_v9 = vor.u32 %v5123_v53, %v4319_v49  ;;  %v6275_v27 = vpop.f32.mrf.mxu1 }
 0x27d   : > { %v4376_v42 = vor.u32 %v5138_v41, %v4375_v40  ;;  %v5090_v40 = vld [vmem:[%s5869_s12 + $0x16c] sm:$0xf0]  ;;  %v4191_v41 = vld [vmem:[%s5869_s12 + $0x138] sm:$0xf] }
 0x27e   : > { %v6281_v14 = vpop.f32.mrf.mxu2  ;;  %v4119_v49 = vld [vmem:[%s5869_s12 + $0xb0] sm:$0xf] }
 0x27f   : > { %1893 = vmatpush.bf16.msrb.mxu3 %v4512_v2  ;;  %1922 = vmatpush.bf16.msra.mxu0 %v4516_v39  ;;  %v4388_v2 = vor.u32 %v5131_v28, %v4385_v3  ;;  %v4183_v39 = vld [vmem:[%s5869_s12 + $0x130] sm:$0xf]  ;;  %v4057_v28 = vld [vmem:[%s5869_s12 + $0x70] sm:$0xf0]  ;;  %v4128_v3 = vor.u32 %v5075_v59, %v4127_v37 }
 0x280   : > { %1726 = vmatpush.bf16.msrb.mxu1 %v4040_v55  ;;  %1866 = vmatpush.bf16.msrb.mxu2 %v4380_v15  ;;  %v6268_v55 = vpop.f32.mrf.mxu3  ;;  %v5107_v15 = vld [vmem:[%s5869_s12 + $0x1f4] sm:$0xf0]  ;;  %v4184_v11 = vor.u32 %v5090_v40, %v4183_v39  ;;  %v5074_v53 = vld [vmem:[%s5869_s12 + $0xec] sm:$0xf0] }
 0x281   : > { %v4256_v18 = vor.u32 %v5107_v15, %v4255_v44  ;;  %v6299_v36 = vpop.f32.mrf.mxu0  ;;  %v4120_v16 = vor.u32 %v5074_v53, %v4119_v49  ;;  %v5058_v44 = vld [vmem:[%s5869_s12 + $0x6c] sm:$0xf0]  ;;  %v4063_v15 = vld [vmem:[%s5869_s12 + $0x38] sm:$0xf]  ;;  %v5186_v53 = vld [vmem:[%s6337_s13 + $0x68] sm:$0xff] }
 0x282   : > { %v5180_v49 = vld [vmem:[%s6337_s13 + $0x38] sm:$0xff] }
 0x283   : > { %1894 = vmatpush.bf16.msrb.mxu3 %v4448_v17  ;;  %1923 = vmatpush.bf16.msra.mxu0 %v4452_v52  ;;  %v4247_v17 = vld [vmem:[%s5869_s12 + $0x1b0] sm:$0xf] }
 0x284   : > { %1835 = vmatpush.bf16.msra.mxu1 %v4504_v13  ;;  %1867 = vmatpush.bf16.msrb.mxu2 %v4316_v31  ;;  %v4324_v13 = vor.u32 %v5115_v7, %v4321_v23  ;;  %v6293_v26 = vpop.f32.mrf.mxu1  ;;  %v4248_v29 = vor.u32 %v5106_v20, %v4247_v17  ;;  %v4121_v31 = vld [vmem:[%s5869_s12 + $0xf0] sm:$0xf0]  ;;  %v5059_v20 = vld [vmem:[%s5869_s12 + $0x74] sm:$0xf0] }
 0x285   : > { %1616 = vmatmul.bf16.gmra.mxu1 %v6021_v19  ;;  %1645 = vmatmul.bf16.gmra.mxu2 %v6021_v19  ;;  %v4124_v38 = vor.u32 %v5066_v30, %v4121_v31 }
 0x286   : > { %1674 = vmatmul.bf16.gmra.mxu3 %v6021_v19  ;;  %1703 = vmatmul.bf16.gmra.mxu0 %v6021_v19  ;;  %v6307_v52 = vpop.f32.mrf.mxu2 }
 0x287   : > { %1895 = vmatpush.bf16.msrb.mxu3 %v4384_v32  ;;  %1924 = vmatpush.bf16.msra.mxu0 %v4388_v2 }
 0x288   : > { %1836 = vmatpush.bf16.msra.mxu1 %v4440_v25  ;;  %1868 = vmatpush.bf16.msrb.mxu2 %v4252_v51  ;;  %v6283_v21 = vpop.f32.mrf.mxu3  ;;  %v4257_v25 = vld [vmem:[%s5869_s12 + $0x1f8] sm:$0xf0]  ;;  %v4196_v51 = vor.u32 %v5083_v43, %v4193_v45 }
 0x289   : > { %v4260_v32 = vor.u32 %v5099_v22, %v4257_v25  ;;  %v6324_v17 = vpop.f32.mrf.mxu0  ;;  %v5051_v22 = vld [vmem:[%s5869_s12 + $0x3c] sm:$0xf] }
 0x28a   : > { %v4065_v25 = vld [vmem:[%s5869_s12 + $0x78] sm:$0xf0] }
 0x28b   : > { %1896 = vmatpush.bf16.msrb.mxu3 %v4320_v9  ;;  %1925 = vmatpush.bf16.msra.mxu0 %v4324_v13  ;;  %v4055_v13 = vld [vmem:[%s5869_s12 + $0x30] sm:$0xf]  ;;  %v4068_v30 = vor.u32 %v5051_v22, %v4065_v25 }
 0x28c   : > { %1837 = vmatpush.bf16.msra.mxu1 %v4376_v42  ;;  %1869 = vmatpush.bf16.msrb.mxu2 %v4188_v62  ;;  %v5091_v42 = vld [vmem:[%s5869_s12 + $0x174] sm:$0xf0]  ;;  %v5050_v62 = vld [vmem:[%s5869_s12 + $0x34] sm:$0xf]  ;;  %v6319_v23 = vpop.f32.mrf.mxu1 }
 0x28d   : > { %v4192_v46 = vor.u32 %v5091_v42, %v4191_v41  ;;  %v4060_v7 = vor.u32 %v5050_v62, %v4057_v28  ;;  %v5195_v25 = vld [vmem:[%s6337_s13 + $0xb0] sm:$0xff] }
 0x28e   : > { %v6331_v31 = vpop.f32.mrf.mxu2 }
 0x28f   : > { %1897 = vmatpush.bf16.msrb.mxu3 %v4256_v18  ;;  %1926 = vmatpush.bf16.msra.mxu0 %v4260_v32  ;;  %v4056_v18 = vor.u32 %v5058_v44, %v4055_v13  ;;  %v5188_v32 = vld [vmem:[%s6337_s13 + $0x78] sm:$0xff] }
 0x290   : > { %1838 = vmatpush.bf16.msra.mxu1 %v4312_v1  ;;  %1870 = vmatpush.bf16.msrb.mxu2 %v4124_v38  ;;  %v6312_v9 = vpop.f32.mrf.mxu3  ;;  %v4129_v1 = vld [vmem:[%s5869_s12 + $0xf8] sm:$0xf0] }
 0x291   : > { %v4132_v2 = vor.u32 %v5067_v61, %v4129_v1  ;;  %v6344_v40 = vpop.f32.mrf.mxu0 }
 0x293   : > { %1898 = vmatpush.bf16.msrb.mxu3 %v4192_v46  ;;  %1927 = vmatpush.bf16.msra.mxu0 %v4196_v51  ;;  %v6355_v46 = vld [vmem:[%s6352_s16] sm:$0xff]  ;;  %v5196_v51 = vld [vmem:[%s6337_s13 + $0xb8] sm:$0xff] }
 0x294   : > { %1839 = vmatpush.bf16.msra.mxu1 %v4248_v29  ;;  %1871 = vmatpush.bf16.msrb.mxu2 %v4060_v7  ;;  %v4064_v29 = vor.u32 %v5059_v20, %v4063_v15  ;;  %v6342_v39 = vpop.f32.mrf.mxu1  ;;  %v6365_v37 = vperm.slane %v6355_v46, 0  ;;  %v6375_v13 = vperm.slane %v6355_v46, 1 }
 0x295   : > { %1621 = vmatmul.bf16.gmra.mxu1 %v6042_v58  ;;  %1650 = vmatmul.bf16.gmra.mxu2 %v6042_v58 }
 0x296   : > { %1679 = vmatmul.bf16.gmra.mxu3 %v6042_v58  ;;  %1708 = vmatmul.bf16.gmra.mxu0 %v6042_v58  ;;  %v6347_v41 = vpop.f32.mrf.mxu2 }
 0x297   : > { %1899 = vmatpush.bf16.msrb.mxu3 %v4128_v3  ;;  %1928 = vmatpush.bf16.msra.mxu0 %v4132_v2 }
 0x298   : > { %1840 = vmatpush.bf16.msra.mxu1 %v4184_v11  ;;  %v6340_v38 = vpop.f32.mrf.mxu3  ;;  %v5187_v11 = vld [vmem:[%s6337_s13 + $0x70] sm:$0xff] }
 0x29b   : > { %1900 = vmatpush.bf16.msrb.mxu3 %v4064_v29  ;;  %1929 = vmatpush.bf16.msra.mxu0 %v4068_v30  ;;  %v5179_v29 = vld [vmem:[%s6337_s13 + $0x30] sm:$0xff]  ;;  %v5185_v30 = vld [vmem:[%s6337_s13 + $0x60] sm:$0xff] }
 0x29c   : > { %1841 = vmatpush.bf16.msra.mxu1 %v4120_v16  ;;  %v6368_v16 = vperm.slane %v6355_v46, 3 }
 0x2a0   : > { %1842 = vmatpush.bf16.msra.mxu1 %v4056_v18  ;;  %v6350_v42 = vpop.f32.mrf.mxu3  ;;  %v6378_v18 = vperm.slane %v6355_v46, 2 }
 0x2a5   : > { %1626 = vmatmul.bf16.gmra.mxu1 %v6139_v12  ;;  %1655 = vmatmul.bf16.gmra.mxu2 %v6139_v12 }
 0x2a6   : > { %1684 = vmatmul.bf16.gmra.mxu3 %v6139_v12  ;;  %1713 = vmatmul.bf16.gmra.mxu0 %v6139_v12 }
 0x2b5   : > { %1727 = vmatmul.bf16.vlgmr.msrb.gmra.mxu1 %v5977_v4  ;;  %1756 = vmatmul.bf16.vlgmr.msra.gmra.mxu2 %v5977_v4 }
 0x2b6   : > { %1785 = vmatmul.bf16.vlgmr.msra.gmra.mxu3 %v5977_v4  ;;  %1814 = vmatmul.bf16.vlgmr.msrb.gmra.mxu0 %v5977_v4 }
 0x2b7   : > { %3199 = vmatpush.bf16.msra.mxu2 %v5188_v32  ;;  %3228 = vmatpush.bf16.msra.mxu3 %v5196_v51 }
 0x2b8   : > { %3170 = vmatpush.bf16.msrb.mxu1 %v5180_v49 }
 0x2bb   : > { %3200 = vmatpush.bf16.msra.mxu2 %v5187_v11  ;;  %3229 = vmatpush.bf16.msra.mxu3 %v5195_v25  ;;  %v5178_v25 = vld [vmem:[%s6337_s13 + $0x28] sm:$0xff] }
 0x2bc   : > { %3171 = vmatpush.bf16.msrb.mxu1 %v5179_v29  ;;  %v5184_v29 = vld [vmem:[%s6337_s13 + $0x58] sm:$0xff] }
 0x2bf   : > { %3201 = vmatpush.bf16.msra.mxu2 %v5186_v53 }
 0x2c0   : > { %3172 = vmatpush.bf16.msrb.mxu1 %v5178_v25 }
 0x2c3   : > { %3202 = vmatpush.bf16.msra.mxu2 %v5185_v30 }
 0x2c4   : > { %3173 = vmatpush.bf16.msrb.mxu1 %v5177_v57  ;;  %v5192_v57 = vld [vmem:[%s6337_s13 + $0x98] sm:$0xff] }
 0x2c5   : > { %1732 = vmatmul.bf16.gmra.mxu1 %v6021_v19  ;;  %1761 = vmatmul.bf16.gmra.mxu2 %v6021_v19 }
 0x2c6   : > { %1790 = vmatmul.bf16.gmra.mxu3 %v6021_v19  ;;  %1819 = vmatmul.bf16.gmra.mxu0 %v6021_v19 }
 0x2c7   : > { %3203 = vmatpush.bf16.msra.mxu2 %v5184_v29 }
 0x2cb   : > { %3204 = vmatpush.bf16.msra.mxu2 %v5183_v8  ;;  %v5176_v8 = vld [vmem:[%s6337_s13 + $0x18] sm:$0xff] }
 0x2cc   : > { %3174 = vmatpush.bf16.msrb.mxu1 %v5176_v8  ;;  %v5174_v8 = vld [vmem:[%s6337_s13 + $0x8] sm:$0xff] }
 0x2d5   : > { %1737 = vmatmul.bf16.gmra.mxu1 %v6042_v58  ;;  %1766 = vmatmul.bf16.gmra.mxu2 %v6042_v58 }
 0x2d6   : > { %1795 = vmatmul.bf16.gmra.mxu3 %v6042_v58  ;;  %1824 = vmatmul.bf16.gmra.mxu0 %v6042_v58 }
 0x2e2   : > { %v1511_v43 = vpop.f32.mrf.mxu1 }
 0x2e3   : > { %v1598_v45 = vpop.f32.mrf.mxu0  ;;  %v1512_v61 = vadd.f32 %v1511_v43, %v6365_v37 }
 0x2e4   : > { %v1599_v62 = vadd.f32 %v1598_v45, %v6368_v16 }
 0x2e5   : > { %1742 = vmatmul.bf16.gmra.mxu1 %v6139_v12  ;;  %1771 = vmatmul.bf16.gmra.mxu2 %v6139_v12  ;;  %v2047_v44 = vmax.f32 %v1512_v61, 0.0 }
 0x2e6   : > { %1800 = vmatmul.bf16.gmra.mxu3 %v6139_v12  ;;  %1829 = vmatmul.bf16.gmra.mxu0 %v6139_v12  ;;  %v2050_v20 = vmax.f32 %v1599_v62, 0.0 }
 0x2e8   : > { %v1540_v59 = vpop.f32.mrf.mxu2 }
 0x2e9   : > { %v1569_v1 = vpop.f32.mrf.mxu3  ;;  %v1541_v32 = vadd.f32 %v1540_v59, %v6375_v13 }
 0x2ea   : > { %v1513_v28 = vpop.f32.mrf.mxu1  ;;  %v1570_v43 = vadd.f32 %v1569_v1, %v6378_v18 }
 0x2eb   : > { %v1514_v3 = vadd.f32 %v1513_v28, %v6365_v37  ;;  %v1600_v2 = vpop.f32.mrf.mxu0  ;;  %v2048_v59 = vmax.f32 %v1541_v32, 0.0 }
 0x2ec   : > { %v1601_v7 = vadd.f32 %v1600_v2, %v6368_v16  ;;  %v2049_v1 = vmax.f32 %v1570_v43, 0.0 }
 0x2ed   : > { %v2063_v15 = vmax.f32 %v1514_v3, 0.0 }
 0x2ee   : > { %v2066_v22 = vmax.f32 %v1601_v7, 0.0  ;;  %v6392_v7 = vperm.slane %v6355_v46, 4 }
 0x2ef   : > { %v6384_v11 = vpack.c.bf16 %v2063_v15, %v2047_v44  ;;  %v5204_v44 = vld [vmem:[%s6337_s13 + $0xf8] sm:$0xff] }
 0x2f0   : > { %v1542_v45 = vpop.f32.mrf.mxu2  ;;  %v6387_v51 = vpack.c.bf16 %v2066_v22, %v2050_v20  ;;  %v6400_v20 = vperm.slane %v6355_v46, 7  ;;  %v5194_v22 = vld [vmem:[%s6337_s13 + $0xa8] sm:$0xff]  ;;  %3257 = vmatpush.bf16.msrb.mxu0 %v5204_v44 }
 0x2f1   : > { %v1543_v49 = vadd.f32 %v1542_v45, %v6375_v13  ;;  %v1571_v53 = vpop.f32.mrf.mxu3  ;;  %3230 = vmatpush.bf16.msra.mxu3 %v5194_v22  ;;  %v5202_v22 = vld [vmem:[%s6337_s13 + $0xe8] sm:$0xff] }
 0x2f2   : > { %v1572_v61 = vadd.f32 %v1571_v53, %v6378_v18  ;;  %v1612_v62 = vpop.f32.mrf.mxu1 }
 0x2f3   : > { %v2064_v28 = vmax.f32 %v1543_v49, 0.0  ;;  %v1699_v3 = vpop.f32.mrf.mxu0  ;;  %v1613_v43 = vadd.f32 %v1612_v62, %v6392_v7  ;;  %v5203_v49 = vld [vmem:[%s6337_s13 + $0xf0] sm:$0xff] }
 0x2f4   : > { %v2065_v2 = vmax.f32 %v1572_v61, 0.0  ;;  %v6413_v61 = vperm.slane %v6355_v46, 5  ;;  %3258 = vmatpush.bf16.msrb.mxu0 %v5203_v49 }
 0x2f5   : > { %1843 = vmatmul.bf16.vlgmr.msra.gmra.mxu1 %v5977_v4  ;;  %1872 = vmatmul.bf16.vlgmr.msrb.gmra.mxu2 %v5977_v4  ;;  %v6397_v15 = vpack.c.bf16 %v2064_v28, %v2048_v59 }
 0x2f6   : > { %1901 = vmatmul.bf16.vlgmr.msrb.gmra.mxu3 %v5977_v4  ;;  %1930 = vmatmul.bf16.vlgmr.msra.gmra.mxu0 %v5977_v4  ;;  %v6407_v30 = vpack.c.bf16 %v2065_v2, %v2049_v1  ;;  %v1700_v4 = vadd.f32 %v1699_v3, %v6400_v20  ;;  %v6417_v1 = vperm.slane %v6355_v46, 6  ;;  %v1955_v2 = vmax.f32 %v1613_v43, 0.0  ;;  %v5193_v3 = vld [vmem:[%s6337_s13 + $0xa0] sm:$0xff] }
 0x2f7   : > { %3231 = vmatpush.bf16.msra.mxu3 %v5193_v3 }
 0x2f8   : > { %v1641_v32 = vpop.f32.mrf.mxu2  ;;  %v1958_v25 = vmax.f32 %v1700_v4, 0.0  ;;  %3259 = vmatpush.bf16.msrb.mxu0 %v5202_v22 }
 0x2f9   : > { %v1670_v45 = vpop.f32.mrf.mxu3  ;;  %v1642_v10 = vadd.f32 %v1641_v32, %v6413_v61 }
 0x2fa   : > { %v1614_v53 = vpop.f32.mrf.mxu1  ;;  %v1671_v49 = vadd.f32 %v1670_v45, %v6417_v1 }
 0x2fb   : > { %v1615_v59 = vadd.f32 %v1614_v53, %v6392_v7  ;;  %v1701_v28 = vpop.f32.mrf.mxu0  ;;  %3232 = vmatpush.bf16.msra.mxu3 %v5192_v57 }
 0x2fc   : > { %v1702_v62 = vadd.f32 %v1701_v28, %v6400_v20 }
 0x2fd   : > { %v1971_v44 = vmax.f32 %v1615_v59, 0.0  ;;  %v5201_v59 = vld [vmem:[%s6337_s13 + $0xe0] sm:$0xff] }
 0x2fe   : > { %v1974_v29 = vmax.f32 %v1702_v62, 0.0  ;;  %v1956_v62 = vmax.f32 %v1642_v10, 0.0  ;;  %3260 = vmatpush.bf16.msrb.mxu0 %v5201_v59  ;;  %v5182_v10 = vld [vmem:[%s6337_s13 + $0x48] sm:$0xff]  ;;  %v5191_v59 = vld [vmem:[%s6337_s13 + $0x90] sm:$0xff] }
 0x2ff   : > { %v6425_v60 = vpack.c.bf16 %v1971_v44, %v1955_v2  ;;  %v1957_v44 = vmax.f32 %v1671_v49, 0.0  ;;  %3205 = vmatpush.bf16.msra.mxu2 %v5182_v10  ;;  %3233 = vmatpush.bf16.msra.mxu3 %v5191_v59  ;;  %v5198_v10 = vld [vmem:[%s6337_s13 + $0xc8] sm:$0xff] }
 0x300   : > { %v6428_v46 = vpack.c.bf16 %v1974_v29, %v1958_v25  ;;  %v1643_v53 = vpop.f32.mrf.mxu2  ;;  %v5200_v29 = vld [vmem:[%s6337_s13 + $0xd8] sm:$0xff] }
 0x301   : > { %v1644_v43 = vadd.f32 %v1643_v53, %v6413_v61  ;;  %v1672_v4 = vpop.f32.mrf.mxu3 }
 0x302   : > { %v1673_v32 = vadd.f32 %v1672_v4, %v6417_v1  ;;  %v1617_v28 = vpop.f32.mrf.mxu1  ;;  %3261 = vmatpush.bf16.msrb.mxu0 %v5200_v29  ;;  %v5175_v4 = vld [vmem:[%s6337_s13 + $0x10] sm:$0xff]  ;;  %v5190_v29 = vld [vmem:[%s6337_s13 + $0x88] sm:$0xff] }
 0x303   : > { %v1972_v2 = vmax.f32 %v1644_v43, 0.0  ;;  %v1704_v45 = vpop.f32.mrf.mxu0  ;;  %v1618_v53 = vadd.f32 %v1617_v28, %v6392_v7  ;;  %3175 = vmatpush.bf16.msrb.mxu1 %v5175_v4  ;;  %3234 = vmatpush.bf16.msra.mxu3 %v5190_v29 }
 0x304   : > { %v1973_v22 = vmax.f32 %v1673_v32, 0.0  ;;  %v5199_v32 = vld [vmem:[%s6337_s13 + $0xd0] sm:$0xff]  ;;  %3206 = vmatpush.bf16.msra.mxu2 %v5181_v47 }
 0x305   : > { %v6433_v25 = vpack.c.bf16 %v1972_v2, %v1956_v62  ;;  %1848 = vmatmul.bf16.gmra.mxu1 %v6021_v19  ;;  %1877 = vmatmul.bf16.gmra.mxu2 %v6021_v19  ;;  %v1705_v62 = vadd.f32 %v1704_v45, %v6400_v20  ;;  %v1987_v57 = vmax.f32 %v1618_v53, 0.0 }
 0x306   : > { %v6440_v3 = vpack.c.bf16 %v1973_v22, %v1957_v44  ;;  %1906 = vmatmul.bf16.gmra.mxu3 %v6021_v19  ;;  %1935 = vmatmul.bf16.gmra.mxu0 %v6021_v19 }
 0x307   : > { %3262 = vmatpush.bf16.msrb.mxu0 %v5199_v32  ;;  %v1990_v56 = vmax.f32 %v1705_v62, 0.0  ;;  %3176 = vmatpush.bf16.msrb.mxu1 %v5174_v8  ;;  %v5173_v62 = vld [vmem:[%s6337_s13] sm:$0xff] }
 0x308   : > { %v1646_v49 = vpop.f32.mrf.mxu2  ;;  %v5197_v8 = vld [vmem:[%s6337_s13 + $0xc0] sm:$0xff] }
 0x309   : > { %v1675_v43 = vpop.f32.mrf.mxu3  ;;  %v1647_v45 = vadd.f32 %v1646_v49, %v6413_v61 }
 0x30a   : > { %v1619_v2 = vpop.f32.mrf.mxu1  ;;  %v1676_v59 = vadd.f32 %v1675_v43, %v6417_v1 }
 0x30b   : > { %v1620_v19 = vadd.f32 %v1619_v2, %v6392_v7  ;;  %v1706_v44 = vpop.f32.mrf.mxu0  ;;  %3263 = vmatpush.bf16.msrb.mxu0 %v5198_v10  ;;  %v1988_v29 = vmax.f32 %v1647_v45, 0.0  ;;  %3177 = vmatpush.bf16.msrb.mxu1 %v5173_v62 }
 0x30c   : > { %v1707_v22 = vadd.f32 %v1706_v44, %v6400_v20  ;;  %v5189_v44 = vld [vmem:[%s6337_s13 + $0x80] sm:$0xff]  ;;  %v1989_v43 = vmax.f32 %v1676_v59, 0.0 }
 0x30d   : > { %v2003_v28 = vmax.f32 %v1620_v19, 0.0  ;;  %3235 = vmatpush.bf16.msra.mxu3 %v5189_v44 }
 0x30e   : > { %v2006_v48 = vmax.f32 %v1707_v22, 0.0 }
 0x30f   : > { %v6457_v4 = vpack.c.bf16 %v2003_v28, %v1987_v57  ;;  %3264 = vmatpush.bf16.msrb.mxu0 %v5197_v8 }
 0x310   : > { %v1648_v32 = vpop.f32.mrf.mxu2  ;;  %v6460_v53 = vpack.c.bf16 %v2006_v48, %v1990_v56  ;;  %v5220_v56 = vld [vmem:[%s6337_s13 + $0x178] sm:$0xff] }
 0x311   : > { %v1649_v2 = vadd.f32 %v1648_v32, %v6413_v61  ;;  %v1677_v19 = vpop.f32.mrf.mxu3  ;;  %3315 = vmatpush.bf16.msrb.mxu2 %v5220_v56 }
 0x312   : > { %v1678_v22 = vadd.f32 %v1677_v19, %v6417_v1  ;;  %v1622_v49 = vpop.f32.mrf.mxu1 }
 0x313   : > { %v2004_v57 = vmax.f32 %v1649_v2, 0.0  ;;  %v1709_v28 = vpop.f32.mrf.mxu0  ;;  %v1623_v59 = vadd.f32 %v1622_v49, %v6392_v7 }
 0x314   : > { %v2005_v47 = vmax.f32 %v1678_v22, 0.0  ;;  %v1710_v2 = vadd.f32 %v1709_v28, %v6400_v20 }
 0x315   : > { %1853 = vmatmul.bf16.gmra.mxu1 %v6042_v58  ;;  %1882 = vmatmul.bf16.gmra.mxu2 %v6042_v58  ;;  %v6469_v48 = vpack.c.bf16 %v2004_v57, %v1988_v29  ;;  %v2019_v8 = vmax.f32 %v1623_v59, 0.0 }
 0x316   : > { %1911 = vmatmul.bf16.gmra.mxu3 %v6042_v58  ;;  %1940 = vmatmul.bf16.gmra.mxu0 %v6042_v58  ;;  %v6474_v10 = vpack.c.bf16 %v2005_v47, %v1989_v43  ;;  %v2022_v58 = vmax.f32 %v1710_v2, 0.0 }
 0x317   : > { %3316 = vmatpush.bf16.msrb.mxu2 %v5219_v0 }
 0x318   : > { %v1651_v45 = vpop.f32.mrf.mxu2 }
 0x319   : > { %v1680_v32 = vpop.f32.mrf.mxu3  ;;  %v1652_v43 = vadd.f32 %v1651_v45, %v6413_v61 }
 0x31a   : > { %v1624_v19 = vpop.f32.mrf.mxu1  ;;  %v1681_v56 = vadd.f32 %v1680_v32, %v6417_v1 }
 0x31b   : > { %v1625_v62 = vadd.f32 %v1624_v19, %v6392_v7  ;;  %v1711_v44 = vpop.f32.mrf.mxu0 }
 0x31c   : > { %v1712_v22 = vadd.f32 %v1711_v44, %v6400_v20 }
 0x31d   : > { %v2035_v29 = vmax.f32 %v1625_v62, 0.0  ;;  %v2020_v62 = vmax.f32 %v1652_v43, 0.0 }
 0x31e   : > { %v2038_v57 = vmax.f32 %v1712_v22, 0.0  ;;  %v2021_v22 = vmax.f32 %v1681_v56, 0.0 }
 0x31f   : > { %v6481_v47 = vpack.c.bf16 %v2035_v29, %v2019_v8  ;;  %v5228_v29 = vld [vmem:[%s6337_s13 + $0x1b8] sm:$0xff] }
 0x320   : > { %v1653_v49 = vpop.f32.mrf.mxu2  ;;  %v6485_v63 = vpack.c.bf16 %v2038_v57, %v2022_v58  ;;  %v5212_v58 = vld [vmem:[%s6337_s13 + $0x138] sm:$0xff]  ;;  %v5218_v57 = vld [vmem:[%s6337_s13 + $0x168] sm:$0xff]  ;;  %3344 = vmatpush.bf16.msrb.mxu3 %v5228_v29 }
 0x321   : > { %v1654_v28 = vadd.f32 %v1653_v49, %v6413_v61  ;;  %v1682_v19 = vpop.f32.mrf.mxu3  ;;  %3286 = vmatpush.bf16.msra.mxu1 %v5212_v58  ;;  %3317 = vmatpush.bf16.msrb.mxu2 %v5218_v57  ;;  %v1555_v58 = vadd.f32 %v6245_v34, %v6378_v18 }
 0x322   : > { %7132 = vst [vmem:[#allocation22_spill] sm:$0xff] %v6485_v63  ;;  %v1683_v59 = vadd.f32 %v1682_v19, %v6417_v1  ;;  %v1627_v2 = vpop.f32.mrf.mxu1  ;;  %v5217_v63 = vld [vmem:[%s6337_s13 + $0x160] sm:$0xff] }
 0x323   : > { %v2036_v45 = vmax.f32 %v1654_v28, 0.0  ;;  %v1714_v44 = vpop.f32.mrf.mxu0  ;;  %v1628_v43 = vadd.f32 %v1627_v2, %v6392_v7  ;;  %v1586_v2 = vadd.f32 %v6249_v5, %v6368_v16 }
 0x324   : > { %v2037_v8 = vmax.f32 %v1683_v59, 0.0  ;;  %v1715_v28 = vadd.f32 %v1714_v44, %v6400_v20  ;;  %v1499_v59 = vadd.f32 %v6247_v35, %v6365_v37  ;;  %v1526_v35 = vadd.f32 %v6243_v33, %v6375_v13 }
 0x325   : > { %1858 = vmatmul.bf16.gmra.mxu1 %v6139_v12  ;;  %1887 = vmatmul.bf16.gmra.mxu2 %v6139_v12  ;;  %v6491_v32 = vpack.c.bf16 %v2036_v45, %v2020_v62  ;;  %v2051_v29 = vmax.f32 %v1628_v43, 0.0  ;;  %v1970_v33 = vmax.f32 %v1586_v2, 0.0  ;;  %v6532_v2 = vld [vmem:[%s6352_s16 + $0x8] sm:$0xff] }
 0x326   : > { %1916 = vmatmul.bf16.gmra.mxu3 %v6139_v12  ;;  %1945 = vmatmul.bf16.gmra.mxu0 %v6139_v12  ;;  %v6498_v49 = vpack.c.bf16 %v2037_v8, %v2021_v22  ;;  %v1528_v12 = vadd.f32 %v6263_v50, %v6375_v13  ;;  %v1557_v22 = vadd.f32 %v6268_v55, %v6378_v18  ;;  %v2054_v5 = vmax.f32 %v1715_v28, 0.0  ;;  %v5211_v55 = vld [vmem:[%s6337_s13 + $0x130] sm:$0xff] }
 0x327   : > { %7133 = vst [vmem:[#allocation23_spill] sm:$0xff] %v6491_v32  ;;  %v1497_v8 = vadd.f32 %v6233_v54, %v6365_v37  ;;  %3287 = vmatpush.bf16.msra.mxu1 %v5211_v55  ;;  %3318 = vmatpush.bf16.msrb.mxu2 %v5217_v63  ;;  %v6541_v55 = vperm.slane %v6532_v2, 3 }
 0x328   : > { %7134 = vst [vmem:[#allocation24_spill] sm:$0xff] %v6498_v49  ;;  %v1656_v0 = vpop.f32.mrf.mxu2  ;;  %v1969_v43 = vmax.f32 %v1557_v22, 0.0 }
 0x329   : > { %v1685_v56 = vpop.f32.mrf.mxu3  ;;  %v1657_v54 = vadd.f32 %v1656_v0, %v6413_v61  ;;  %v1951_v28 = vmax.f32 %v1497_v8, 0.0  ;;  %v1953_v0 = vmax.f32 %v1555_v58, 0.0 }
 0x32a   : > { %v1629_v19 = vpop.f32.mrf.mxu1 }
 0x32b   : > { %v1630_v62 = vadd.f32 %v1629_v19, %v6392_v7  ;;  %v1716_v45 = vpop.f32.mrf.mxu0  ;;  %v1584_v7 = vadd.f32 %v6238_v24, %v6368_v16  ;;  %v5227_v19 = vld [vmem:[%s6337_s13 + $0x1b0] sm:$0xff] }
 0x32c   : > { %v1717_v44 = vadd.f32 %v1716_v45, %v6400_v20  ;;  %v1967_v20 = vmax.f32 %v1499_v59, 0.0  ;;  %v1968_v45 = vmax.f32 %v1528_v12, 0.0  ;;  %3345 = vmatpush.bf16.msrb.mxu3 %v5227_v19  ;;  %v2052_v19 = vmax.f32 %v1657_v54, 0.0 }
 0x32d   : > { %v2067_v50 = vmax.f32 %v1630_v62, 0.0  ;;  %v1686_v62 = vadd.f32 %v1685_v56, %v6417_v1  ;;  %v1954_v12 = vmax.f32 %v1584_v7, 0.0  ;;  %v6535_v7 = vperm.slane %v6532_v2, 0 }
 0x32e   : > { %v2070_v57 = vmax.f32 %v1717_v44, 0.0  ;;  %v1952_v44 = vmax.f32 %v1526_v35, 0.0  ;;  %v2079_v56 = vpack.c.bf16 %v1967_v20, %v1951_v28  ;;  %v5210_v20 = vld [vmem:[%s6337_s13 + $0x128] sm:$0xff] }
 0x32f   : > { %v6524_v49 = vpack.c.bf16 %v2067_v50, %v2051_v29  ;;  %v2082_v35 = vpack.c.bf16 %v1970_v33, %v1954_v12  ;;  %3288 = vmatpush.bf16.msra.mxu1 %v5210_v20  ;;  %v1533_v12 = vadd.f32 %v6307_v52, %v6375_v13  ;;  %v5215_v20 = vld [vmem:[%s6337_s13 + $0x150] sm:$0xff] }
 0x330   : > { %v1658_v24 = vpop.f32.mrf.mxu2  ;;  %v6527_v34 = vpack.c.bf16 %v2070_v57, %v2054_v5  ;;  %v2080_v50 = vpack.c.bf16 %v1968_v45, %v1952_v44  ;;  %v2053_v57 = vmax.f32 %v1686_v62, 0.0  ;;  %v5216_v45 = vld [vmem:[%s6337_s13 + $0x158] sm:$0xff] }
 0x331   : > { %v1659_v32 = vadd.f32 %v1658_v24, %v6413_v61  ;;  %v1687_v59 = vpop.f32.mrf.mxu3  ;;  %v2081_v61 = vpack.c.bf16 %v1969_v43, %v1953_v0  ;;  %3319 = vmatpush.bf16.msrb.mxu2 %v5216_v45  ;;  %v5235_v24 = vld [vmem:[%s6337_s13 + $0x1f0] sm:$0xff]  ;;  %v6556_v0 = vperm.slane %v6532_v2, 1 }
 0x332   : > { %v1688_v29 = vadd.f32 %v1687_v59, %v6417_v1  ;;  %v1728_v22 = vpop.f32.mrf.mxu1  ;;  %v5236_v1 = vld [vmem:[%s6337_s13 + $0x1f8] sm:$0xff]  ;;  %v1504_v59 = vadd.f32 %v6293_v26, %v6365_v37  ;;  %v6564_v26 = vperm.slane %v6532_v2, 2 }
 0x333   : > { %v2068_v5 = vmax.f32 %v1659_v32, 0.0  ;;  %v1815_v8 = vpop.f32.mrf.mxu0  ;;  %v5226_v32 = vld [vmem:[%s6337_s13 + $0x1a8] sm:$0xff]  ;;  %3373 = vmatpush.bf16.msra.mxu0 %v5236_v1  ;;  %v1729_v43 = vadd.f32 %v1728_v22, %v6535_v7  ;;  %v5225_v1 = vld [vmem:[%s6337_s13 + $0x1a0] sm:$0xff] }
 0x334   : > { %v2069_v63 = vmax.f32 %v1688_v29, 0.0  ;;  %3346 = vmatpush.bf16.msrb.mxu3 %v5226_v32  ;;  %v1816_v28 = vadd.f32 %v1815_v8, %v6541_v55  ;;  %v5209_v32 = vld [vmem:[%s6337_s13 + $0x120] sm:$0xff]  ;;  %v1999_v45 = vmax.f32 %v1504_v59, 0.0 }
 0x335   : > { %3178 = vmatmul.bf16.vlgmr.msrb.gmra.mxu1 %v2079_v56  ;;  %3207 = vmatmul.bf16.vlgmr.msra.gmra.mxu2 %v2080_v50  ;;  %v6538_v58 = vpack.c.bf16 %v2068_v5, %v2052_v19  ;;  %v1591_v56 = vadd.f32 %v6299_v36, %v6368_v16  ;;  %v1562_v50 = vadd.f32 %v6312_v9, %v6378_v18  ;;  %v1959_v8 = vmax.f32 %v1729_v43, 0.0 }
 0x336   : > { %3236 = vmatmul.bf16.vlgmr.msra.gmra.mxu3 %v2081_v61  ;;  %3265 = vmatmul.bf16.vlgmr.msrb.gmra.mxu0 %v2082_v35  ;;  %v6546_v54 = vpack.c.bf16 %v2069_v63, %v2053_v57  ;;  %v1502_v19 = vadd.f32 %v6275_v27, %v6365_v37  ;;  %v1531_v5 = vadd.f32 %v6281_v14, %v6375_v13  ;;  %v5234_v61 = vld [vmem:[%s6337_s13 + $0x1e8] sm:$0xff]  ;;  %v1962_v57 = vmax.f32 %v1816_v28, 0.0 }
 0x337   : > { %3374 = vmatpush.bf16.msra.mxu0 %v5235_v24  ;;  %v1589_v36 = vadd.f32 %v6277_v6, %v6368_v16  ;;  %v1560_v9 = vadd.f32 %v6283_v21, %v6378_v18  ;;  %v2000_v24 = vmax.f32 %v1533_v12, 0.0  ;;  %v2002_v43 = vmax.f32 %v1591_v56, 0.0  ;;  %3289 = vmatpush.bf16.msra.mxu1 %v5209_v32 }
 0x338   : > { %v1757_v33 = vpop.f32.mrf.mxu2  ;;  %3347 = vmatpush.bf16.msrb.mxu3 %v5225_v1  ;;  %v1983_v28 = vmax.f32 %v1502_v19, 0.0  ;;  %3320 = vmatpush.bf16.msrb.mxu2 %v5215_v20 }
 0x339   : > { %v1786_v62 = vpop.f32.mrf.mxu3  ;;  %v1758_v27 = vadd.f32 %v1757_v33, %v6556_v0  ;;  %v1986_v33 = vmax.f32 %v1589_v36, 0.0  ;;  %v5224_v36 = vld [vmem:[%s6337_s13 + $0x198] sm:$0xff] }
 0x33a   : > { %v1730_v44 = vpop.f32.mrf.mxu1  ;;  %v1787_v6 = vadd.f32 %v1786_v62, %v6564_v26 }
 0x33b   : > { %v1731_v29 = vadd.f32 %v1730_v44, %v6535_v7  ;;  %v1817_v22 = vpop.f32.mrf.mxu0  ;;  %3375 = vmatpush.bf16.msra.mxu0 %v5234_v61  ;;  %v2001_v44 = vmax.f32 %v1562_v50, 0.0  ;;  %v1960_v62 = vmax.f32 %v1758_v27, 0.0  ;;  %v2098_v32 = vpack.c.bf16 %v2002_v43, %v1986_v33  ;;  %v5232_v27 = vld [vmem:[%s6337_s13 + $0x1d8] sm:$0xff] }
 0x33c   : > { %v1818_v52 = vadd.f32 %v1817_v22, %v6541_v55  ;;  %v1984_v22 = vmax.f32 %v1531_v5, 0.0  ;;  %v1961_v5 = vmax.f32 %v1787_v6, 0.0  ;;  %3348 = vmatpush.bf16.msrb.mxu3 %v5224_v36  ;;  %v5207_v6 = vld [vmem:[%s6337_s13 + $0x110] sm:$0xff]  ;;  %v1538_v33 = vadd.f32 %v6347_v41, %v6375_v13  ;;  %v5213_v36 = vld [vmem:[%s6337_s13 + $0x140] sm:$0xff] }
 0x33d   : > { %v1975_v35 = vmax.f32 %v1731_v29, 0.0  ;;  %v1536_v41 = vadd.f32 %v6331_v31, %v6375_v13 }
 0x33e   : > { %v1978_v63 = vmax.f32 %v1818_v52, 0.0  ;;  %v5233_v52 = vld [vmem:[%s6337_s13 + $0x1e0] sm:$0xff]  ;;  %v2096_v19 = vpack.c.bf16 %v2000_v24, %v1984_v22  ;;  %v5231_v22 = vld [vmem:[%s6337_s13 + $0x1d0] sm:$0xff] }
 0x33f   : > { %v6580_v14 = vpack.c.bf16 %v1975_v35, %v1959_v8  ;;  %v1985_v8 = vmax.f32 %v1560_v9, 0.0  ;;  %3376 = vmatpush.bf16.msra.mxu0 %v5233_v52  ;;  %v5208_v9 = vld [vmem:[%s6337_s13 + $0x118] sm:$0xff]  ;;  %v1509_v52 = vadd.f32 %v6342_v39, %v6365_v37  ;;  %v1507_v39 = vadd.f32 %v6319_v23, %v6365_v37 }
 0x340   : > { %v6583_v29 = vpack.c.bf16 %v1978_v63, %v1962_v57  ;;  %v1759_v21 = vpop.f32.mrf.mxu2  ;;  %v2095_v57 = vpack.c.bf16 %v1999_v45, %v1983_v28  ;;  %v5214_v45 = vld [vmem:[%s6337_s13 + $0x148] sm:$0xff]  ;;  %3290 = vmatpush.bf16.msra.mxu1 %v5208_v9  ;;  %v5223_v28 = vld [vmem:[%s6337_s13 + $0x190] sm:$0xff] }
 0x341   : > { %v1760_v59 = vadd.f32 %v1759_v21, %v6556_v0  ;;  %v1788_v12 = vpop.f32.mrf.mxu3  ;;  %v2097_v1 = vpack.c.bf16 %v2001_v44, %v1985_v8  ;;  %3321 = vmatpush.bf16.msrb.mxu2 %v5214_v45  ;;  %3349 = vmatpush.bf16.msrb.mxu3 %v5223_v28  ;;  %v2031_v9 = vmax.f32 %v1509_v52, 0.0  ;;  %v2016_v45 = vmax.f32 %v1536_v41, 0.0  ;;  %v5221_v28 = vld [vmem:[%s6337_s13 + $0x180] sm:$0xff] }
 0x342   : > { %v1789_v56 = vadd.f32 %v1788_v12, %v6564_v26  ;;  %v1733_v50 = vpop.f32.mrf.mxu1 }
 0x343   : > { %v1976_v35 = vmax.f32 %v1760_v59, 0.0  ;;  %v1820_v61 = vpop.f32.mrf.mxu0  ;;  %3377 = vmatpush.bf16.msra.mxu0 %v5232_v27  ;;  %v1734_v43 = vadd.f32 %v1733_v50, %v6535_v7  ;;  %v1596_v50 = vadd.f32 %v6344_v40, %v6368_v16  ;;  %v1594_v40 = vadd.f32 %v6324_v17, %v6368_v16 }
 0x344   : > { %v1977_v63 = vmax.f32 %v1789_v56, 0.0  ;;  %v1821_v59 = vadd.f32 %v1820_v61, %v6541_v55  ;;  %3291 = vmatpush.bf16.msra.mxu1 %v5207_v6  ;;  %v2032_v27 = vmax.f32 %v1538_v33, 0.0  ;;  %v5205_v6 = vld [vmem:[%s6337_s13 + $0x100] sm:$0xff] }
 0x345   : > { %v6588_v20 = vpack.c.bf16 %v1976_v35, %v1960_v62  ;;  %3183 = vmatmul.bf16.gmra.mxu1 %v2095_v57  ;;  %3212 = vmatmul.bf16.gmra.mxu2 %v2096_v19  ;;  %v1567_v62 = vadd.f32 %v6350_v42, %v6378_v18  ;;  %v1991_v61 = vmax.f32 %v1734_v43, 0.0  ;;  %v5206_v19 = vld [vmem:[%s6337_s13 + $0x108] sm:$0xff]  ;;  %v1565_v42 = vadd.f32 %v6340_v38, %v6378_v18 }
 0x346   : > { %v6593_v21 = vpack.c.bf16 %v1977_v63, %v1961_v5  ;;  %3241 = vmatmul.bf16.gmra.mxu3 %v2097_v1  ;;  %3270 = vmatmul.bf16.gmra.mxu0 %v2098_v32  ;;  %v5222_v5 = vld [vmem:[%s6337_s13 + $0x188] sm:$0xff]  ;;  %v1994_v1 = vmax.f32 %v1821_v59, 0.0  ;;  %v2034_v37 = vmax.f32 %v1596_v50, 0.0  ;;  %v2015_v18 = vmax.f32 %v1507_v39, 0.0 }
 0x347   : > { %3378 = vmatpush.bf16.msra.mxu0 %v5231_v22  ;;  %v5230_v63 = vld [vmem:[%s6337_s13 + $0x1c8] sm:$0xff]  ;;  %3350 = vmatpush.bf16.msrb.mxu3 %v5222_v5  ;;  %v2033_v13 = vmax.f32 %v1567_v62, 0.0  ;;  %v5229_v22 = vld [vmem:[%s6337_s13 + $0x1c0] sm:$0xff]  ;;  %v2018_v59 = vmax.f32 %v1594_v40, 0.0  ;;  %v2112_v62 = vpack.c.bf16 %v2032_v27, %v2016_v45 }
 0x348   : > { %v1762_v24 = vpop.f32.mrf.mxu2  ;;  %3292 = vmatpush.bf16.msra.mxu1 %v5206_v19  ;;  %3322 = vmatpush.bf16.msrb.mxu2 %v5213_v36  ;;  %v2111_v50 = vpack.c.bf16 %v2031_v9, %v2015_v18  ;;  %v5252_v19 = vld [vmem:[%s6337_s13 + $0x278] sm:$0xff] }
 0x349   : > { %v1791_v44 = vpop.f32.mrf.mxu3  ;;  %v1763_v23 = vadd.f32 %v1762_v24, %v6556_v0 }
 0x34a   : > { %v1735_v12 = vpop.f32.mrf.mxu1  ;;  %v1792_v17 = vadd.f32 %v1791_v44, %v6564_v26 }
 0x34b   : > { %v1736_v8 = vadd.f32 %v1735_v12, %v6535_v7  ;;  %v1822_v56 = vpop.f32.mrf.mxu0  ;;  %3379 = vmatpush.bf16.msra.mxu0 %v5230_v63  ;;  %v2017_v12 = vmax.f32 %v1565_v42, 0.0  ;;  %3351 = vmatpush.bf16.msrb.mxu3 %v5221_v28 }
 0x34c   : > { %v1823_v35 = vadd.f32 %v1822_v56, %v6541_v55  ;;  %3293 = vmatpush.bf16.msra.mxu1 %v5205_v6  ;;  %3431 = vmatpush.bf16.msra.mxu2 %v5252_v19 }
 0x34d   : > { %v2007_v57 = vmax.f32 %v1736_v8, 0.0  ;;  %v1992_v8 = vmax.f32 %v1763_v23, 0.0  ;;  %v2113_v41 = vpack.c.bf16 %v2033_v13, %v2017_v12 }
 0x34e   : > { %v2010_v32 = vmax.f32 %v1823_v35, 0.0  ;;  %v1993_v35 = vmax.f32 %v1792_v17, 0.0 }
 0x34f   : > { %v6624_v31 = vpack.c.bf16 %v2007_v57, %v1991_v61  ;;  %v2114_v61 = vpack.c.bf16 %v2034_v37, %v2018_v59  ;;  %3380 = vmatpush.bf16.msra.mxu0 %v5229_v22 }
 0x350   : > { %v1764_v16 = vpop.f32.mrf.mxu2  ;;  %v6627_v38 = vpack.c.bf16 %v2010_v32, %v1994_v1 }
 0x351   : > { %v1765_v43 = vadd.f32 %v1764_v16, %v6556_v0  ;;  %v1793_v24 = vpop.f32.mrf.mxu3 }
 0x352   : > { %v1794_v52 = vadd.f32 %v1793_v24, %v6564_v26  ;;  %v1738_v33 = vpop.f32.mrf.mxu1  ;;  %v5251_v24 = vld [vmem:[%s6337_s13 + $0x270] sm:$0xff] }
 0x353   : > { %v2008_v44 = vmax.f32 %v1765_v43, 0.0  ;;  %v1825_v56 = vpop.f32.mrf.mxu0  ;;  %v1739_v40 = vadd.f32 %v1738_v33, %v6535_v7  ;;  %3432 = vmatpush.bf16.msra.mxu2 %v5251_v24 }
 0x354   : > { %v2009_v39 = vmax.f32 %v1794_v52, 0.0  ;;  %v1826_v1 = vadd.f32 %v1825_v56, %v6541_v55 }
 0x355   : > { %3188 = vmatmul.bf16.gmra.mxu1 %v2111_v50  ;;  %3217 = vmatmul.bf16.gmra.mxu2 %v2112_v62  ;;  %v6634_v57 = vpack.c.bf16 %v2008_v44, %v1992_v8  ;;  %v2023_v23 = vmax.f32 %v1739_v40, 0.0  ;;  %v5260_v62 = vld [vmem:[%s6337_s13 + $0x2b8] sm:$0xff] }
 0x356   : > { %3246 = vmatmul.bf16.gmra.mxu3 %v2113_v41  ;;  %3275 = vmatmul.bf16.gmra.mxu0 %v2114_v61  ;;  %v6637_v5 = vpack.c.bf16 %v2009_v39, %v1993_v35  ;;  %v2026_v13 = vmax.f32 %v1826_v1, 0.0  ;;  %v5244_v35 = vld [vmem:[%s6337_s13 + $0x238] sm:$0xff]  ;;  %v5250_v39 = vld [vmem:[%s6337_s13 + $0x268] sm:$0xff] }
 0x357   : > { %3460 = vmatpush.bf16.msra.mxu3 %v5260_v62  ;;  %3402 = vmatpush.bf16.msrb.mxu1 %v5244_v35  ;;  %v5248_v62 = vld [vmem:[%s6337_s13 + $0x258] sm:$0xff] }
 0x358   : > { %v1767_v63 = vpop.f32.mrf.mxu2  ;;  %3433 = vmatpush.bf16.msra.mxu2 %v5250_v39 }
 0x359   : > { %v1796_v42 = vpop.f32.mrf.mxu3  ;;  %v1768_v16 = vadd.f32 %v1767_v63, %v6556_v0 }
 0x35a   : > { %v1740_v32 = vpop.f32.mrf.mxu1  ;;  %v1797_v45 = vadd.f32 %v1796_v42, %v6564_v26 }
 0x35b   : > { %v1741_v36 = vadd.f32 %v1740_v32, %v6535_v7  ;;  %v1827_v9 = vpop.f32.mrf.mxu0  ;;  %v2024_v52 = vmax.f32 %v1768_v16, 0.0 }
 0x35c   : > { %v1828_v27 = vadd.f32 %v1827_v9, %v6541_v55  ;;  %v2025_v44 = vmax.f32 %v1797_v45, 0.0  ;;  %v5259_v9 = vld [vmem:[%s6337_s13 + $0x2b0] sm:$0xff] }
 0x35d   : > { %v2039_v37 = vmax.f32 %v1741_v36, 0.0  ;;  %3461 = vmatpush.bf16.msra.mxu3 %v5259_v9  ;;  %v5241_v9 = vld [vmem:[%s6337_s13 + $0x220] sm:$0xff] }
 0x35e   : > { %v2042_v17 = vmax.f32 %v1828_v27, 0.0  ;;  %v5243_v27 = vld [vmem:[%s6337_s13 + $0x230] sm:$0xff] }
 0x35f   : > { %v6644_v18 = vpack.c.bf16 %v2039_v37, %v2023_v23  ;;  %v5249_v23 = vld [vmem:[%s6337_s13 + $0x260] sm:$0xff]  ;;  %3403 = vmatpush.bf16.msrb.mxu1 %v5243_v27  ;;  %v5247_v27 = vld [vmem:[%s6337_s13 + $0x250] sm:$0xff] }
 0x360   : > { %v1769_v43 = vpop.f32.mrf.mxu2  ;;  %v6648_v6 = vpack.c.bf16 %v2042_v17, %v2026_v13  ;;  %3434 = vmatpush.bf16.msra.mxu2 %v5249_v23 }
 0x361   : > { %v1770_v28 = vadd.f32 %v1769_v43, %v6556_v0  ;;  %v1798_v22 = vpop.f32.mrf.mxu3 }
 0x362   : > { %v1799_v59 = vadd.f32 %v1798_v22, %v6564_v26  ;;  %v1743_v12 = vpop.f32.mrf.mxu1 }
 0x363   : > { %v2040_v33 = vmax.f32 %v1770_v28, 0.0  ;;  %v1830_v8 = vpop.f32.mrf.mxu0 }
 0x364   : > { %v2041_v56 = vmax.f32 %v1799_v59, 0.0  ;;  %v1831_v19 = vadd.f32 %v1830_v8, %v6541_v55  ;;  %3435 = vmatpush.bf16.msra.mxu2 %v5248_v62  ;;  %v5240_v62 = vld [vmem:[%s6337_s13 + $0x218] sm:$0xff] }
 0x365   : > { %3193 = vmatmul.bf16.gmra.mxu1 %v6384_v11  ;;  %3222 = vmatmul.bf16.gmra.mxu2 %v6397_v15  ;;  %v6654_v50 = vpack.c.bf16 %v2040_v33, %v2024_v52  ;;  %v1744_v11 = vadd.f32 %v1743_v12, %v6535_v7  ;;  %v6679_v33 = vperm.slane %v6532_v2, 4 }
 0x366   : > { %3251 = vmatmul.bf16.gmra.mxu3 %v6407_v30  ;;  %3280 = vmatmul.bf16.gmra.mxu0 %v6387_v51  ;;  %v6661_v41 = vpack.c.bf16 %v2041_v56, %v2025_v44  ;;  %v2058_v32 = vmax.f32 %v1831_v19, 0.0  ;;  %v5258_v44 = vld [vmem:[%s6337_s13 + $0x2a8] sm:$0xff] }
 0x367   : > { %v2055_v42 = vmax.f32 %v1744_v11, 0.0  ;;  %v5242_v56 = vld [vmem:[%s6337_s13 + $0x228] sm:$0xff]  ;;  %3462 = vmatpush.bf16.msra.mxu3 %v5258_v44  ;;  %v6700_v11 = vperm.slane %v6532_v2, 5 }
 0x368   : > { %v1772_v61 = vpop.f32.mrf.mxu2  ;;  %3404 = vmatpush.bf16.msrb.mxu1 %v5242_v56  ;;  %3436 = vmatpush.bf16.msra.mxu2 %v5247_v27  ;;  %v5256_v56 = vld [vmem:[%s6337_s13 + $0x298] sm:$0xff] }
 0x369   : > { %v1801_v15 = vpop.f32.mrf.mxu3  ;;  %v1773_v37 = vadd.f32 %v1772_v61, %v6556_v0  ;;  %v5267_v61 = vld [vmem:[%s6337_s13 + $0x2f0] sm:$0xff] }
 0x36a   : > { %v1745_v30 = vpop.f32.mrf.mxu1  ;;  %v1802_v17 = vadd.f32 %v1801_v15, %v6564_v26 }
 0x36b   : > { %v1746_v51 = vadd.f32 %v1745_v30, %v6535_v7  ;;  %v1832_v63 = vpop.f32.mrf.mxu0  ;;  %v2056_v28 = vmax.f32 %v1773_v37, 0.0  ;;  %v6704_v30 = vperm.slane %v6532_v2, 6 }
 0x36c   : > { %v1833_v40 = vadd.f32 %v1832_v63, %v6541_v55  ;;  %v2057_v12 = vmax.f32 %v1802_v17, 0.0  ;;  %3405 = vmatpush.bf16.msrb.mxu1 %v5241_v9 }
 0x36d   : > { %v2071_v1 = vmax.f32 %v1746_v51, 0.0 }
 0x36e   : > { %v2074_v36 = vmax.f32 %v1833_v40, 0.0 }
 0x36f   : > { %v6671_v13 = vpack.c.bf16 %v2071_v1, %v2055_v42  ;;  %v5266_v42 = vld [vmem:[%s6337_s13 + $0x2e8] sm:$0xff] }
 0x370   : > { %v1774_v16 = vpop.f32.mrf.mxu2  ;;  %v6674_v7 = vpack.c.bf16 %v2074_v36, %v2058_v32  ;;  %v5257_v36 = vld [vmem:[%s6337_s13 + $0x2a0] sm:$0xff]  ;;  %3406 = vmatpush.bf16.msrb.mxu1 %v5240_v62 }
 0x371   : > { %v1775_v55 = vadd.f32 %v1774_v16, %v6556_v0  ;;  %v1803_v45 = vpop.f32.mrf.mxu3  ;;  %v5268_v0 = vld [vmem:[%s6337_s13 + $0x2f8] sm:$0xff]  ;;  %3463 = vmatpush.bf16.msra.mxu3 %v5257_v36  ;;  %v5262_v36 = vld [vmem:[%s6337_s13 + $0x2c8] sm:$0xff] }
 0x372   : > { %v1804_v43 = vadd.f32 %v1803_v45, %v6564_v26  ;;  %v1844_v24 = vpop.f32.mrf.mxu1  ;;  %v6687_v26 = vperm.slane %v6532_v2, 7  ;;  %3489 = vmatpush.bf16.msrb.mxu0 %v5268_v0 }
 0x373   : > { %v2072_v22 = vmax.f32 %v1775_v55, 0.0  ;;  %v1931_v59 = vpop.f32.mrf.mxu0 }
 0x374   : > { %v2073_v52 = vmax.f32 %v1804_v43, 0.0  ;;  %v5265_v43 = vld [vmem:[%s6337_s13 + $0x2e0] sm:$0xff] }
 0x375   : > { %3294 = vmatmul.bf16.vlgmr.msra.gmra.mxu1 %v6425_v60  ;;  %3323 = vmatmul.bf16.vlgmr.msrb.gmra.mxu2 %v6433_v25  ;;  %v6684_v8 = vpack.c.bf16 %v2072_v22, %v2056_v28  ;;  %v1845_v25 = vadd.f32 %v1844_v24, %v6679_v33 }
 0x376   : > { %3352 = vmatmul.bf16.vlgmr.msrb.gmra.mxu3 %v6440_v3  ;;  %3381 = vmatmul.bf16.vlgmr.msra.gmra.mxu0 %v6428_v46  ;;  %v6694_v35 = vpack.c.bf16 %v2073_v52, %v2057_v12  ;;  %v1932_v46 = vadd.f32 %v1931_v59, %v6687_v26 }
 0x377   : > { %3490 = vmatpush.bf16.msrb.mxu0 %v5267_v61  ;;  %v1963_v63 = vmax.f32 %v1845_v25, 0.0  ;;  %3464 = vmatpush.bf16.msra.mxu3 %v5256_v56 }
 0x378   : > { %v1873_v60 = vpop.f32.mrf.mxu2  ;;  %v1966_v1 = vmax.f32 %v1932_v46, 0.0  ;;  %v5239_v46 = vld [vmem:[%s6337_s13 + $0x210] sm:$0xff] }
 0x379   : > { %v1902_v39 = vpop.f32.mrf.mxu3  ;;  %v1874_v23 = vadd.f32 %v1873_v60, %v6700_v11  ;;  %v5264_v60 = vld [vmem:[%s6337_s13 + $0x2d8] sm:$0xff]  ;;  %3407 = vmatpush.bf16.msrb.mxu1 %v5239_v46  ;;  %v7136_v46 = vld [vmem:[#allocation24_spill] sm:$0xff] }
 0x37a   : > { %v1846_v3 = vpop.f32.mrf.mxu1  ;;  %v1903_v17 = vadd.f32 %v1902_v39, %v6704_v30  ;;  %v5246_v39 = vld [vmem:[%s6337_s13 + $0x248] sm:$0xff] }
 0x37b   : > { %v1847_v15 = vadd.f32 %v1846_v3, %v6679_v33  ;;  %v1933_v19 = vpop.f32.mrf.mxu0  ;;  %3491 = vmatpush.bf16.msrb.mxu0 %v5266_v42  ;;  %v1964_v22 = vmax.f32 %v1874_v23, 0.0  ;;  %3437 = vmatpush.bf16.msra.mxu2 %v5246_v39  ;;  %v5255_v3 = vld [vmem:[%s6337_s13 + $0x290] sm:$0xff] }
 0x37c   : > { %v1934_v51 = vadd.f32 %v1933_v19, %v6687_v26  ;;  %v1965_v52 = vmax.f32 %v1903_v17, 0.0  ;;  %3465 = vmatpush.bf16.msra.mxu3 %v5255_v3  ;;  %v7137_v3 = vld [vmem:[#allocation22_spill] sm:$0xff] }
 0x37d   : > { %v1979_v40 = vmax.f32 %v1847_v15, 0.0  ;;  %v5263_v15 = vld [vmem:[%s6337_s13 + $0x2d0] sm:$0xff] }
 0x37e   : > { %v1982_v32 = vmax.f32 %v1934_v51, 0.0 }
 0x37f   : > { %v6712_v37 = vpack.c.bf16 %v1979_v40, %v1963_v63  ;;  %3492 = vmatpush.bf16.msrb.mxu0 %v5265_v43 }
 0x380   : > { %v6715_v2 = vpack.c.bf16 %v1982_v32, %v1966_v1  ;;  %v1875_v16 = vpop.f32.mrf.mxu2  ;;  %v5238_v1 = vld [vmem:[%s6337_s13 + $0x208] sm:$0xff] }
 0x381   : > { %v1876_v55 = vadd.f32 %v1875_v16, %v6700_v11  ;;  %v1904_v45 = vpop.f32.mrf.mxu3  ;;  %v5254_v32 = vld [vmem:[%s6337_s13 + $0x288] sm:$0xff]  ;;  %3408 = vmatpush.bf16.msrb.mxu1 %v5238_v1  ;;  %v5283_v1 = vld [vmem:[%s6337_s13 + $0x370] sm:$0xff] }
 0x382   : > { %v1905_v24 = vadd.f32 %v1904_v45, %v6704_v30  ;;  %v1849_v28 = vpop.f32.mrf.mxu1  ;;  %3466 = vmatpush.bf16.msra.mxu3 %v5254_v32  ;;  %v5245_v45 = vld [vmem:[%s6337_s13 + $0x240] sm:$0xff] }
 0x383   : > { %v1980_v59 = vmax.f32 %v1876_v55, 0.0  ;;  %v1936_v12 = vpop.f32.mrf.mxu0  ;;  %3493 = vmatpush.bf16.msrb.mxu0 %v5264_v60  ;;  %3438 = vmatpush.bf16.msra.mxu2 %v5245_v45 }
 0x384   : > { %v1981_v0 = vmax.f32 %v1905_v24, 0.0  ;;  %v1937_v19 = vadd.f32 %v1936_v12, %v6687_v26  ;;  %v5261_v12 = vld [vmem:[%s6337_s13 + $0x2c0] sm:$0xff] }
 0x385   : > { %v6720_v44 = vpack.c.bf16 %v1980_v59, %v1964_v22  ;;  %3299 = vmatmul.bf16.gmra.mxu1 %v6457_v4  ;;  %3328 = vmatmul.bf16.gmra.mxu2 %v6469_v48  ;;  %v1850_v4 = vadd.f32 %v1849_v28, %v6679_v33  ;;  %v5237_v22 = vld [vmem:[%s6337_s13 + $0x200] sm:$0xff] }
 0x386   : > { %v6727_v25 = vpack.c.bf16 %v1981_v0, %v1965_v52  ;;  %3357 = vmatmul.bf16.gmra.mxu3 %v6474_v10  ;;  %3386 = vmatmul.bf16.gmra.mxu0 %v6460_v53  ;;  %v1998_v9 = vmax.f32 %v1937_v19, 0.0  ;;  %v5253_v59 = vld [vmem:[%s6337_s13 + $0x280] sm:$0xff] }
 0x387   : > { %3494 = vmatpush.bf16.msrb.mxu0 %v5263_v15  ;;  %v1995_v40 = vmax.f32 %v1850_v4, 0.0  ;;  %3409 = vmatpush.bf16.msrb.mxu1 %v5237_v22  ;;  %v7135_v4 = vld [vmem:[#allocation23_spill] sm:$0xff]  ;;  %v5284_v15 = vld [vmem:[%s6337_s13 + $0x378] sm:$0xff] }
 0x388   : > { %v1878_v61 = vpop.f32.mrf.mxu2  ;;  %3467 = vmatpush.bf16.msra.mxu3 %v5253_v59  ;;  %3547 = vmatpush.bf16.msrb.mxu2 %v5284_v15  ;;  %v5282_v15 = vld [vmem:[%s6337_s13 + $0x368] sm:$0xff] }
 0x389   : > { %v1907_v48 = vpop.f32.mrf.mxu3  ;;  %v1879_v23 = vadd.f32 %v1878_v61, %v6700_v11 }
 0x38a   : > { %v1851_v10 = vpop.f32.mrf.mxu1  ;;  %v1908_v16 = vadd.f32 %v1907_v48, %v6704_v30 }
 0x38b   : > { %v1852_v53 = vadd.f32 %v1851_v10, %v6679_v33  ;;  %v1938_v51 = vpop.f32.mrf.mxu0  ;;  %3495 = vmatpush.bf16.msrb.mxu0 %v5262_v36  ;;  %v1996_v56 = vmax.f32 %v1879_v23, 0.0 }
 0x38c   : > { %v1939_v63 = vadd.f32 %v1938_v51, %v6687_v26  ;;  %v1997_v39 = vmax.f32 %v1908_v16, 0.0  ;;  %3548 = vmatpush.bf16.msrb.mxu2 %v5283_v1 }
 0x38d   : > { %v2011_v42 = vmax.f32 %v1852_v53, 0.0 }
 0x38e   : > { %v2014_v27 = vmax.f32 %v1939_v63, 0.0 }
 0x38f   : > { %v6743_v17 = vpack.c.bf16 %v2011_v42, %v1995_v40  ;;  %3496 = vmatpush.bf16.msrb.mxu0 %v5261_v12 }
 0x390   : > { %v1880_v55 = vpop.f32.mrf.mxu2  ;;  %v6747_v43 = vpack.c.bf16 %v2014_v27, %v1998_v9  ;;  %3549 = vmatpush.bf16.msrb.mxu2 %v5282_v15 }
 0x391   : > { %v1881_v24 = vadd.f32 %v1880_v55, %v6700_v11  ;;  %v1909_v28 = vpop.f32.mrf.mxu3 }
 0x392   : > { %v1910_v52 = vadd.f32 %v1909_v28, %v6704_v30  ;;  %v1854_v0 = vpop.f32.mrf.mxu1 }
 0x393   : > { %v2012_v62 = vmax.f32 %v1881_v24, 0.0  ;;  %v1941_v60 = vpop.f32.mrf.mxu0  ;;  %v1855_v53 = vadd.f32 %v1854_v0, %v6679_v33 }
 0x394   : > { %v2013_v61 = vmax.f32 %v1910_v52, 0.0  ;;  %v1942_v63 = vadd.f32 %v1941_v60, %v6687_v26  ;;  %v5292_v60 = vld [vmem:[%s6337_s13 + $0x3b8] sm:$0xff] }
 0x395   : > { %3304 = vmatmul.bf16.gmra.mxu1 %v6481_v47  ;;  %3333 = vmatmul.bf16.gmra.mxu2 %v7135_v4  ;;  %v6756_v48 = vpack.c.bf16 %v2012_v62, %v1996_v56  ;;  %v2027_v36 = vmax.f32 %v1855_v53, 0.0 }
 0x396   : > { %3362 = vmatmul.bf16.gmra.mxu3 %v7136_v46  ;;  %3391 = vmatmul.bf16.gmra.mxu0 %v7137_v3  ;;  %v6761_v19 = vpack.c.bf16 %v2013_v61, %v1997_v39  ;;  %v2030_v27 = vmax.f32 %v1942_v63, 0.0  ;;  %v5276_v3 = vld [vmem:[%s6337_s13 + $0x338] sm:$0xff] }
 0x397   : > { %3576 = vmatpush.bf16.msrb.mxu3 %v5292_v60  ;;  %3518 = vmatpush.bf16.msra.mxu1 %v5276_v3  ;;  %v5290_v60 = vld [vmem:[%s6337_s13 + $0x3a8] sm:$0xff]  ;;  %v5280_v3 = vld [vmem:[%s6337_s13 + $0x358] sm:$0xff] }
 0x398   : > { %v1883_v10 = vpop.f32.mrf.mxu2 }
 0x399   : > { %v1912_v51 = vpop.f32.mrf.mxu3  ;;  %v1884_v16 = vadd.f32 %v1883_v10, %v6700_v11 }
 0x39a   : > { %v1856_v40 = vpop.f32.mrf.mxu1  ;;  %v1913_v45 = vadd.f32 %v1912_v51, %v6704_v30 }
 0x39b   : > { %v1857_v47 = vadd.f32 %v1856_v40, %v6679_v33  ;;  %v1943_v42 = vpop.f32.mrf.mxu0  ;;  %v2028_v0 = vmax.f32 %v1884_v16, 0.0 }
 0x39c   : > { %v1944_v32 = vadd.f32 %v1943_v42, %v6687_v26  ;;  %v2029_v39 = vmax.f32 %v1913_v45, 0.0  ;;  %v5281_v42 = vld [vmem:[%s6337_s13 + $0x360] sm:$0xff] }
 0x39d   : > { %v2043_v9 = vmax.f32 %v1857_v47, 0.0  ;;  %v5291_v47 = vld [vmem:[%s6337_s13 + $0x3b0] sm:$0xff]  ;;  %3550 = vmatpush.bf16.msrb.mxu2 %v5281_v42 }
 0x39e   : > { %v2046_v23 = vmax.f32 %v1944_v32, 0.0  ;;  %3577 = vmatpush.bf16.msrb.mxu3 %v5291_v47  ;;  %v5279_v47 = vld [vmem:[%s6337_s13 + $0x350] sm:$0xff] }
 0x39f   : > { %v6769_v55 = vpack.c.bf16 %v2043_v9, %v2027_v36 }
 0x3a0   : > { %v1885_v24 = vpop.f32.mrf.mxu2  ;;  %v6772_v28 = vpack.c.bf16 %v2046_v23, %v2030_v27 }
 0x3a1   : > { %v1886_v22 = vadd.f32 %v1885_v24, %v6700_v11  ;;  %v1914_v59 = vpop.f32.mrf.mxu3  ;;  %3551 = vmatpush.bf16.msrb.mxu2 %v5280_v3  ;;  %v5277_v3 = vld [vmem:[%s6337_s13 + $0x340] sm:$0xff] }
 0x3a2   : > { %v1915_v12 = vadd.f32 %v1914_v59, %v6704_v30  ;;  %v1859_v52 = vpop.f32.mrf.mxu1  ;;  %3578 = vmatpush.bf16.msrb.mxu3 %v5290_v60  ;;  %v5271_v60 = vld [vmem:[%s6337_s13 + $0x310] sm:$0xff] }
 0x3a3   : > { %v2044_v56 = vmax.f32 %v1886_v22, 0.0  ;;  %v1946_v62 = vpop.f32.mrf.mxu0 }
 0x3a4   : > { %v2045_v61 = vmax.f32 %v1915_v12, 0.0  ;;  %v1947_v4 = vadd.f32 %v1946_v62, %v6687_v26 }
 0x3a5   : > { %3309 = vmatmul.bf16.gmra.mxu1 %v6524_v49  ;;  %3338 = vmatmul.bf16.gmra.mxu2 %v6538_v58  ;;  %v6780_v46 = vpack.c.bf16 %v2044_v56, %v2028_v0  ;;  %v1860_v49 = vadd.f32 %v1859_v52, %v6679_v33  ;;  %v6803_v0 = vld [vmem:[%s5820_s9] sm:$0xff] }
 0x3a6   : > { %3367 = vmatmul.bf16.gmra.mxu3 %v6546_v54  ;;  %3396 = vmatmul.bf16.gmra.mxu0 %v6527_v34  ;;  %v6786_v10 = vpack.c.bf16 %v2045_v61, %v2029_v39  ;;  %v5275_v54 = vld [vmem:[%s6337_s13 + $0x330] sm:$0xff]  ;;  %v2062_v36 = vmax.f32 %v1947_v4, 0.0  ;;  %v6806_v56 = vperm.slane %v6803_v0, 1  ;;  %v5274_v4 = vld [vmem:[%s6337_s13 + $0x328] sm:$0xff] }
 0x3a7   : > { %v2059_v1 = vmax.f32 %v1860_v49, 0.0  ;;  %3519 = vmatpush.bf16.msra.mxu1 %v5275_v54  ;;  %v6825_v49 = vld [vmem:[%s6337_s13 + $0x3f0] sm:$0xff]  ;;  %v6832_v54 = vld [vmem:[%s6337_s13 + $0x3e8] sm:$0xff]  ;;  %3552 = vmatpush.bf16.msrb.mxu2 %v5279_v47  ;;  %v5285_v47 = vld [vmem:[%s6337_s13 + $0x380] sm:$0xff] }
 0x3a8   : > { %v1888_v53 = vpop.f32.mrf.mxu2 }
 0x3a9   : > { %v1917_v58 = vpop.f32.mrf.mxu3  ;;  %v1889_v27 = vadd.f32 %v1888_v53, %v6700_v11 }
 0x3aa   : > { %v1861_v51 = vpop.f32.mrf.mxu1 }
 0x3ab   : > { %v1862_v63 = vadd.f32 %v1861_v51, %v6679_v33  ;;  %v1948_v40 = vpop.f32.mrf.mxu0  ;;  %v1918_v33 = vadd.f32 %v1917_v58, %v6704_v30  ;;  %v2060_v12 = vmax.f32 %v1889_v27, 0.0  ;;  %3520 = vmatpush.bf16.msra.mxu1 %v5274_v4 }
 0x3ac   : > { %v1949_v34 = vadd.f32 %v1948_v40, %v6687_v26  ;;  %v5273_v40 = vld [vmem:[%s6337_s13 + $0x320] sm:$0xff] }
 0x3ad   : > { %v2075_v32 = vmax.f32 %v1862_v63, 0.0  ;;  %v2061_v39 = vmax.f32 %v1918_v33, 0.0  ;;  %v5289_v63 = vld [vmem:[%s6337_s13 + $0x3a0] sm:$0xff] }
 0x3ae   : > { %v2078_v9 = vmax.f32 %v1949_v34, 0.0  ;;  %3579 = vmatpush.bf16.msrb.mxu3 %v5289_v63 }
 0x3af   : > { %v6795_v23 = vpack.c.bf16 %v2075_v32, %v2059_v1  ;;  %3521 = vmatpush.bf16.msra.mxu1 %v5273_v40  ;;  %v5269_v40 = vld [vmem:[%s6337_s13 + $0x300] sm:$0xff] }
 0x3b0   : > { %v6798_v16 = vpack.c.bf16 %v2078_v9, %v2062_v36  ;;  %v1890_v45 = vpop.f32.mrf.mxu2  ;;  %v6839_v9 = vld [vmem:[%s6337_s13 + $0x3e0] sm:$0xff] }
 0x3b1   : > { %v1891_v26 = vadd.f32 %v1890_v45, %v6700_v11  ;;  %v1919_v24 = vpop.f32.mrf.mxu3  ;;  %v6812_v11 = vld [vmem:[%s6337_s13 + $0x3f8] sm:$0xff] }
 0x3b2   : > { %v1920_v22 = vadd.f32 %v1919_v24, %v6704_v30  ;;  %v3179_v59 = vpop.f32.mrf.mxu1  ;;  %3605 = vmatpush.bf16.msra.mxu0 %v6812_v11  ;;  %v5272_v24 = vld [vmem:[%s6337_s13 + $0x318] sm:$0xff] }
 0x3b3   : > { %v2076_v52 = vmax.f32 %v1891_v26, 0.0  ;;  %v3266_v62 = vpop.f32.mrf.mxu0  ;;  %v5288_v26 = vld [vmem:[%s6337_s13 + $0x398] sm:$0xff]  ;;  %3522 = vmatpush.bf16.msra.mxu1 %v5272_v24 }
 0x3b4   : > { %v2077_v61 = vmax.f32 %v1920_v22, 0.0  ;;  %v5296_v22 = vld [vmem:[%s6337_s13 + $0x3d8] sm:$0xff]  ;;  %3580 = vmatpush.bf16.msrb.mxu3 %v5288_v26 }
 0x3b5   : > { %3410 = vmatmul.bf16.vlgmr.msrb.gmra.mxu1 %v6580_v14  ;;  %3439 = vmatmul.bf16.vlgmr.msra.gmra.mxu2 %v6588_v20  ;;  %v6814_v30 = vpack.c.bf16 %v2076_v52, %v2060_v12  ;;  %v3180_v14 = vadd.f32 %v3179_v59, %v6806_v56  ;;  %v5278_v12 = vld [vmem:[%s6337_s13 + $0x348] sm:$0xff] }
 0x3b6   : > { %3468 = vmatmul.bf16.vlgmr.msra.gmra.mxu3 %v6593_v21  ;;  %3497 = vmatmul.bf16.vlgmr.msrb.gmra.mxu0 %v6583_v29  ;;  %v6820_v15 = vpack.c.bf16 %v2077_v61, %v2061_v39  ;;  %v5287_v39 = vld [vmem:[%s6337_s13 + $0x390] sm:$0xff] }
 0x3b7   : > { %3606 = vmatpush.bf16.msra.mxu0 %v6825_v49  ;;  %3553 = vmatpush.bf16.msrb.mxu2 %v5278_v12  ;;  %v5295_v61 = vld [vmem:[%s6337_s13 + $0x3d0] sm:$0xff] }
 0x3b8   : > { %v3208_v20 = vpop.f32.mrf.mxu2  ;;  %3523 = vmatpush.bf16.msra.mxu1 %v5271_v60  ;;  %3581 = vmatpush.bf16.msrb.mxu3 %v5287_v39 }
 0x3b9   : > { %v3209_v53 = vadd.f32 %v3208_v20, %v3180_v14  ;;  %v3237_v21 = vpop.f32.mrf.mxu3  ;;  %v5270_v14 = vld [vmem:[%s6337_s13 + $0x308] sm:$0xff] }
 0x3ba   : > { %v3181_v29 = vpop.f32.mrf.mxu1  ;;  %v5286_v20 = vld [vmem:[%s6337_s13 + $0x388] sm:$0xff] }
 0x3bb   : > { %v3238_v58 = vadd.f32 %v3237_v21, %v3209_v53  ;;  %v3268_v51 = vpop.f32.mrf.mxu0  ;;  %v3182_v34 = vadd.f32 %v3181_v29, %v6806_v56  ;;  %3607 = vmatpush.bf16.msra.mxu0 %v6832_v54  ;;  %v5294_v53 = vld [vmem:[%s6337_s13 + $0x3c8] sm:$0xff]  ;;  %3554 = vmatpush.bf16.msrb.mxu2 %v5277_v3 }
 0x3bc   : > { %3524 = vmatpush.bf16.msra.mxu1 %v5270_v14  ;;  %3582 = vmatpush.bf16.msrb.mxu3 %v5286_v20 }
 0x3bd   : > { %v6834_v42 = vadd.f32 %v3266_v62, %v3238_v58 }
 0x3bf   : > { %3608 = vmatpush.bf16.msra.mxu0 %v6839_v9  ;;  %5309 = vmatpush.bf16.msra.mxu2 %v6812_v11 }
 0x3c0   : > { %v3210_v1 = vpop.f32.mrf.mxu2  ;;  %3525 = vmatpush.bf16.msra.mxu1 %v5269_v40  ;;  %3583 = vmatpush.bf16.msrb.mxu3 %v5285_v47 }
 0x3c1   : > { %v3211_v32 = vadd.f32 %v3210_v1, %v3182_v34  ;;  %v3239_v36 = vpop.f32.mrf.mxu3  ;;  %v5293_v34 = vld [vmem:[%s6337_s13 + $0x3c0] sm:$0xff] }
 0x3c2   : > { %v3184_v27 = vpop.f32.mrf.mxu1 }
 0x3c3   : > { %v3240_v33 = vadd.f32 %v3239_v36, %v3211_v32  ;;  %v3271_v45 = vpop.f32.mrf.mxu0  ;;  %v3185_v52 = vadd.f32 %v3184_v27, %v6806_v56  ;;  %3609 = vmatpush.bf16.msra.mxu0 %v5296_v22  ;;  %5310 = vmatpush.bf16.msra.mxu2 %v6825_v49 }
 0x3c5   : > { %3415 = vmatmul.bf16.gmra.mxu1 %v6624_v31  ;;  %3444 = vmatmul.bf16.gmra.mxu2 %v6634_v57  ;;  %v6847_v59 = vadd.f32 %v3268_v51, %v3240_v33 }
 0x3c6   : > { %3473 = vmatmul.bf16.gmra.mxu3 %v6637_v5  ;;  %3502 = vmatmul.bf16.gmra.mxu0 %v6627_v38 }
 0x3c7   : > { %3610 = vmatpush.bf16.msra.mxu0 %v5295_v61  ;;  %5311 = vmatpush.bf16.msra.mxu2 %v6832_v54 }
 0x3c8   : > { %v3213_v31 = vpop.f32.mrf.mxu2 }
 0x3c9   : > { %v3214_v57 = vadd.f32 %v3213_v31, %v3185_v52  ;;  %v3242_v62 = vpop.f32.mrf.mxu3 }
 0x3ca   : > { %v3186_v5 = vpop.f32.mrf.mxu1 }
 0x3cb   : > { %v3243_v4 = vadd.f32 %v3242_v62, %v3214_v57  ;;  %v3273_v38 = vpop.f32.mrf.mxu0  ;;  %v3187_v29 = vadd.f32 %v3186_v5, %v6806_v56  ;;  %3611 = vmatpush.bf16.msra.mxu0 %v5294_v53  ;;  %5312 = vmatpush.bf16.msra.mxu2 %v6839_v9 }
 0x3cd   : > { %v6860_v21 = vadd.f32 %v3271_v45, %v3243_v4 }
 0x3cf   : > { %3612 = vmatpush.bf16.msra.mxu0 %v5293_v34  ;;  %5313 = vmatpush.bf16.msra.mxu2 %v5296_v22 }
 0x3d0   : > { %v3215_v58 = vpop.f32.mrf.mxu2 }
 0x3d1   : > { %v3216_v51 = vadd.f32 %v3215_v58, %v3187_v29  ;;  %v3244_v63 = vpop.f32.mrf.mxu3 }
 0x3d2   : > { %v3189_v1 = vpop.f32.mrf.mxu1 }
 0x3d3   : > { %v3245_v32 = vadd.f32 %v3244_v63, %v3216_v51  ;;  %v3276_v36 = vpop.f32.mrf.mxu0  ;;  %v3190_v27 = vadd.f32 %v3189_v1, %v6806_v56  ;;  %5314 = vmatpush.bf16.msra.mxu2 %v5295_v61 }
 0x3d5   : > { %3420 = vmatmul.bf16.gmra.mxu1 %v6644_v18  ;;  %3449 = vmatmul.bf16.gmra.mxu2 %v6654_v50  ;;  %v6870_v11 = vadd.f32 %v3273_v38, %v3245_v32 }
 0x3d6   : > { %3478 = vmatmul.bf16.gmra.mxu3 %v6661_v41  ;;  %3507 = vmatmul.bf16.gmra.mxu0 %v6648_v6 }
 0x3d7   : > { %5315 = vmatpush.bf16.msra.mxu2 %v5294_v53 }
 0x3d8   : > { %v3218_v49 = vpop.f32.mrf.mxu2 }
 0x3d9   : > { %v3219_v33 = vadd.f32 %v3218_v49, %v3190_v27  ;;  %v3247_v45 = vpop.f32.mrf.mxu3 }
 0x3da   : > { %v3191_v26 = vpop.f32.mrf.mxu1 }
 0x3db   : > { %v3248_v24 = vadd.f32 %v3247_v45, %v3219_v33  ;;  %v3278_v12 = vpop.f32.mrf.mxu0  ;;  %v3192_v50 = vadd.f32 %v3191_v26, %v6806_v56  ;;  %5316 = vmatpush.bf16.msra.mxu2 %v5293_v34 }
 0x3dd   : > { %v6877_v18 = vadd.f32 %v3276_v36, %v3248_v24 }
 0x3e0   : > { %v3220_v41 = vpop.f32.mrf.mxu2 }
 0x3e1   : > { %v3221_v52 = vadd.f32 %v3220_v41, %v3192_v50  ;;  %v3249_v6 = vpop.f32.mrf.mxu3 }
 0x3e2   : > { %v3194_v31 = vpop.f32.mrf.mxu1 }
 0x3e3   : > { %v3250_v57 = vadd.f32 %v3249_v6, %v3221_v52  ;;  %v3281_v62 = vpop.f32.mrf.mxu0  ;;  %v3195_v9 = vadd.f32 %v3194_v31, %v6806_v56 }
 0x3e5   : > { %3425 = vmatmul.bf16.gmra.mxu1 %v6671_v13  ;;  %3454 = vmatmul.bf16.gmra.mxu2 %v6684_v8  ;;  %v6882_v54 = vadd.f32 %v3278_v12, %v3250_v57 }
 0x3e6   : > { %3483 = vmatmul.bf16.gmra.mxu3 %v6694_v35  ;;  %3512 = vmatmul.bf16.gmra.mxu0 %v6674_v7 }
 0x3e8   : > { %v3223_v22 = vpop.f32.mrf.mxu2 }
 0x3e9   : > { %v3224_v60 = vadd.f32 %v3223_v22, %v3195_v9  ;;  %v3252_v39 = vpop.f32.mrf.mxu3 }
 0x3ea   : > { %v3196_v5 = vpop.f32.mrf.mxu1 }
 0x3eb   : > { %v3253_v4 = vadd.f32 %v3252_v39, %v3224_v60  ;;  %v3197_v61 = vadd.f32 %v3196_v5, %v6806_v56  ;;  %v3283_v38 = vpop.f32.mrf.mxu0 }
 0x3ed   : > { %v6888_v13 = vadd.f32 %v3281_v62, %v3253_v4 }
 0x3f0   : > { %v3225_v8 = vpop.f32.mrf.mxu2 }
 0x3f1   : > { %v3226_v3 = vadd.f32 %v3225_v8, %v3197_v61  ;;  %v3254_v14 = vpop.f32.mrf.mxu3 }
 0x3f2   : > { %v3295_v35 = vpop.f32.mrf.mxu1 }
 0x3f3   : > { %v3255_v20 = vadd.f32 %v3254_v14, %v3226_v3  ;;  %v3296_v7 = vadd.f32 %v3295_v35, %v6834_v42  ;;  %v3382_v29 = vpop.f32.mrf.mxu0 }
 0x3f5   : > { %3526 = vmatmul.bf16.vlgmr.msra.gmra.mxu1 %v6712_v37  ;;  %3555 = vmatmul.bf16.vlgmr.msrb.gmra.mxu2 %v6720_v44  ;;  %v6893_v53 = vadd.f32 %v3283_v38, %v3255_v20 }
 0x3f6   : > { %3584 = vmatmul.bf16.vlgmr.msrb.gmra.mxu3 %v6727_v25  ;;  %3613 = vmatmul.bf16.vlgmr.msra.gmra.mxu0 %v6715_v2 }
 0x3f8   : > { %v3324_v56 = vpop.f32.mrf.mxu2 }
 0x3f9   : > { %v3325_v58 = vadd.f32 %v3324_v56, %v3296_v7  ;;  %v3353_v51 = vpop.f32.mrf.mxu3 }
 0x3fa   : > { %v3297_v63 = vpop.f32.mrf.mxu1 }
 0x3fb   : > { %v3354_v40 = vadd.f32 %v3353_v51, %v3325_v58  ;;  %v3298_v47 = vadd.f32 %v3297_v63, %v6847_v59  ;;  %v3384_v34 = vpop.f32.mrf.mxu0 }
 0x3fd   : > { %v6898_v42 = vadd.f32 %v3382_v29, %v3354_v40 }
 0x400   : > { %v3326_v1 = vpop.f32.mrf.mxu2 }
 0x401   : > { %v3327_v37 = vadd.f32 %v3326_v1, %v3298_v47  ;;  %v3355_v32 = vpop.f32.mrf.mxu3 }
 0x402   : > { %v3300_v44 = vpop.f32.mrf.mxu1 }
 0x403   : > { %v3356_v36 = vadd.f32 %v3355_v32, %v3327_v37  ;;  %v3301_v27 = vadd.f32 %v3300_v44, %v6860_v21  ;;  %v3387_v25 = vpop.f32.mrf.mxu0 }
 0x405   : > { %3531 = vmatmul.bf16.gmra.mxu1 %v6743_v17  ;;  %3560 = vmatmul.bf16.gmra.mxu2 %v6756_v48  ;;  %v6903_v2 = vadd.f32 %v3384_v34, %v3356_v36 }
 0x406   : > { %3589 = vmatmul.bf16.gmra.mxu3 %v6761_v19  ;;  %3618 = vmatmul.bf16.gmra.mxu0 %v6747_v43 }
 0x408   : > { %v3329_v59 = vpop.f32.mrf.mxu2 }
 0x409   : > { %v3330_v49 = vadd.f32 %v3329_v59, %v3301_v27  ;;  %v3358_v33 = vpop.f32.mrf.mxu3 }
 0x40a   : > { %v3302_v45 = vpop.f32.mrf.mxu1 }
 0x40b   : > { %v3359_v26 = vadd.f32 %v3358_v33, %v3330_v49  ;;  %v3303_v24 = vadd.f32 %v3302_v45, %v6870_v11  ;;  %v3389_v12 = vpop.f32.mrf.mxu0 }
 0x40d   : > { %v6908_v21 = vadd.f32 %v3387_v25, %v3359_v26 }
 0x410   : > { %v3331_v50 = vpop.f32.mrf.mxu2 }
 0x411   : > { %v3332_v17 = vadd.f32 %v3331_v50, %v3303_v24  ;;  %v3360_v41 = vpop.f32.mrf.mxu3 }
 0x412   : > { %v3305_v48 = vpop.f32.mrf.mxu1 }
 0x413   : > { %v3361_v52 = vadd.f32 %v3360_v41, %v3332_v17  ;;  %v3306_v6 = vadd.f32 %v3305_v48, %v6877_v18  ;;  %v3392_v19 = vpop.f32.mrf.mxu0 }
 0x415   : > { %3536 = vmatmul.bf16.gmra.mxu1 %v6769_v55  ;;  %3565 = vmatmul.bf16.gmra.mxu2 %v6780_v46  ;;  %v6913_v43 = vadd.f32 %v3389_v12, %v3361_v52 }
 0x416   : > { %3594 = vmatmul.bf16.gmra.mxu3 %v6786_v10  ;;  %3623 = vmatmul.bf16.gmra.mxu0 %v6772_v28 }
 0x418   : > { %v3334_v11 = vpop.f32.mrf.mxu2 }
 0x419   : > { %v3335_v31 = vadd.f32 %v3334_v11, %v3306_v6  ;;  %v3363_v57 = vpop.f32.mrf.mxu3 }
 0x41a   : > { %v3307_v62 = vpop.f32.mrf.mxu1 }
 0x41b   : > { %v3364_v9 = vadd.f32 %v3363_v57, %v3335_v31  ;;  %v3308_v22 = vadd.f32 %v3307_v62, %v6882_v54  ;;  %v3394_v60 = vpop.f32.mrf.mxu0 }
 0x41d   : > { %v6918_v18 = vadd.f32 %v3392_v19, %v3364_v9 }
 0x420   : > { %v3336_v39 = vpop.f32.mrf.mxu2 }
 0x421   : > { %v3337_v55 = vadd.f32 %v3336_v39, %v3308_v22  ;;  %v3365_v5 = vpop.f32.mrf.mxu3 }
 0x422   : > { %v3310_v46 = vpop.f32.mrf.mxu1 }
 0x423   : > { %v3366_v4 = vadd.f32 %v3365_v5, %v3337_v55  ;;  %v3311_v61 = vadd.f32 %v3310_v46, %v6888_v13  ;;  %v3397_v10 = vpop.f32.mrf.mxu0 }
 0x425   : > { %3541 = vmatmul.bf16.gmra.mxu1 %v6795_v23  ;;  %3570 = vmatmul.bf16.gmra.mxu2 %v6814_v30  ;;  %v6923_v28 = vadd.f32 %v3394_v60, %v3366_v4 }
 0x426   : > { %3599 = vmatmul.bf16.gmra.mxu3 %v6820_v15 }
 0x428   : > { %v3339_v54 = vpop.f32.mrf.mxu2 }
 0x429   : > { %v3340_v38 = vadd.f32 %v3339_v54, %v3311_v61  ;;  %v3368_v8 = vpop.f32.mrf.mxu3 }
 0x42a   : > { %v3312_v3 = vpop.f32.mrf.mxu1 }
 0x42b   : > { %v3369_v14 = vadd.f32 %v3368_v8, %v3340_v38  ;;  %v3313_v35 = vadd.f32 %v3312_v3, %v6893_v53  ;;  %v3399_v20 = vpop.f32.mrf.mxu0 }
 0x42d   : > { %v3398_v7 = vadd.f32 %v3397_v10, %v3369_v14 }
 0x430   : > { %v3341_v29 = vpop.f32.mrf.mxu2 }
 0x431   : > { %v3342_v13 = vadd.f32 %v3341_v29, %v3313_v35  ;;  %v3370_v56 = vpop.f32.mrf.mxu3 }
 0x432   : > { %v3411_v58 = vpop.f32.mrf.mxu1 }
 0x433   : > { %v3371_v23 = vadd.f32 %v3370_v56, %v3342_v13  ;;  %v3498_v51 = vpop.f32.mrf.mxu0  ;;  %v3412_v31 = vadd.f32 %v3411_v58, %v6898_v42 }
 0x435   : > { %3628 = vmatmul.bf16.vlgmr.msra.gmra.mxu2 %v6798_v16  ;;  %v3400_v30 = vadd.f32 %v3399_v20, %v3371_v23 }
 0x438   : > { %v3440_v63 = vpop.f32.mrf.mxu2 }
 0x439   : > { %v3469_v15 = vpop.f32.mrf.mxu3  ;;  %v3441_v22 = vadd.f32 %v3440_v63, %v3412_v31 }
 0x43a   : > { %v3413_v40 = vpop.f32.mrf.mxu1 }
 0x43b   : > { %v3500_v47 = vpop.f32.mrf.mxu0  ;;  %v3470_v55 = vadd.f32 %v3469_v15, %v3441_v22  ;;  %v3414_v61 = vadd.f32 %v3413_v40, %v6903_v2  ;;  %v7138_v15 = vld [vmem:[#allocation14_spill] sm:$0xff] }
 0x43d   : > { %v3499_v8 = vadd.f32 %v3498_v51, %v3470_v55  ;;  %v7140_v55 = vld [vmem:[#allocation16_spill] sm:$0xff] }
 0x440   : > { %v3442_v34 = vpop.f32.mrf.mxu2 }
 0x441   : > { %v3471_v1 = vpop.f32.mrf.mxu3  ;;  %v3443_v38 = vadd.f32 %v3442_v34, %v3414_v61 }
 0x442   : > { %v3416_v37 = vpop.f32.mrf.mxu1 }
 0x443   : > { %v6928_v32 = vpop.f32.mrf.mxu0  ;;  %v3472_v35 = vadd.f32 %v3471_v1, %v3443_v38  ;;  %v3417_v13 = vadd.f32 %v3416_v37, %v6908_v21 }
 0x445   : > { %v3501_v63 = vadd.f32 %v3500_v47, %v3472_v35 }
 0x448   : > { %v3445_v53 = vpop.f32.mrf.mxu2 }
 0x449   : > { %v3474_v44 = vpop.f32.mrf.mxu3  ;;  %v3446_v23 = vadd.f32 %v3445_v53, %v3417_v13 }
 0x44a   : > { %v3418_v36 = vpop.f32.mrf.mxu1 }
 0x44b   : > { %v6930_v27 = vpop.f32.mrf.mxu0  ;;  %v3475_v34 = vadd.f32 %v3474_v44, %v3446_v23 }
 0x44d   : > { %v3504_v53 = vadd.f32 %v6928_v32, %v3475_v34 }
 0x450   : > { %v3447_v25 = vpop.f32.mrf.mxu2 }
 0x451   : > { %v3476_v59 = vpop.f32.mrf.mxu3 }
 0x452   : > { %v6932_v49 = vpop.f32.mrf.mxu1 }
 0x453   : > { %v6934_v16 = vpop.f32.mrf.mxu0 }
 0x458   : > { %v6936_v33 = vpop.f32.mrf.mxu2 }
 0x459   : > { %v6938_v45 = vpop.f32.mrf.mxu3 }
 0x45a   : > { %v6940_v26 = vpop.f32.mrf.mxu1 }
 0x45b   : > { %v6942_v24 = vpop.f32.mrf.mxu0 }
 0x460   : > { %v6944_v12 = vpop.f32.mrf.mxu2 }
 0x461   : > { %v6946_v50 = vpop.f32.mrf.mxu3 }
 0x462   : > { %v3426_v17 = vpop.f32.mrf.mxu1 }
 0x463   : > { %v3427_v41 = vadd.f32 %v3426_v17, %v3398_v7  ;;  %v3513_v48 = vpop.f32.mrf.mxu0 }
 0x468   : > { %v3455_v52 = vpop.f32.mrf.mxu2 }
 0x469   : > { %v3456_v6 = vadd.f32 %v3455_v52, %v3427_v41  ;;  %v3484_v19 = vpop.f32.mrf.mxu3 }
 0x46a   : > { %v3428_v11 = vpop.f32.mrf.mxu1 }
 0x46b   : > { %v3485_v57 = vadd.f32 %v3484_v19, %v3456_v6  ;;  %v3429_v62 = vadd.f32 %v3428_v11, %v3400_v30  ;;  %v3515_v9 = vpop.f32.mrf.mxu0  ;;  %v7139_v19 = vld [vmem:[#allocation15_spill] sm:$0xff] }
 0x46d   : > { %v6949_v60 = vadd.f32 %v3513_v48, %v3485_v57  ;;  %v3419_v48 = vadd.f32 %v3418_v36, %v6913_v43  ;;  %v3422_v43 = vadd.f32 %v6932_v49, %v6918_v18  ;;  %v3424_v18 = vadd.f32 %v6940_v26, %v6923_v28 }
 0x46f   : > { %v3448_v21 = vadd.f32 %v3447_v25, %v3419_v48  ;;  %v3451_v25 = vadd.f32 %v6936_v33, %v3422_v43  ;;  %v3453_v33 = vadd.f32 %v6944_v12, %v3424_v18  ;;  %v7142_v12 = vld [vmem:[#allocation19_spill] sm:$0xff] }
 0x470   : > { %v3457_v39 = vpop.f32.mrf.mxu2 }
 0x471   : > { %v3458_v5 = vadd.f32 %v3457_v39, %v3429_v62  ;;  %v3486_v46 = vpop.f32.mrf.mxu3  ;;  %v3477_v57 = vadd.f32 %v3476_v59, %v3448_v21 }
 0x472   : > { %v3527_v4 = vpop.f32.mrf.mxu1 }
 0x473   : > { %v3487_v10 = vadd.f32 %v3486_v46, %v3458_v5  ;;  %v3614_v54 = vpop.f32.mrf.mxu0  ;;  %v3528_v42 = vadd.f32 %v3527_v4, %v3499_v8  ;;  %v3506_v32 = vadd.f32 %v6930_v27, %v3477_v57  ;;  %v3480_v4 = vadd.f32 %v6938_v45, %v3451_v25 }
 0x474   : > { %v3482_v45 = vadd.f32 %v6946_v50, %v3453_v33  ;;  %v7143_v50 = vld [vmem:[#allocation18_spill] sm:$0xff] }
 0x475   : > { %v6952_v3 = vadd.f32 %v3515_v9, %v3487_v10  ;;  %v3509_v38 = vadd.f32 %v6934_v16, %v3480_v4 }
 0x476   : > { %v3511_v28 = vadd.f32 %v6942_v24, %v3482_v45 }
 0x478   : > { %v3556_v14 = vpop.f32.mrf.mxu2 }
 0x479   : > { %v3557_v20 = vadd.f32 %v3556_v14, %v3528_v42  ;;  %v3585_v7 = vpop.f32.mrf.mxu3  ;;  %v7141_v42 = vld [vmem:[#allocation17_spill] sm:$0xff] }
 0x47a   : > { %v3529_v29 = vpop.f32.mrf.mxu1 }
 0x47b   : > { %v3586_v56 = vadd.f32 %v3585_v7, %v3557_v20  ;;  %v3616_v58 = vpop.f32.mrf.mxu0  ;;  %v3530_v2 = vadd.f32 %v3529_v29, %v3501_v63 }
 0x47d   : > { %v3615_v30 = vadd.f32 %v3614_v54, %v3586_v56 }
 0x47f   : > { %v6956_v40 = vadd.f32 %v3615_v30, %v7138_v15 }
 0x480   : > { %v3558_v51 = vpop.f32.mrf.mxu2 }
 0x481   : > { %v3559_v17 = vadd.f32 %v3558_v51, %v3530_v2  ;;  %v3587_v41 = vpop.f32.mrf.mxu3  ;;  %3642 = vadd.xlane.f32.xlu1 %v6956_v40 }
 0x482   : > { %v3532_v1 = vpop.f32.mrf.mxu1 }
 0x483   : > { %v3588_v52 = vadd.f32 %v3587_v41, %v3559_v17  ;;  %v3619_v6 = vpop.f32.mrf.mxu0  ;;  %v3533_v47 = vadd.f32 %v3532_v1, %v3504_v53 }
 0x485   : > { %v3617_v37 = vadd.f32 %v3616_v58, %v3588_v52 }
 0x487   : > { %v6962_v11 = vadd.f32 %v3617_v37, %v7139_v19 }
 0x488   : > { %v3561_v31 = vpop.f32.mrf.mxu2 }
 0x489   : > { %v3562_v44 = vadd.f32 %v3561_v31, %v3533_v47  ;;  %v3590_v62 = vpop.f32.mrf.mxu3  ;;  %3644 = vadd.xlane.f32.xlu2 %v6962_v11  ;;  %v7144_v31 = vld [vmem:[#allocation20_spill] sm:$0xff] }
 0x48a   : > { %v3534_v9 = vpop.f32.mrf.mxu1 }
 0x48b   : > { %v3591_v36 = vadd.f32 %v3590_v62, %v3562_v44  ;;  %v3535_v39 = vadd.f32 %v3534_v9, %v3506_v32  ;;  %v3621_v46 = vpop.f32.mrf.mxu0 }
 0x48d   : > { %v3620_v22 = vadd.f32 %v3619_v6, %v3591_v36  ;;  %v7145_v36 = vld [vmem:[#allocation21_spill] sm:$0xff] }
 0x48f   : > { %v6970_v5 = vadd.f32 %v3620_v22, %v7140_v55  ;;  %v7146_v22 = vld [vmem:[#allocation13_spill] sm:$0xff] }
 0x490   : > { %v3563_v59 = vpop.f32.mrf.mxu2 }
 0x491   : > { %v3564_v61 = vadd.f32 %v3563_v59, %v3535_v39  ;;  %v3592_v10 = vpop.f32.mrf.mxu3  ;;  %3646 = vadd.xlane.f32.xlu0 %v6970_v5 }
 0x492   : > { %v3537_v54 = vpop.f32.mrf.mxu1 }
 0x493   : > { %v3593_v49 = vadd.f32 %v3592_v10, %v3564_v61  ;;  %v3538_v8 = vadd.f32 %v3537_v54, %v3509_v38  ;;  %v3624_v29 = vpop.f32.mrf.mxu0 }
 0x495   : > { %v3622_v27 = vadd.f32 %v3621_v46, %v3593_v49 }
 0x497   : > { %v3637_v14 = vadd.f32 %v3622_v27, %v7141_v42 }
 0x498   : > { %v3566_v35 = vpop.f32.mrf.mxu2 }
 0x499   : > { %v3567_v20 = vadd.f32 %v3566_v35, %v3538_v8  ;;  %v3595_v7 = vpop.f32.mrf.mxu3  ;;  %3648 = vadd.xlane.f32.xlu1 %v3637_v14 }
 0x49a   : > { %v3539_v56 = vpop.f32.mrf.mxu1 }
 0x49b   : > { %v3596_v13 = vadd.f32 %v3595_v7, %v3567_v20  ;;  %v3540_v26 = vadd.f32 %v3539_v56, %v3511_v28  ;;  %v3626_v15 = vpop.f32.mrf.mxu0 }
 0x49d   : > { %v3625_v58 = vadd.f32 %v3624_v29, %v3596_v13 }
 0x49f   : > { %v3638_v23 = vadd.f32 %v3625_v58, %v7142_v12 }
 0x4a0   : > { %v3568_v30 = vpop.f32.mrf.mxu2 }
 0x4a1   : > { %v3569_v16 = vadd.f32 %v3568_v30, %v3540_v26  ;;  %3650 = vadd.xlane.f32.xlu2 %v3638_v23  ;;  %v3597_v63 = vpop.f32.mrf.mxu3 }
 0x4a2   : > { %v3542_v41 = vpop.f32.mrf.mxu1 }
 0x4a3   : > { %v3598_v2 = vadd.f32 %v3597_v63, %v3569_v16  ;;  %v3543_v48 = vadd.f32 %v3542_v41, %v6949_v60 }
 0x4a5   : > { %v3627_v51 = vadd.f32 %v3626_v15, %v3598_v2 }
 0x4a7   : > { %v3639_v34 = vadd.f32 %v3627_v51, %v7143_v50 }
 0x4a8   : > { %v3571_v17 = vpop.f32.mrf.mxu2 }
 0x4a9   : > { %3652 = vadd.xlane.f32.xlu0 %v3639_v34  ;;  %v3572_v52 = vadd.f32 %v3571_v17, %v3543_v48  ;;  %v3600_v24 = vpop.f32.mrf.mxu3 }
 0x4aa   : > { %v3544_v21 = vpop.f32.mrf.mxu1 }
 0x4ab   : > { %v3601_v37 = vadd.f32 %v3600_v24, %v3572_v52  ;;  %v3545_v6 = vadd.f32 %v3544_v21, %v6952_v3 }
 0x4b0   : > { %v3573_v1 = vpop.f32.mrf.mxu2 }
 0x4b1   : > { %v3574_v19 = vadd.f32 %v3573_v1, %v3545_v6  ;;  %v3602_v44 = vpop.f32.mrf.mxu3 }
 0x4b3   : > { %v3603_v62 = vadd.f32 %v3602_v44, %v3574_v19 }
 0x4b8   : > { %v3629_v53 = vpop.f32.mrf.mxu2 }
 0x4b9   : > { %v3630_v47 = vadd.f32 %v3629_v53, %v3601_v37  ;;  %v7034_v37 = vperm.slane %v6803_v0, 4 }
 0x4bb   : > { %v3640_v57 = vadd.f32 %v3630_v47, %v7144_v31  ;;  %v7037_v47 = vperm.slane %v6803_v0, 5 }
 0x4bd   : > { %3654 = vadd.xlane.f32.xlu1 %v3640_v57 }
 0x4c0   : > { %v3631_v9 = vpop.f32.mrf.mxu2 }
 0x4c1   : > { %v3632_v43 = vadd.f32 %v3631_v9, %v3603_v62 }
 0x4c3   : > { %v3641_v25 = vadd.f32 %v3632_v43, %v7145_v36 }
 0x4c5   : > { %3656 = vadd.xlane.f32.xlu2 %v3641_v25 }
 0x4f4   : > { %v3643_v60 = vpop.xlane.xlu1 %3642 }
 0x4f5   : > { %v3658_v32 = vmul.f32 %v3643_v60, %v7146_v22 }
 0x4f7   : > { %v6989_v39 = vsub.f32 %v6956_v40, %v3658_v32 }
 0x4f9   : > { %v3674_v3 = vmul.f32 %v6989_v39, %v6989_v39 }
 0x4fb   : > { %3682 = vadd.xlane.f32.xlu0 %v3674_v3 }
 0x4fc   : > { %v3645_v55 = vpop.xlane.xlu2 %3644 }
 0x4fd   : > { %v3659_v46 = vmul.f32 %v3645_v55, %v7146_v22 }
 0x4ff   : > { %v6995_v59 = vsub.f32 %v6962_v11, %v3659_v46 }
 0x501   : > { %v3675_v4 = vmul.f32 %v6995_v59, %v6995_v59 }
 0x503   : > { %3684 = vadd.xlane.f32.xlu1 %v3675_v4 }
 0x504   : > { %v3647_v61 = vpop.xlane.xlu0 %3646 }
 0x505   : > { %v3660_v10 = vmul.f32 %v3647_v61, %v7146_v22 }
 0x507   : > { %v7001_v40 = vsub.f32 %v6970_v5, %v3660_v10 }
 0x509   : > { %v3676_v54 = vmul.f32 %v7001_v40, %v7001_v40 }
 0x50b   : > { %3686 = vadd.xlane.f32.xlu2 %v3676_v54 }
 0x50c   : > { %v3649_v18 = vpop.xlane.xlu1 %3648 }
 0x50d   : > { %v3661_v49 = vmul.f32 %v3649_v18, %v7146_v22 }
 0x50f   : > { %v7006_v33 = vsub.f32 %v3637_v14, %v3661_v49 }
 0x511   : > { %v3677_v11 = vmul.f32 %v7006_v33, %v7006_v33 }
 0x513   : > { %3688 = vadd.xlane.f32.xlu0 %v3677_v11 }
 0x514   : > { %v3651_v27 = vpop.xlane.xlu2 %3650 }
 0x515   : > { %v3662_v38 = vmul.f32 %v3651_v27, %v7146_v22 }
 0x517   : > { %v7011_v8 = vsub.f32 %v3638_v23, %v3662_v38 }
 0x519   : > { %v3678_v5 = vmul.f32 %v7011_v8, %v7011_v8 }
 0x51b   : > { %3690 = vadd.xlane.f32.xlu1 %v3678_v5 }
 0x51c   : > { %v3653_v42 = vpop.xlane.xlu0 %3652 }
 0x51d   : > { %v3663_v35 = vmul.f32 %v3653_v42, %v7146_v22 }
 0x51f   : > { %v7016_v45 = vsub.f32 %v3639_v34, %v3663_v35 }
 0x521   : > { %v3679_v14 = vmul.f32 %v7016_v45, %v7016_v45 }
 0x523   : > { %3692 = vadd.xlane.f32.xlu2 %v3679_v14 }
 0x530   : > { %v3655_v20 = vpop.xlane.xlu1 %3654 }
 0x531   : > { %v3664_v7 = vmul.f32 %v3655_v20, %v7146_v22 }
 0x533   : > { %v7021_v29 = vsub.f32 %v3640_v57, %v3664_v7 }
 0x535   : > { %v3680_v13 = vmul.f32 %v7021_v29, %v7021_v29 }
 0x537   : > { %3694 = vadd.xlane.f32.xlu0 %v3680_v13 }
 0x538   : > { %v3657_v56 = vpop.xlane.xlu2 %3656 }
 0x539   : > { %v3665_v58 = vmul.f32 %v3657_v56, %v7146_v22 }
 0x53b   : > { %v7026_v28 = vsub.f32 %v3641_v25, %v3665_v58 }
 0x53d   : > { %v3681_v26 = vmul.f32 %v7026_v28, %v7026_v28 }
 0x53f   : > { %3696 = vadd.xlane.f32.xlu1 %v3681_v26 }
 0x56e   : > { %v3683_v12 = vpop.xlane.xlu0 %3682 }
 0x56f   : > { %v3698_v23 = vmul.f32 %v3683_v12, %v7146_v22 }
 0x571   : > { %v3706_v30 = vadd.f32 1e-05, %v3698_v23 }
 0x573   : > { %5418 = vrsqrt.f32 %v3706_v30  ;;  %vm3720_vm10 = vweird.f32 %v3706_v30 }
 0x576   : > { %v3685_v16 = vpop.xlane.xlu1 %3684 }
 0x577   : > { %v3699_v63 = vmul.f32 %v3685_v16, %v7146_v22 }
 0x579   : > { %v5419_v2 = vpop.eup %5418  ;;  %v3707_v15 = vadd.f32 1e-05, %v3699_v63 }
 0x57a   : > { %v3715_v51 = vmul.f32 %v5419_v2, %v3706_v30  ;;  %vm3721_vm9 = vweird.f32 %v5419_v2 }
 0x57b   : > { %5420 = vrsqrt.f32 %v3707_v15  ;;  %vm3722_vm11 = vmor %vm3720_vm10, %vm3721_vm9  ;;  %vm3730_vm13 = vweird.f32 %v3707_v15 }
 0x57c   : > { %v3716_v50 = vmul.f32 %v5419_v2, %v3715_v51 }
 0x57e   : > { %v3717_v34 = vmul.f32 0.5, %v3716_v50  ;;  %v3687_v17 = vpop.xlane.xlu2 %3686 }
 0x57f   : > { %v3700_v41 = vmul.f32 %v3687_v17, %v7146_v22 }
 0x580   : > { %v3718_v1 = vsub.f32 1.5, %v3717_v34 }
 0x581   : > { %v5421_v48 = vpop.eup %5420  ;;  %v3708_v52 = vadd.f32 1e-05, %v3700_v41 }
 0x582   : > { %v3719_v24 = vmul.f32 %v5419_v2, %v3718_v1  ;;  %v3725_v21 = vmul.f32 %v5421_v48, %v3707_v15  ;;  %vm3731_vm12 = vweird.f32 %v5421_v48 }
 0x583   : > { %5422 = vrsqrt.f32 %v3708_v52  ;;  %vm3732_vm14 = vmor %vm3730_vm13, %vm3731_vm12  ;;  %vm3740_vm0 = vweird.f32 %v3708_v52 }
 0x584   : > { %v3723_v53 = vsel %vm3722_vm11, %v5419_v2, %v3719_v24  ;;  %v3726_v6 = vmul.f32 %v5421_v48, %v3725_v21 }
 0x585   : > { %v3794_v19 = vmul.f32 %v3723_v53, %v6989_v39 }
 0x586   : > { %v3727_v31 = vmul.f32 0.5, %v3726_v6  ;;  %v3689_v57 = vpop.xlane.xlu0 %3688 }
 0x587   : > { %v3803_v44 = vmul.f32 %v7034_v37, %v3794_v19  ;;  %v3701_v62 = vmul.f32 %v3689_v57, %v7146_v22 }
 0x588   : > { %v3728_v9 = vsub.f32 1.5, %v3727_v31 }
 0x589   : > { %v5423_v43 = vpop.eup %5422  ;;  %v3812_v36 = vadd.f32 %v7037_v47, %v3803_v44  ;;  %v3709_v25 = vadd.f32 1e-05, %v3701_v62 }
 0x58a   : > { %v3729_v60 = vmul.f32 %v5421_v48, %v3728_v9  ;;  %v3735_v32 = vmul.f32 %v5423_v43, %v3708_v52  ;;  %vm3741_vm15 = vweird.f32 %v5423_v43 }
 0x58b   : > { %3820 = vst [vmem:[%s7107_s6] sm:$0xff] %v3812_v36  ;;  %5424 = vrsqrt.f32 %v3709_v25  ;;  %vm3742_vm1 = vmor %vm3740_vm0, %vm3741_vm15  ;;  %vm3750_vm3 = vweird.f32 %v3709_v25 }
 0x58c   : > { %v3733_v0 = vsel %vm3732_vm14, %v5421_v48, %v3729_v60  ;;  %v3736_v39 = vmul.f32 %v5423_v43, %v3735_v32 }
 0x58d   : > { %v3795_v3 = vmul.f32 %v3733_v0, %v6995_v59 }
 0x58e   : > { %v3737_v55 = vmul.f32 0.5, %v3736_v39  ;;  %v3691_v46 = vpop.xlane.xlu1 %3690 }
 0x58f   : > { %v3804_v4 = vmul.f32 %v7034_v37, %v3795_v3  ;;  %v3702_v61 = vmul.f32 %v3691_v46, %v7146_v22 }
 0x590   : > { %v3738_v10 = vsub.f32 1.5, %v3737_v55 }
 0x591   : > { %v5425_v54 = vpop.eup %5424  ;;  %v3813_v18 = vadd.f32 %v7037_v47, %v3804_v4  ;;  %v3710_v49 = vadd.f32 1e-05, %v3702_v61 }
 0x592   : > { %v3739_v11 = vmul.f32 %v5423_v43, %v3738_v10  ;;  %v3745_v27 = vmul.f32 %v5425_v54, %v3709_v25  ;;  %vm3751_vm2 = vweird.f32 %v5425_v54 }
 0x593   : > { %3821 = vst [vmem:[%s7107_s6 + $0x8] sm:$0xff] %v3813_v18  ;;  %5426 = vrsqrt.f32 %v3710_v49  ;;  %vm3752_vm4 = vmor %vm3750_vm3, %vm3751_vm2  ;;  %vm3760_vm6 = vweird.f32 %v3710_v49 }
 0x594   : > { %v3743_v59 = vsel %vm3742_vm1, %v5423_v43, %v3739_v11  ;;  %v3746_v38 = vmul.f32 %v5425_v54, %v3745_v27 }
 0x595   : > { %v3796_v5 = vmul.f32 %v3743_v59, %v7001_v40 }
 0x596   : > { %v3747_v42 = vmul.f32 0.5, %v3746_v38  ;;  %v3693_v35 = vpop.xlane.xlu2 %3692 }
 0x597   : > { %v3805_v14 = vmul.f32 %v7034_v37, %v3796_v5  ;;  %v3703_v20 = vmul.f32 %v3693_v35, %v7146_v22 }
 0x598   : > { %v3748_v7 = vsub.f32 1.5, %v3747_v42 }
 0x599   : > { %v5427_v13 = vpop.eup %5426  ;;  %v3814_v56 = vadd.f32 %v7037_v47, %v3805_v14  ;;  %v3711_v58 = vadd.f32 1e-05, %v3703_v20 }
 0x59a   : > { %v3749_v26 = vmul.f32 %v5425_v54, %v3748_v7  ;;  %v3755_v12 = vmul.f32 %v5427_v13, %v3710_v49  ;;  %vm3761_vm5 = vweird.f32 %v5427_v13 }
 0x59b   : > { %3822 = vst [vmem:[%s7107_s6 + $0x10] sm:$0xff] %v3814_v56  ;;  %5428 = vrsqrt.f32 %v3711_v58  ;;  %vm3762_vm7 = vmor %vm3760_vm6, %vm3761_vm5  ;;  %vm3770_vm9 = vweird.f32 %v3711_v58 }
 0x59c   : > { %v3753_v40 = vsel %vm3752_vm4, %v5425_v54, %v3749_v26  ;;  %v3756_v23 = vmul.f32 %v5427_v13, %v3755_v12 }
 0x59d   : > { %v3797_v30 = vmul.f32 %v3753_v40, %v7006_v33 }
 0x59e   : > { %v3757_v16 = vmul.f32 0.5, %v3756_v23 }
 0x59f   : > { %v3806_v63 = vmul.f32 %v7034_v37, %v3797_v30 }
 0x5a0   : > { %v3758_v2 = vsub.f32 1.5, %v3757_v16 }
 0x5a1   : > { %v5429_v15 = vpop.eup %5428  ;;  %v3815_v51 = vadd.f32 %v7037_v47, %v3806_v63 }
 0x5a2   : > { %v3759_v50 = vmul.f32 %v5427_v13, %v3758_v2  ;;  %v3765_v34 = vmul.f32 %v5429_v15, %v3711_v58  ;;  %vm3771_vm8 = vweird.f32 %v5429_v15 }
 0x5a3   : > { %3823 = vst [vmem:[%s7107_s6 + $0x18] sm:$0xff] %v3815_v51  ;;  %vm3772_vm10 = vmor %vm3770_vm9, %vm3771_vm8 }
 0x5a4   : > { %v3763_v17 = vsel %vm3762_vm7, %v5427_v13, %v3759_v50  ;;  %v3766_v41 = vmul.f32 %v5429_v15, %v3765_v34 }
 0x5a5   : > { %v3798_v33 = vmul.f32 %v3763_v17, %v7011_v8 }
 0x5a6   : > { %v3767_v1 = vmul.f32 0.5, %v3766_v41 }
 0x5a7   : > { %v3807_v48 = vmul.f32 %v7034_v37, %v3798_v33 }
 0x5a8   : > { %v3768_v52 = vsub.f32 1.5, %v3767_v1 }
 0x5a9   : > { %v3816_v24 = vadd.f32 %v7037_v47, %v3807_v48 }
 0x5aa   : > { %v3769_v21 = vmul.f32 %v5429_v15, %v3768_v52  ;;  %v3695_v53 = vpop.xlane.xlu0 %3694 }
 0x5ab   : > { %3824 = vst [vmem:[%s7107_s6 + $0x20] sm:$0xff] %v3816_v24  ;;  %v3704_v6 = vmul.f32 %v3695_v53, %v7146_v22 }
 0x5ac   : > { %v3773_v19 = vsel %vm3772_vm10, %v5429_v15, %v3769_v21 }
 0x5ad   : > { %v3799_v8 = vmul.f32 %v3773_v19, %v7016_v45  ;;  %v3712_v31 = vadd.f32 1e-05, %v3704_v6 }
 0x5af   : > { %v3808_v57 = vmul.f32 %v7034_v37, %v3799_v8  ;;  %5430 = vrsqrt.f32 %v3712_v31  ;;  %vm3780_vm12 = vweird.f32 %v3712_v31 }
 0x5b1   : > { %v3817_v44 = vadd.f32 %v7037_v47, %v3808_v57 }
 0x5b2   : > { %v3697_v62 = vpop.xlane.xlu1 %3696 }
 0x5b3   : > { %3825 = vst [vmem:[%s7107_s6 + $0x28] sm:$0xff] %v3817_v44  ;;  %v3705_v9 = vmul.f32 %v3697_v62, %v7146_v22 }
 0x5b5   : > { %v5431_v43 = vpop.eup %5430  ;;  %v3713_v36 = vadd.f32 1e-05, %v3705_v9 }
 0x5b6   : > { %v3775_v25 = vmul.f32 %v5431_v43, %v3712_v31  ;;  %vm3781_vm11 = vweird.f32 %v5431_v43 }
 0x5b7   : > { %5432 = vrsqrt.f32 %v3713_v36  ;;  %vm3782_vm13 = vmor %vm3780_vm12, %vm3781_vm11  ;;  %vm3790_vm15 = vweird.f32 %v3713_v36 }
 0x5b8   : > { %v3776_v60 = vmul.f32 %v5431_v43, %v3775_v25 }
 0x5ba   : > { %v3777_v32 = vmul.f32 0.5, %v3776_v60 }
 0x5bc   : > { %v3778_v45 = vsub.f32 1.5, %v3777_v32 }
 0x5bd   : > { %v5433_v0 = vpop.eup %5432 }
 0x5be   : > { %v3779_v39 = vmul.f32 %v5431_v43, %v3778_v45  ;;  %v3785_v3 = vmul.f32 %v5433_v0, %v3713_v36  ;;  %vm3791_vm14 = vweird.f32 %v5433_v0 }
 0x5bf   : > { %vm3792_vm0 = vmor %vm3790_vm15, %vm3791_vm14 }
 0x5c0   : > { %v3783_v55 = vsel %vm3782_vm13, %v5431_v43, %v3779_v39  ;;  %v3786_v46 = vmul.f32 %v5433_v0, %v3785_v3 }
 0x5c1   : > { %v3800_v4 = vmul.f32 %v3783_v55, %v7021_v29 }
 0x5c2   : > { %v3787_v61 = vmul.f32 0.5, %v3786_v46 }
 0x5c3   : > { %v3809_v22 = vmul.f32 %v7034_v37, %v3800_v4 }
 0x5c4   : > { %v3788_v10 = vsub.f32 1.5, %v3787_v61 }
 0x5c5   : > { %v3818_v54 = vadd.f32 %v7037_v47, %v3809_v22 }
 0x5c6   : > { %v3789_v18 = vmul.f32 %v5433_v0, %v3788_v10 }
 0x5c7   : > { %3826 = vst [vmem:[%s7107_s6 + $0x30] sm:$0xff] %v3818_v54 }
 0x5c8   : > { %v3793_v49 = vsel %vm3792_vm0, %v5433_v0, %v3789_v18 }
 0x5c9   : > { %v3801_v11 = vmul.f32 %v3793_v49, %v7026_v28 }
 0x5cb   : > { %v3810_v27 = vmul.f32 %v7034_v37, %v3801_v11 }
 0x5cd   : > { %v3819_v29 = vadd.f32 %v7037_v47, %v3810_v27 }
 0x5cf   : > { %3827 = vst [vmem:[%s7107_s6 + $0x38] sm:$0xff] %v3819_v29 }
 0x5d0 PF: > { %s19_s23 = sadd.s32 1, %s5619_s23   ;;  %s7147_s21 = smov %s5615_s22 }
 0x5d1   : > { %p16_p8 = scmp.ge.s32.totalorder %s19_s23, 8   ;;  %s7148_s22 = smov %s7150_s24 }
 0x5d3   :  { %18 = sbr.rel (!%p16_p8) target bundleno = 4 (0x4), region = 104 }
 0x5d8   :  { %3850 = vsyncpa [#allocation3], 1 }
 0x5d9   :  { %3852 = vsyncpa [#allocation3 + $0x1], 1 }
 0x5da   :  { %3853 = vsyncpa [#allocation5], 1 }
 0x5db   :  { %3854 = vsyncpa [#allocation8], 1 }

</bundles_post_ra>
